<compile_context>
chip_gen: v7x
topology: tpu7x:2x2x1
jax: 0.10.0
libtpu: 0.0.40
codegen_flags: <defaults>
</compile_context>

<pallas_src>
import math

import jax
import jax.numpy as jnp
from jax import lax
from jax.experimental import pallas as pl
from jax.experimental.pallas import tpu as pltpu

# ----------------------------- configuration -------------------------------
B = 2              # batch
IMG = 16           # image H = W
C_IN = 1           # image channels
N_PART = 8         # number of part capsules (M)
N_FEAT = 16        # special features per part capsule
N_POSE = 6         # affine pose params per capsule
TEMPLATE_SIZE = 6  # template H = W (single channel templates)
D_MODEL = 32       # set-transformer width
N_OBJ = 4          # number of object capsules (K)
D_OBJ = 32         # object-capsule feature width
TEMPERATURE = 4.0  # decoder mixture temperature
EPS = 1e-6
NEG = -1e9         # additive mask value for cross-batch attention entries
LOG2PI = math.log(2.0 * math.pi)

VMEM_SPEC = pl.BlockSpec(memory_space=pltpu.MemorySpace.VMEM)


# --------------------------- small in-kernel helpers -------------------------
def _dot(a, b):
    return jnp.dot(a, b, preferred_element_type=jnp.float32)


def _sigmoid(x):
    return 1.0 / (1.0 + jnp.exp(-x))


def _softplus(x):
    return jnp.maximum(x, 0.0) + jnp.log(1.0 + jnp.exp(-jnp.abs(x)))


def _softmax_last(s):
    """Softmax over the last axis; denominator reciprocal runs on the EUP."""
    s = s - jnp.max(s, axis=-1, keepdims=True)
    p = jnp.exp(s)
    return p * pl.reciprocal(jnp.sum(p, axis=-1, keepdims=True), approx=True)


# ------------------------------ fused core kernel ----------------------------
def _core_kernel(
        # runtime inputs
        pose_ref, omp_ref, feat_ref, pres_ref, tpose_ref,
        # template generator
        tl_ref, tmpl_w_ref,
        # encoder input projection (split by input block -> no lane concat)
        w_in_pose_ref, w_in_pres_ref, w_in_feat_ref, w_in_tmpl_ref, b_in_ref,
        # masked self-attention (fused QKV) + block-diag mask
        w_qkv_ref, b_qkv_ref, mask_sa_ref,
        # feed-forward residual
        ff1_w_ref, ff1_b_ref, ff2_w_ref, ff2_b_ref,
        # pooling-by-attention (pre-projected seed queries, fused KV) + mask
        pma_q_ref, pma_kv_w_ref, pma_kv_b_ref, mask_pma_ref,
        # encoder output projection
        enc_out_w_ref, enc_out_b_ref,
        # capsule decoder MLP
        dec_w1_ref, dec_b1_ref,
        # decoder heads (columns pre-replicated / reordered offline)
        wa_ref, ba_ref, wb_ref, bb_ref, wt_ref, bt_ref,
        wx_ref, bx_ref, wy_ref, by_ref,
        wcaps_ref, bcaps_ref, wvp_ref, bvp_ref, wsc_ref, bsc_ref,
        # static object->part relations (pre-tiled) + block-sum matrix
        xs_ref, ys_ref, sum_ref,
        # outputs
        templates_ref, votes_ref, vp_out_ref, caps_out_ref, post_ref, ll_ref, cpr_ref):
    """Template generator + SetTransformer encoder + capsule decoder, one launch."""
    M = N_PART
    K = N_OBJ
    D = D_MODEL
    Bn = pres_ref.shape[1] // M
    scale_attn = 1.0 / math.sqrt(D)

    feat = feat_ref[...]                                            # (B*M, F)

    # --- template generator (bias folded into tl_ref offline) ---
    templates = _sigmoid(tl_ref[...] + _dot(feat, tmpl_w_ref[...]))  # (B*M, Ht*Wt)
    templates_ref[...] = templates

    # --- input projection: concat([pose, 1-presence, feature, templates]) @ W_in
    #     realised as a sum of block matmuls (no in-kernel lane concatenation) ---
    h = (_dot(pose_ref[...], w_in_pose_ref[...])
         + omp_ref[...] * w_in_pres_ref[...]
         + _dot(feat, w_in_feat_ref[...])
         + _dot(templates, w_in_tmpl_ref[...])
         + b_in_ref[...])
    h = jnp.maximum(h, 0.0)                                         # (B*M, D)

    # additive presence bias with block-diagonal batch mask (one select each)
    logp = jnp.log(pres_ref[...] + EPS)                             # (1, B*M)
    bias_sa = jnp.where(mask_sa_ref[...] > 0.0, logp, NEG)          # (B*M, B*M)
    bias_pma = jnp.where(mask_pma_ref[...] > 0.0, logp, NEG)        # (B*K, B*M)

    # --- masked self-attention, batched across the whole batch ---
    qkv = _dot(h, w_qkv_ref[...]) + b_qkv_ref[...]                  # (B*M, 3D)
    q = qkv[:, 0:D]
    k = qkv[:, D:2 * D]
    v = qkv[:, 2 * D:3 * D]
    s = lax.dot_general(q, k, (((1,), (1,)), ((), ())),
                        preferred_element_type=jnp.float32)
    s = s * scale_attn + bias_sa
    h = h + _dot(_softmax_last(s), v)

    # --- feed-forward residual block ---
    ff = jnp.maximum(_dot(h, ff1_w_ref[...]) + ff1_b_ref[...], 0.0)
    h = h + _dot(ff, ff2_w_ref[...]) + ff2_b_ref[...]

    # --- pooling-by-attention (seed queries pre-projected offline) ---
    kv = _dot(h, pma_kv_w_ref[...]) + pma_kv_b_ref[...]             # (B*M, 2D)
    kp = kv[:, 0:D]
    vp = kv[:, D:2 * D]
    s2 = lax.dot_general(pma_q_ref[...], kp, (((1,), (1,)), ((), ())),
                         preferred_element_type=jnp.float32)
    s2 = s2 * scale_attn + bias_pma
    pooled = _dot(_softmax_last(s2), vp)                            # (B*K, D)

    enc = _dot(pooled, enc_out_w_ref[...]) + enc_out_b_ref[...]     # (B*K, D_OBJ)

    # --- capsule decoder MLP, batched over all B*K object capsules ---
    z = jnp.maximum(_dot(enc, dec_w1_ref[...]) + dec_b1_ref[...], 0.0)   # (B*K, 64)

    a_blk = _dot(z, wa_ref[...]) + ba_ref[...]                      # (B*K, 48) [pa..pc]
    b_blk = _dot(z, wb_ref[...]) + bb_ref[...]                      # (B*K, 48) [pb..pd]
    t_blk = _dot(z, wt_ref[...]) + bt_ref[...]                      # (B*K, 48) [0,0,tx,0,0,ty]
    xd = _dot(z, wx_ref[...]) + bx_ref[...]                         # dyn OV [a,b,tx]x2
    yd = _dot(z, wy_ref[...]) + by_ref[...]                         # dyn OV [c,d,ty]x2
    caps = _sigmoid(_dot(z, wcaps_ref[...]) + bcaps_ref[...])       # (B*K, M) replicated
    vpres = caps * _sigmoid(_dot(z, wvp_ref[...]) + bvp_ref[...])   # (B*K, M)
    scl = _softplus(_dot(z, wsc_ref[...]) + bsc_ref[...]) + 1e-2    # (B*K, M)

    # affine vote composition: fully lane-parallel on (B*K, 6*M)
    votes = a_blk * (xd + xs_ref[...]) + b_blk * (yd + ys_ref[...]) + t_blk
    votes_ref[...] = votes
    vp_out_ref[...] = vpres
    caps_out_ref[...] = caps

    # dynamic OV regulariser (each dyn column appears twice in xd / yd)
    cpr_ref[...] = jnp.sum(0.5 * (xd * xd + yd * yd), axis=0, keepdims=True)

    # Gaussian log-likelihood per (object, part); squared error summed over the 6
    # pose params with a 0/1 block-sum matmul (no lane slicing).
    diff = tpose_ref[...] - votes                                    # (B*K, 48)
    sq = _dot(diff * diff, sum_ref[...])                             # (B*K, M)
    gll = (-0.5 * sq / (scl * scl)
           - float(N_POSE) * jnp.log(scl)
           - 0.5 * float(N_POSE) * LOG2PI)

    mix_logit = jnp.log(vpres + EPS)
    u = mix_logit + gll                                              # (B*K, M)

    # segmented (per-batch) reductions over the K object capsules.  Exact division
    # on the posterior path (review correctness note).
    for bi in range(Bn):
        u_b = u[bi * K:(bi + 1) * K, :]
        ml_b = mix_logit[bi * K:(bi + 1) * K, :]
        pmax = jnp.max(u_b, axis=0, keepdims=True)
        pe = jnp.exp(u_b - pmax)
        ps = jnp.sum(pe, axis=0, keepdims=True)
        post_ref[bi * K:(bi + 1) * K, :] = pe / ps
        mmax = jnp.max(ml_b, axis=0, keepdims=True)
        mlse = mmax + jnp.log(jnp.sum(jnp.exp(ml_b - mmax), axis=0, keepdims=True))
        ll_ref[bi:bi + 1, :] = pmax + jnp.log(ps) - mlse


def scae_core(params, pose, presence, feature):
    """One pallas_call: template generator + object encoder + object decoder."""
    Bn, M = presence.shape
    R = Bn * M
    K = N_OBJ
    P = N_POSE
    TT = TEMPLATE_SIZE * TEMPLATE_SIZE

    pose2d = pose.reshape(R, P)
    omp = (1.0 - presence).reshape(R, 1)
    feat2d = feature.reshape(R, N_FEAT)
    pres_flat = presence.reshape(1, R)
    # target pose arranged param-major (col = p*M + m) and tiled over the K capsules
    tpose48 = jnp.broadcast_to(
        jnp.transpose(pose, (0, 2, 1)).reshape(Bn, 1, P * M),
        (Bn, K, P * M)).reshape(Bn * K, P * M)

    inputs = (
        pose2d, omp, feat2d, pres_flat, tpose48,
        params["tl_tiled"], params["tmpl_w"],
        params["w_in_pose"], params["w_in_pres"], params["w_in_feat"],
        params["w_in_tmpl"], params["b_in"],
        params["w_qkv"], params["b_qkv"], params["mask_sa"],
        params["ff1_w"], params["ff1_b"], params["ff2_w"], params["ff2_b"],
        params["pma_q"], params["pma_kv_w"], params["pma_kv_b"], params["mask_pma"],
        params["enc_out_w"], params["enc_out_b"],
        params["dec_w1"], params["dec_b1"],
        params["wA"], params["bA"], params["wB"], params["bB"],
        params["wT"], params["bT"],
        params["wX"], params["bX"], params["wY"], params["bY"],
        params["wCaps"], params["bCaps"], params["wVp"], params["bVp"],
        params["wSc"], params["bSc"],
        params["xs_static"], params["ys_static"], params["sum_mat"],
    )
    out_shapes = (
        jax.ShapeDtypeStruct((R, TT), jnp.float32),           # templates
        jax.ShapeDtypeStruct((Bn * K, P * M), jnp.float32),   # votes (param-major)
        jax.ShapeDtypeStruct((Bn * K, M), jnp.float32),       # vote presence
        jax.ShapeDtypeStruct((Bn * K, M), jnp.float32),       # caps presence (replicated)
        jax.ShapeDtypeStruct((Bn * K, M), jnp.float32),       # posterior mixing prob
        jax.ShapeDtypeStruct((Bn, M), jnp.float32),           # per-part log-likelihood
        jax.ShapeDtypeStruct((1, P * M), jnp.float32),        # cpr-dynamic sq partial sums
    )
    return pl.pallas_call(
        _core_kernel,
        in_specs=[VMEM_SPEC] * len(inputs),
        out_specs=tuple([VMEM_SPEC] * len(out_shapes)),
        out_shape=out_shapes,
    )(*inputs)


# ------------------------- template mixture kernel ---------------------------
def _template_mixture_kernel(tt_ref, lp_ref, o_ref):
    """Per-pixel softmax mixture over part capsules (pixels lane-dense).

    tt: (M, N, H*W), lp: (M, N, 1) -> o: (N, H*W)
    """
    t = tt_ref[...]
    logits = TEMPERATURE * t + lp_ref[...]
    m = jnp.max(logits, axis=0, keepdims=True)
    e = jnp.exp(logits - m)
    mix = e * pl.reciprocal(jnp.sum(e, axis=0, keepdims=True), approx=True)
    o_ref[...] = jnp.sum(mix * t, axis=0)


def pl_template_mixture(tt_nm_hw, presence_nm):
    """tt: (N, M, H*W) transformed templates, presence: (N, M) -> recon (N, H*W)."""
    Nn, _, HW = tt_nm_hw.shape
    tt_t = jnp.transpose(tt_nm_hw, (1, 0, 2))                        # (M, N, HW)
    logp_t = jnp.transpose(jnp.log(presence_nm + EPS), (1, 0))[:, :, None]
    return pl.pallas_call(
        _template_mixture_kernel,
        in_specs=[VMEM_SPEC, VMEM_SPEC],
        out_specs=VMEM_SPEC,
        out_shape=jax.ShapeDtypeStruct((Nn, HW), jnp.float32),
    )(tt_t, logp_t)


# ------------------------------- JAX glue -----------------------------------
def conv2d_xla(x, w, b, stride, pad):
    # TODO(synk): part-encoder CNN kept on XLA lax.conv per perf review — these
    # matmuls are far below MXU break-even and a Pallas launch costs more than
    # their compute.
    out = lax.conv_general_dilated(
        x, w, window_strides=(stride, stride),
        padding=((pad, pad), (pad, pad)),
        dimension_numbers=("NHWC", "HWIO", "NHWC"))
    return out + b.reshape(1, 1, 1, -1)


def part_encoder(params, image_nhwc):
    """CNN + attention pooling -> (pose (B,M,6), presence (B,M), feature (B,M,F))."""
    x = jax.nn.relu(conv2d_xla(image_nhwc, params["conv1_w"], params["conv1_b"], 2, 1))
    x = jax.nn.relu(conv2d_xla(x, params["conv2_w"], params["conv2_b"], 2, 1))
    x = conv2d_xla(x, params["conv3_w"], params["conv3_b"], 1, 0)
    Bn, OH, OW, _ = x.shape
    D = N_POSE + 1 + N_FEAT + 1
    x = x.reshape(Bn, OH * OW, N_PART, D)
    attn = jax.nn.softmax(x[..., -1], axis=1)                  # spatial attention per capsule
    pooled = jnp.sum(x[..., :-1] * attn[..., None], axis=1)    # (B, M, D-1)
    pose = pooled[..., :N_POSE]
    presence = jax.nn.sigmoid(pooled[..., N_POSE])
    feature = pooled[..., N_POSE + 1:]
    return pose, presence, feature


def pose_to_affine(pose):
    """Simplified torch_scae geometric_transform: scale/shear/rotation/translation."""
    sx = jax.nn.sigmoid(pose[..., 0]) + 1e-2
    sy = jax.nn.sigmoid(pose[..., 1]) + 1e-2
    shear = jnp.tanh(pose[..., 2] * 5.0)
    tx = jnp.tanh(pose[..., 3] * 5.0)
    ty = jnp.tanh(pose[..., 4] * 5.0)
    ang = pose[..., 5]
    c, s = jnp.cos(ang), jnp.sin(ang)
    row0 = jnp.stack([sx * c, -sx * s + shear, tx], axis=-1)
    row1 = jnp.stack([sy * s, sy * c, ty], axis=-1)
    return jnp.stack([row0, row1], axis=-2)  # (..., 2, 3)


def bilinear_warp_matmul(imgs, theta, out_hw):
    """F.affine_grid + F.grid_sample (bilinear, zero padding) as one-hot matmuls.

    imgs: (N, Ht, Wt), theta: (N, 2, 3) -> (N, H*W)
    """
    # TODO(synk): the data-dependent bilinear sample stays in XLA, but is expressed
    # as separable one-hot sampling matmuls instead of a vmap gather (perf review).
    H, W = out_hw
    Ht, Wt = imgs.shape[-2:]
    ys = jnp.linspace(-1.0, 1.0, H)
    xs = jnp.linspace(-1.0, 1.0, W)
    gy, gx = jnp.meshgrid(ys, xs, indexing="ij")
    base = jnp.stack([gx, gy, jnp.ones_like(gx)], axis=-1).reshape(H * W, 3)  # (P,3)
    src = jnp.einsum("nij,pj->npi", theta, base)                              # (N,P,2) (x,y)
    x = (src[..., 0] + 1.0) * 0.5 * (Wt - 1)
    y = (src[..., 1] + 1.0) * 0.5 * (Ht - 1)

    def axis_weights(c, extent):
        c0 = jnp.floor(c)
        iota = jnp.arange(extent, dtype=jnp.float32)
        w0 = (c0 + 1.0 - c)[..., None] * (c0[..., None] == iota).astype(jnp.float32)
        w1 = (c - c0)[..., None] * ((c0 + 1.0)[..., None] == iota).astype(jnp.float32)
        return w0 + w1                                                        # (N,P,extent)

    wx = axis_weights(x, Wt)
    wy = axis_weights(y, Ht)
    tmp = jnp.einsum("npj,nij->npi", wx, imgs)                                # (N,P,Ht)
    return jnp.einsum("npi,npi->np", wy, tmp)                                 # (N, H*W)


def part_decoder_batched(template_imgs, poses, presences):
    """Affine-transform templates and blend with a per-pixel capsule mixture.

    template_imgs: (N, M, Ht, Wt), poses: (N, M, 6), presences: (N, M)
    -> recon (N, IMG, IMG), transformed templates (N, M, IMG, IMG)
    """
    Nn, M = poses.shape[:2]
    theta = pose_to_affine(poses)                                     # (N, M, 2, 3)
    tt = bilinear_warp_matmul(
        template_imgs.reshape(Nn * M, TEMPLATE_SIZE, TEMPLATE_SIZE),
        theta.reshape(Nn * M, 2, 3), (IMG, IMG))
    tt = tt.reshape(Nn, M, IMG * IMG)
    rec = pl_template_mixture(tt, presences)                          # (N, IMG*IMG)
    return rec.reshape(Nn, IMG, IMG), tt.reshape(Nn, M, IMG, IMG)


def assemble_decoder_results(votes48, vote_pres2d, caps2d, post2d, ll, cpr_part,
                             target_presence):
    """Unpack the fused-kernel outputs into the SCAE result dict fields."""
    Bn = target_presence.shape[0]
    K, M, P = N_OBJ, N_PART, N_POSE
    vote = jnp.transpose(votes48.reshape(Bn, K, P, M), (0, 1, 3, 2))  # (B,K,M,6)
    vote_presence = vote_pres2d.reshape(Bn, K, M)
    post = post2d.reshape(Bn, K, M)
    caps_presence = caps2d.reshape(Bn, K, M)[:, :, 0]

    soft_winner = jnp.einsum("bkm,bkmp->bmp", post, vote)             # (B,M,6)
    soft_winner_presence = jnp.einsum("bkm,bkm->bm", post, vote_presence)
    winner_idx = jnp.argmax(post, axis=1)                             # (B,M)
    onehot = jax.nn.one_hot(winner_idx, K, axis=1, dtype=jnp.float32)  # (B,K,M)
    winner = jnp.einsum("bkm,bkmp->bmp", onehot, vote)
    winner_presence = jnp.sum(onehot * vote_presence, axis=1)
    log_prob = jnp.mean(jnp.sum(ll * target_presence, axis=-1))
    cpr_reg = jnp.sum(cpr_part) / float(Bn * K * M * P)

    return dict(
        vote=vote,
        vote_presence=vote_presence,
        vote_presence_binary=onehot,
        winner=winner,
        winner_presence=winner_presence,
        soft_winner=soft_winner,
        soft_winner_presence=soft_winner_presence,
        caps_presence=caps_presence,
        posterior_mixing_prob=post,
        log_prob=log_prob,
        cpr_dynamic_reg_loss=cpr_reg,
    )


# ------------------------------ SCAE forward ---------------------------------
def scae_forward(params, image_nchw):
    image = jnp.transpose(image_nchw, (0, 2, 3, 1))            # NCHW -> NHWC
    Bn = image.shape[0]
    K = N_OBJ

    pose, presence, feature = part_encoder(params, image)

    # stop_grad_caps_input / stop_grad_caps_target = True (forward values unchanged)
    pose_sg = lax.stop_gradient(pose)
    presence_sg = lax.stop_gradient(presence)

    (templates2d, votes48, vote_pres2d, caps2d, post2d, ll, cpr_part) = scae_core(
        params, pose_sg, presence_sg, feature)
    templates = templates2d.reshape(Bn, N_PART, 1, TEMPLATE_SIZE, TEMPLATE_SIZE)

    res = assemble_decoder_results(votes48, vote_pres2d, caps2d, post2d, ll, cpr_part,
                                   lax.stop_gradient(presence))
    res["part_presence"] = presence

    # vote_type='soft', presence_type='enc'
    part_dec_vote = res["soft_winner"]
    part_dec_presence = presence

    # batch ALL four reconstructions (rec + reconstruct_alternatives) into a single
    # warp + a single template-mixture kernel call.
    t_imgs = templates[:, :, 0]                                # (B, M, Ht, Wt)
    vote = res["vote"]
    td_pose = vote.reshape(Bn * K, N_PART, N_POSE)
    td_presence = (jnp.repeat(presence, K, axis=0)
                   * res["vote_presence_binary"].reshape(Bn * K, N_PART))

    tmpl_all = jnp.concatenate(
        [t_imgs, t_imgs, t_imgs, jnp.repeat(t_imgs, K, axis=0)], axis=0)   # (3B+BK, M, Ht, Wt)
    pose_all = jnp.concatenate(
        [part_dec_vote, pose, res["winner"], td_pose], axis=0)
    pres_all = jnp.concatenate(
        [part_dec_presence, presence, presence, td_presence], axis=0)

    recs, tts = part_decoder_batched(tmpl_all, pose_all, pres_all)

    res["rec"] = recs[0:Bn]
    # reconstruct_alternatives=True (torch uses no_grad -> forward values identical)
    res["bottom_up_rec"] = lax.stop_gradient(recs[Bn:2 * Bn])
    res["top_down_rec"] = lax.stop_gradient(recs[2 * Bn:3 * Bn])
    res["top_down_per_caps_rec"] = lax.stop_gradient(recs[3 * Bn:])
    res["transformed_templates"] = tts[0:Bn]
    res["templates"] = templates
    res["template_presence"] = presence
    # n_classes=None -> no prior/posterior classifiers
    return res


# ------------------------------ parameters -----------------------------------
def init_params(key):
    keys = iter(jax.random.split(key, 40))

    def w(shape, scale=0.1):
        return scale * jax.random.normal(next(keys), shape, jnp.float32)

    M, K, P, F, D = N_PART, N_OBJ, N_POSE, N_FEAT, D_MODEL
    TT = TEMPLATE_SIZE * TEMPLATE_SIZE
    D_caps = P + 1 + F + 1                           # pose + presence + feature + attention
    d_pwt = P + 1 + F + TT

    # ---------------- base (module-faithful) parameters ----------------
    conv1_w = w((3, 3, C_IN, 8)); conv1_b = jnp.zeros((8,), jnp.float32)
    conv2_w = w((3, 3, 8, 16)); conv2_b = jnp.zeros((16,), jnp.float32)
    conv3_w = w((1, 1, 16, M * D_caps)); conv3_b = jnp.zeros((M * D_caps,), jnp.float32)
    template_logits = w((M, TT), 1.0)
    tmpl_w = w((F, TT)); tmpl_b = jnp.zeros((TT,), jnp.float32)
    enc_in_w = w((d_pwt, D)); enc_in_b = jnp.zeros((D,), jnp.float32)
    sa_q_w = w((D, D)); sa_q_b = jnp.zeros((D,), jnp.float32)
    sa_k_w = w((D, D)); sa_k_b = jnp.zeros((D,), jnp.float32)
    sa_v_w = w((D, D)); sa_v_b = jnp.zeros((D,), jnp.float32)
    ff1_w = w((D, 64)); ff1_b = jnp.zeros((64,), jnp.float32)
    ff2_w = w((64, D)); ff2_b = jnp.zeros((D,), jnp.float32)
    seeds = w((K, D), 1.0)
    pma_q_w = w((D, D)); pma_q_b = jnp.zeros((D,), jnp.float32)
    pma_k_w = w((D, D)); pma_k_b = jnp.zeros((D,), jnp.float32)
    pma_v_w = w((D, D)); pma_v_b = jnp.zeros((D,), jnp.float32)
    enc_out_w = w((D, D_OBJ)); enc_out_b = jnp.zeros((D_OBJ,), jnp.float32)
    dec_w1 = w((D_OBJ, 64)); dec_b1 = jnp.zeros((64,), jnp.float32)
    dec_out = 6 + 1 + M + M + 6 * M                  # 71
    dec_w2 = w((64, dec_out)); dec_b2 = jnp.zeros((dec_out,), jnp.float32)
    cpr_static = w((K, M, 6), 0.5)

    # ------- kernel-ready derived parameters (zero per-forward cost) -------
    # encoder: fused QKV / PMA-KV, split input projection, pre-projected seeds,
    # pre-tiled template logits (template bias folded in), static block masks.
    w_qkv = jnp.concatenate([sa_q_w, sa_k_w, sa_v_w], axis=1)
    b_qkv = jnp.concatenate([sa_q_b, sa_k_b, sa_v_b], axis=0).reshape(1, -1)
    pma_kv_w = jnp.concatenate([pma_k_w, pma_v_w], axis=1)
    pma_kv_b = jnp.concatenate([pma_k_b, pma_v_b], axis=0).reshape(1, -1)
    pma_q = jnp.tile(seeds @ pma_q_w + pma_q_b, (B, 1))             # (B*K, D)
    tl_tiled = jnp.tile(template_logits, (B, 1)) + tmpl_b.reshape(1, -1)
    mask_sa = jnp.kron(jnp.eye(B, dtype=jnp.float32), jnp.ones((M, M), jnp.float32))
    mask_pma = jnp.kron(jnp.eye(B, dtype=jnp.float32), jnp.ones((K, M), jnp.float32))

    # decoder heads: replicate / reorder dec_w2 columns so every in-kernel result
    # is an M-wide (or 6M-wide) block and the vote composition is lane-parallel.
    # Base dec_w2 column layout: [0:6 pose a,b,tx,c,d,ty][6 caps][7:7+M vp]
    # [7+M:7+2M sc][7+2M: cpr_dyn (param-major p*M+m)].
    def head(cols, mask=None):
        idx = jnp.array(cols, jnp.int32)
        wh = dec_w2[:, idx]
        bh = dec_b2[idx]
        if mask is not None:
            mk = jnp.array(mask, jnp.float32)
            wh = wh * mk
            bh = bh * mk
        return wh, bh.reshape(1, -1)

    rep = lambda c: [c] * M
    dyn = lambda p: [7 + 2 * M + p * M + m for m in range(M)]
    wA, bA = head(rep(0) * 3 + rep(3) * 3)           # [pa,pa,pa,pc,pc,pc] blocks
    wB, bB = head(rep(1) * 3 + rep(4) * 3)           # [pb,pb,pb,pd,pd,pd] blocks
    wT, bT = head(rep(2) * 3 + rep(5) * 3,           # [0,0,ptx,0,0,pty] blocks
                  mask=[0.0] * (2 * M) + [1.0] * M + [0.0] * (2 * M) + [1.0] * M)
    wX, bX = head(dyn(0) + dyn(1) + dyn(2) + dyn(0) + dyn(1) + dyn(2))
    wY, bY = head(dyn(3) + dyn(4) + dyn(5) + dyn(3) + dyn(4) + dyn(5))
    wCaps, bCaps = head(rep(6))
    wVp, bVp = head([7 + m for m in range(M)])
    wSc, bSc = head([7 + M + m for m in range(M)])

    # static object->part relations, arranged to line up with the X/Y dyn blocks,
    # tiled over the batch (rows ordered b*K + k).
    xs = jnp.concatenate(
        [cpr_static[:, :, 0], cpr_static[:, :, 1], cpr_static[:, :, 2]] * 2, axis=1)
    ys = jnp.concatenate(
        [cpr_static[:, :, 3], cpr_static[:, :, 4], cpr_static[:, :, 5]] * 2, axis=1)
    xs_static = jnp.tile(xs, (B, 1))                                 # (B*K, 48)
    ys_static = jnp.tile(ys, (B, 1))
    sum_mat = jnp.tile(jnp.eye(M, dtype=jnp.float32), (6, 1))        # (48, M)

    return dict(
        # XLA conv front-end
        conv1_w=conv1_w, conv1_b=conv1_b,
        conv2_w=conv2_w, conv2_b=conv2_b,
        conv3_w=conv3_w, conv3_b=conv3_b,
        # fused core kernel params
        tl_tiled=tl_tiled, tmpl_w=tmpl_w,
        w_in_pose=enc_in_w[0:P], w_in_pres=enc_in_w[P:P + 1],
        w_in_feat=enc_in_w[P + 1:P + 1 + F], w_in_tmpl=enc_in_w[P + 1 + F:],
        b_in=enc_in_b.reshape(1, -1),
        w_qkv=w_qkv, b_qkv=b_qkv, mask_sa=mask_sa,
        ff1_w=ff1_w, ff1_b=ff1_b.reshape(1, -1),
        ff2_w=ff2_w, ff2_b=ff2_b.reshape(1, -1),
        pma_q=pma_q, pma_kv_w=pma_kv_w, pma_kv_b=pma_kv_b, mask_pma=mask_pma,
        enc_out_w=enc_out_w, enc_out_b=enc_out_b.reshape(1, -1),
        dec_w1=dec_w1, dec_b1=dec_b1.reshape(1, -1),
        wA=wA, bA=bA, wB=wB, bB=bB, wT=wT, bT=bT,
        wX=wX, bX=bX, wY=wY, bY=bY,
        wCaps=wCaps, bCaps=bCaps, wVp=wVp, bVp=bVp, wSc=wSc, bSc=bSc,
        xs_static=xs_static, ys_static=ys_static, sum_mat=sum_mat,
    )


# --------------------------------- main ---------------------------------------
if __name__ == "__main__":
    key = jax.random.PRNGKey(0)
    pkey, xkey = jax.random.split(key)
    params = init_params(pkey)
    image = jax.random.uniform(xkey, (B, C_IN, IMG, IMG), jnp.float32)   # NCHW like PyTorch

    res = jax.jit(scae_forward)(params, image)
    jax.block_until_ready(res)

    # light sanity checks on shapes/finiteness
    assert res["rec"].shape == (B, IMG, IMG)
    assert res["vote"].shape == (B, N_OBJ, N_PART, 6)
    assert res["posterior_mixing_prob"].shape == (B, N_OBJ, N_PART)
    assert res["top_down_per_caps_rec"].shape == (B * N_OBJ, IMG, IMG)
    assert res["soft_winner"].shape == (B, N_PART, 6)
    assert res["caps_presence"].shape == (B, N_OBJ)
    assert bool(jnp.isfinite(res["log_prob"]))
    assert bool(jnp.all(jnp.isfinite(res["rec"])))
    assert bool(jnp.all(jnp.isfinite(res["vote"])))
    print("KERNEL_OK")
</pallas_src>

<mosaic_0001>
module attributes {stable_mosaic.version = 11 : i64} {
  func.func @_core_kernel(%arg0: memref<16x6xf32, #tpu.memory_space<vmem>>, %arg1: memref<16x1xf32, #tpu.memory_space<vmem>>, %arg2: memref<16x16xf32, #tpu.memory_space<vmem>>, %arg3: memref<1x16xf32, #tpu.memory_space<vmem>>, %arg4: memref<8x48xf32, #tpu.memory_space<vmem>>, %arg5: memref<16x36xf32, #tpu.memory_space<vmem>>, %arg6: memref<16x36xf32, #tpu.memory_space<vmem>>, %arg7: memref<6x32xf32, #tpu.memory_space<vmem>>, %arg8: memref<1x32xf32, #tpu.memory_space<vmem>>, %arg9: memref<16x32xf32, #tpu.memory_space<vmem>>, %arg10: memref<36x32xf32, #tpu.memory_space<vmem>>, %arg11: memref<1x32xf32, #tpu.memory_space<vmem>>, %arg12: memref<32x96xf32, #tpu.memory_space<vmem>>, %arg13: memref<1x96xf32, #tpu.memory_space<vmem>>, %arg14: memref<16x16xf32, #tpu.memory_space<vmem>>, %arg15: memref<32x64xf32, #tpu.memory_space<vmem>>, %arg16: memref<1x64xf32, #tpu.memory_space<vmem>>, %arg17: memref<64x32xf32, #tpu.memory_space<vmem>>, %arg18: memref<1x32xf32, #tpu.memory_space<vmem>>, %arg19: memref<8x32xf32, #tpu.memory_space<vmem>>, %arg20: memref<32x64xf32, #tpu.memory_space<vmem>>, %arg21: memref<1x64xf32, #tpu.memory_space<vmem>>, %arg22: memref<8x16xf32, #tpu.memory_space<vmem>>, %arg23: memref<32x32xf32, #tpu.memory_space<vmem>>, %arg24: memref<1x32xf32, #tpu.memory_space<vmem>>, %arg25: memref<32x64xf32, #tpu.memory_space<vmem>>, %arg26: memref<1x64xf32, #tpu.memory_space<vmem>>, %arg27: memref<64x48xf32, #tpu.memory_space<vmem>>, %arg28: memref<1x48xf32, #tpu.memory_space<vmem>>, %arg29: memref<64x48xf32, #tpu.memory_space<vmem>>, %arg30: memref<1x48xf32, #tpu.memory_space<vmem>>, %arg31: memref<64x48xf32, #tpu.memory_space<vmem>>, %arg32: memref<1x48xf32, #tpu.memory_space<vmem>>, %arg33: memref<64x48xf32, #tpu.memory_space<vmem>>, %arg34: memref<1x48xf32, #tpu.memory_space<vmem>>, %arg35: memref<64x48xf32, #tpu.memory_space<vmem>>, %arg36: memref<1x48xf32, #tpu.memory_space<vmem>>, %arg37: memref<64x8xf32, #tpu.memory_space<vmem>>, %arg38: memref<1x8xf32, #tpu.memory_space<vmem>>, %arg39: memref<64x8xf32, #tpu.memory_space<vmem>>, %arg40: memref<1x8xf32, #tpu.memory_space<vmem>>, %arg41: memref<64x8xf32, #tpu.memory_space<vmem>>, %arg42: memref<1x8xf32, #tpu.memory_space<vmem>>, %arg43: memref<8x48xf32, #tpu.memory_space<vmem>>, %arg44: memref<8x48xf32, #tpu.memory_space<vmem>>, %arg45: memref<48x8xf32, #tpu.memory_space<vmem>>, %arg46: memref<16x36xf32, #tpu.memory_space<vmem>>, %arg47: memref<8x48xf32, #tpu.memory_space<vmem>>, %arg48: memref<8x8xf32, #tpu.memory_space<vmem>>, %arg49: memref<8x8xf32, #tpu.memory_space<vmem>>, %arg50: memref<8x8xf32, #tpu.memory_space<vmem>>, %arg51: memref<2x8xf32, #tpu.memory_space<vmem>>, %arg52: memref<1x48xf32, #tpu.memory_space<vmem>>) attributes {dimension_semantics = [], scalar_prefetch = 0 : i64, scratch_operands = 0 : i64, tpu.core_type = #tpu.core_type<tc>} {
    %c0 = arith.constant 0 : index
    %c0_0 = arith.constant 0 : index
    %0 = vector.load %arg2[%c0, %c0_0] : memref<16x16xf32, #tpu.memory_space<vmem>>, vector<16x16xf32>
    %c0_1 = arith.constant 0 : index
    %c0_2 = arith.constant 0 : index
    %1 = vector.load %arg5[%c0_1, %c0_2] : memref<16x36xf32, #tpu.memory_space<vmem>>, vector<16x36xf32>
    %c0_3 = arith.constant 0 : index
    %c0_4 = arith.constant 0 : index
    %2 = vector.load %arg6[%c0_3, %c0_4] : memref<16x36xf32, #tpu.memory_space<vmem>>, vector<16x36xf32>
    %cst = arith.constant dense<0.000000e+00> : vector<16x36xf32>
    %3 = tpu.matmul %0, %2, %cst {dimension_numbers = #tpu.dot_dimension_numbers<[1], [0], [0], [1], [0, 0, 1, 1], [], []>} : vector<16x16xf32>, vector<16x36xf32>, vector<16x36xf32> -> vector<16x36xf32>
    %4 = arith.addf %1, %3 : vector<16x36xf32>
    %cst_5 = arith.constant 0.000000e+00 : f32
    %5 = vector.broadcast %cst_5 : f32 to vector<16x36xf32>
    %6 = arith.subf %5, %4 : vector<16x36xf32>
    %7 = math.exp %6 : vector<16x36xf32>
    %cst_6 = arith.constant 1.000000e+00 : f32
    %8 = vector.broadcast %cst_6 : f32 to vector<16x36xf32>
    %9 = arith.addf %8, %7 : vector<16x36xf32>
    %cst_7 = arith.constant 1.000000e+00 : f32
    %10 = vector.broadcast %cst_7 : f32 to vector<16x36xf32>
    %11 = arith.divf %10, %9 : vector<16x36xf32>
    %c0_8 = arith.constant 0 : index
    %c0_9 = arith.constant 0 : index
    %12 = vector.load %arg46[%c0_8, %c0_9] : memref<16x36xf32, #tpu.memory_space<vmem>>, vector<16x36xf32>
    tpu.vector_store %arg46[%c0_8, %c0_9], %11 {strides = array<i32>} : memref<16x36xf32, #tpu.memory_space<vmem>>, vector<16x36xf32>,
    %c0_10 = arith.constant 0 : index
    %c0_11 = arith.constant 0 : index
    %13 = vector.load %arg0[%c0_10, %c0_11] : memref<16x6xf32, #tpu.memory_space<vmem>>, vector<16x6xf32>
    %c0_12 = arith.constant 0 : index
    %c0_13 = arith.constant 0 : index
    %14 = vector.load %arg7[%c0_12, %c0_13] : memref<6x32xf32, #tpu.memory_space<vmem>>, vector<6x32xf32>
    %cst_14 = arith.constant dense<0.000000e+00> : vector<16x32xf32>
    %15 = tpu.matmul %13, %14, %cst_14 {dimension_numbers = #tpu.dot_dimension_numbers<[1], [0], [0], [1], [0, 0, 1, 1], [], []>} : vector<16x6xf32>, vector<6x32xf32>, vector<16x32xf32> -> vector<16x32xf32>
    %c0_15 = arith.constant 0 : index
    %c0_16 = arith.constant 0 : index
    %16 = vector.load %arg1[%c0_15, %c0_16] : memref<16x1xf32, #tpu.memory_space<vmem>>, vector<16x1xf32>
    %c0_17 = arith.constant 0 : index
    %c0_18 = arith.constant 0 : index
    %17 = vector.load %arg8[%c0_17, %c0_18] : memref<1x32xf32, #tpu.memory_space<vmem>>, vector<1x32xf32>
    %18 = vector.broadcast %16 : vector<16x1xf32> to vector<16x32xf32>
    %19 = vector.broadcast %17 : vector<1x32xf32> to vector<16x32xf32>
    %20 = arith.mulf %18, %19 : vector<16x32xf32>
    %21 = arith.addf %15, %20 : vector<16x32xf32>
    %c0_19 = arith.constant 0 : index
    %c0_20 = arith.constant 0 : index
    %22 = vector.load %arg9[%c0_19, %c0_20] : memref<16x32xf32, #tpu.memory_space<vmem>>, vector<16x32xf32>
    %cst_21 = arith.constant dense<0.000000e+00> : vector<16x32xf32>
    %23 = tpu.matmul %0, %22, %cst_21 {dimension_numbers = #tpu.dot_dimension_numbers<[1], [0], [0], [1], [0, 0, 1, 1], [], []>} : vector<16x16xf32>, vector<16x32xf32>, vector<16x32xf32> -> vector<16x32xf32>
    %24 = arith.addf %21, %23 : vector<16x32xf32>
    %c0_22 = arith.constant 0 : index
    %c0_23 = arith.constant 0 : index
    %25 = vector.load %arg10[%c0_22, %c0_23] : memref<36x32xf32, #tpu.memory_space<vmem>>, vector<36x32xf32>
    %cst_24 = arith.constant dense<0.000000e+00> : vector<16x32xf32>
    %26 = tpu.matmul %11, %25, %cst_24 {dimension_numbers = #tpu.dot_dimension_numbers<[1], [0], [0], [1], [0, 0, 1, 1], [], []>} : vector<16x36xf32>, vector<36x32xf32>, vector<16x32xf32> -> vector<16x32xf32>
    %27 = arith.addf %24, %26 : vector<16x32xf32>
    %c0_25 = arith.constant 0 : index
    %c0_26 = arith.constant 0 : index
    %28 = vector.load %arg11[%c0_25, %c0_26] : memref<1x32xf32, #tpu.memory_space<vmem>>, vector<1x32xf32>
    %29 = vector.broadcast %28 : vector<1x32xf32> to vector<16x32xf32>
    %30 = arith.addf %27, %29 : vector<16x32xf32>
    %cst_27 = arith.constant 0.000000e+00 : f32
    %31 = vector.broadcast %cst_27 : f32 to vector<16x32xf32>
    %32 = arith.maximumf %30, %31 : vector<16x32xf32>
    %c0_28 = arith.constant 0 : index
    %c0_29 = arith.constant 0 : index
    %33 = vector.load %arg3[%c0_28, %c0_29] : memref<1x16xf32, #tpu.memory_space<vmem>>, vector<1x16xf32>
    %cst_30 = arith.constant 9.99999997E-7 : f32
    %34 = vector.broadcast %cst_30 : f32 to vector<1x16xf32>
    %35 = arith.addf %33, %34 : vector<1x16xf32>
    %36 = math.log %35 : vector<1x16xf32>
    %c0_31 = arith.constant 0 : index
    %c0_32 = arith.constant 0 : index
    %37 = vector.load %arg14[%c0_31, %c0_32] : memref<16x16xf32, #tpu.memory_space<vmem>>, vector<16x16xf32>
    %cst_33 = arith.constant 0.000000e+00 : f32
    %38 = vector.broadcast %cst_33 : f32 to vector<16x16xf32>
    %39 = arith.cmpf ogt, %37, %38 : vector<16x16xf32>
    %cst_34 = arith.constant -1.000000e+09 : f32
    %40 = vector.shape_cast %36 : vector<1x16xf32> to vector<1x16xf32>
    %41 = vector.broadcast %40 : vector<1x16xf32> to vector<16x16xf32>
    %42 = vector.broadcast %cst_34 : f32 to vector<16x16xf32>
    %43 = arith.select %39, %41, %42 : vector<16x16xi1>, vector<16x16xf32>
    %c0_35 = arith.constant 0 : index
    %c0_36 = arith.constant 0 : index
    %44 = vector.load %arg22[%c0_35, %c0_36] : memref<8x16xf32, #tpu.memory_space<vmem>>, vector<8x16xf32>
    %cst_37 = arith.constant 0.000000e+00 : f32
    %45 = vector.broadcast %cst_37 : f32 to vector<8x16xf32>
    %46 = arith.cmpf ogt, %44, %45 : vector<8x16xf32>
    %cst_38 = arith.constant -1.000000e+09 : f32
    %47 = vector.shape_cast %36 : vector<1x16xf32> to vector<1x16xf32>
    %48 = vector.broadcast %47 : vector<1x16xf32> to vector<8x16xf32>
    %49 = vector.broadcast %cst_38 : f32 to vector<8x16xf32>
    %50 = arith.select %46, %48, %49 : vector<8x16xi1>, vector<8x16xf32>
    %c0_39 = arith.constant 0 : index
    %c0_40 = arith.constant 0 : index
    %51 = vector.load %arg12[%c0_39, %c0_40] : memref<32x96xf32, #tpu.memory_space<vmem>>, vector<32x96xf32>
    %cst_41 = arith.constant dense<0.000000e+00> : vector<16x96xf32>
    %52 = tpu.matmul %32, %51, %cst_41 {dimension_numbers = #tpu.dot_dimension_numbers<[1], [0], [0], [1], [0, 0, 1, 1], [], []>} : vector<16x32xf32>, vector<32x96xf32>, vector<16x96xf32> -> vector<16x96xf32>
    %c0_42 = arith.constant 0 : index
    %c0_43 = arith.constant 0 : index
    %53 = vector.load %arg13[%c0_42, %c0_43] : memref<1x96xf32, #tpu.memory_space<vmem>>, vector<1x96xf32>
    %54 = vector.broadcast %53 : vector<1x96xf32> to vector<16x96xf32>
    %55 = arith.addf %52, %54 : vector<16x96xf32>
    %56 = vector.extract_strided_slice %55 {offsets = [0, 0], sizes = [16, 32], strides = [1, 1]} : vector<16x96xf32> to vector<16x32xf32>
    %57 = vector.extract_strided_slice %55 {offsets = [0, 32], sizes = [16, 32], strides = [1, 1]} : vector<16x96xf32> to vector<16x32xf32>
    %58 = vector.extract_strided_slice %55 {offsets = [0, 64], sizes = [16, 32], strides = [1, 1]} : vector<16x96xf32> to vector<16x32xf32>
    %cst_44 = arith.constant dense<0.000000e+00> : vector<16x16xf32>
    %59 = tpu.matmul %56, %57, %cst_44 {dimension_numbers = #tpu.dot_dimension_numbers<[1], [1], [0], [0], [0, 0, 1, 0], [], []>} : vector<16x32xf32>, vector<16x32xf32>, vector<16x16xf32> -> vector<16x16xf32>
    %cst_45 = arith.constant 0.176776692 : f32
    %60 = vector.broadcast %cst_45 : f32 to vector<16x16xf32>
    %61 = arith.mulf %59, %60 : vector<16x16xf32>
    %62 = arith.addf %61, %43 : vector<16x16xf32>
    %cst_46 = arith.constant dense<0xFF800000> : vector<16xf32>
    %63 = vector.multi_reduction <maximumf>, %62, %cst_46 [1] : vector<16x16xf32> to vector<16xf32>
    %64 = vector.shape_cast %63 : vector<16xf32> to vector<16x1xf32>
    %65 = vector.broadcast %64 : vector<16x1xf32> to vector<16x16xf32>
    %66 = arith.subf %62, %65 : vector<16x16xf32>
    %67 = math.exp %66 : vector<16x16xf32>
    %cst_47 = arith.constant dense<0.000000e+00> : vector<16xf32>
    %68 = vector.multi_reduction <add>, %67, %cst_47 [1] : vector<16x16xf32> to vector<16xf32>
    %69 = vector.shape_cast %68 : vector<16xf32> to vector<16x1xf32>
    %70 = tpu.reciprocal %69 {approx = true} : vector<16x1xf32> -> vector<16x1xf32>
    %71 = vector.broadcast %70 : vector<16x1xf32> to vector<16x16xf32>
    %72 = arith.mulf %67, %71 : vector<16x16xf32>
    %cst_48 = arith.constant dense<0.000000e+00> : vector<16x32xf32>
    %73 = tpu.matmul %72, %58, %cst_48 {dimension_numbers = #tpu.dot_dimension_numbers<[1], [0], [0], [1], [0, 0, 1, 1], [], []>} : vector<16x16xf32>, vector<16x32xf32>, vector<16x32xf32> -> vector<16x32xf32>
    %74 = arith.addf %32, %73 : vector<16x32xf32>
    %c0_49 = arith.constant 0 : index
    %c0_50 = arith.constant 0 : index
    %75 = vector.load %arg15[%c0_49, %c0_50] : memref<32x64xf32, #tpu.memory_space<vmem>>, vector<32x64xf32>
    %cst_51 = arith.constant dense<0.000000e+00> : vector<16x64xf32>
    %76 = tpu.matmul %74, %75, %cst_51 {dimension_numbers = #tpu.dot_dimension_numbers<[1], [0], [0], [1], [0, 0, 1, 1], [], []>} : vector<16x32xf32>, vector<32x64xf32>, vector<16x64xf32> -> vector<16x64xf32>
    %c0_52 = arith.constant 0 : index
    %c0_53 = arith.constant 0 : index
    %77 = vector.load %arg16[%c0_52, %c0_53] : memref<1x64xf32, #tpu.memory_space<vmem>>, vector<1x64xf32>
    %78 = vector.broadcast %77 : vector<1x64xf32> to vector<16x64xf32>
    %79 = arith.addf %76, %78 : vector<16x64xf32>
    %cst_54 = arith.constant 0.000000e+00 : f32
    %80 = vector.broadcast %cst_54 : f32 to vector<16x64xf32>
    %81 = arith.maximumf %79, %80 : vector<16x64xf32>
    %c0_55 = arith.constant 0 : index
    %c0_56 = arith.constant 0 : index
    %82 = vector.load %arg17[%c0_55, %c0_56] : memref<64x32xf32, #tpu.memory_space<vmem>>, vector<64x32xf32>
    %cst_57 = arith.constant dense<0.000000e+00> : vector<16x32xf32>
    %83 = tpu.matmul %81, %82, %cst_57 {dimension_numbers = #tpu.dot_dimension_numbers<[1], [0], [0], [1], [0, 0, 1, 1], [], []>} : vector<16x64xf32>, vector<64x32xf32>, vector<16x32xf32> -> vector<16x32xf32>
    %84 = arith.addf %74, %83 : vector<16x32xf32>
    %c0_58 = arith.constant 0 : index
    %c0_59 = arith.constant 0 : index
    %85 = vector.load %arg18[%c0_58, %c0_59] : memref<1x32xf32, #tpu.memory_space<vmem>>, vector<1x32xf32>
    %86 = vector.broadcast %85 : vector<1x32xf32> to vector<16x32xf32>
    %87 = arith.addf %84, %86 : vector<16x32xf32>
    %c0_60 = arith.constant 0 : index
    %c0_61 = arith.constant 0 : index
    %88 = vector.load %arg20[%c0_60, %c0_61] : memref<32x64xf32, #tpu.memory_space<vmem>>, vector<32x64xf32>
    %cst_62 = arith.constant dense<0.000000e+00> : vector<16x64xf32>
    %89 = tpu.matmul %87, %88, %cst_62 {dimension_numbers = #tpu.dot_dimension_numbers<[1], [0], [0], [1], [0, 0, 1, 1], [], []>} : vector<16x32xf32>, vector<32x64xf32>, vector<16x64xf32> -> vector<16x64xf32>
    %c0_63 = arith.constant 0 : index
    %c0_64 = arith.constant 0 : index
    %90 = vector.load %arg21[%c0_63, %c0_64] : memref<1x64xf32, #tpu.memory_space<vmem>>, vector<1x64xf32>
    %91 = vector.broadcast %90 : vector<1x64xf32> to vector<16x64xf32>
    %92 = arith.addf %89, %91 : vector<16x64xf32>
    %93 = vector.extract_strided_slice %92 {offsets = [0, 0], sizes = [16, 32], strides = [1, 1]} : vector<16x64xf32> to vector<16x32xf32>
    %94 = vector.extract_strided_slice %92 {offsets = [0, 32], sizes = [16, 32], strides = [1, 1]} : vector<16x64xf32> to vector<16x32xf32>
    %c0_65 = arith.constant 0 : index
    %c0_66 = arith.constant 0 : index
    %95 = vector.load %arg19[%c0_65, %c0_66] : memref<8x32xf32, #tpu.memory_space<vmem>>, vector<8x32xf32>
    %cst_67 = arith.constant dense<0.000000e+00> : vector<8x16xf32>
    %96 = tpu.matmul %95, %93, %cst_67 {dimension_numbers = #tpu.dot_dimension_numbers<[1], [1], [0], [0], [0, 0, 1, 0], [], []>} : vector<8x32xf32>, vector<16x32xf32>, vector<8x16xf32> -> vector<8x16xf32>
    %cst_68 = arith.constant 0.176776692 : f32
    %97 = vector.broadcast %cst_68 : f32 to vector<8x16xf32>
    %98 = arith.mulf %96, %97 : vector<8x16xf32>
    %99 = arith.addf %98, %50 : vector<8x16xf32>
    %cst_69 = arith.constant dense<0xFF800000> : vector<8xf32>
    %100 = vector.multi_reduction <maximumf>, %99, %cst_69 [1] : vector<8x16xf32> to vector<8xf32>
    %101 = vector.shape_cast %100 : vector<8xf32> to vector<8x1xf32>
    %102 = vector.broadcast %101 : vector<8x1xf32> to vector<8x16xf32>
    %103 = arith.subf %99, %102 : vector<8x16xf32>
    %104 = math.exp %103 : vector<8x16xf32>
    %cst_70 = arith.constant dense<0.000000e+00> : vector<8xf32>
    %105 = vector.multi_reduction <add>, %104, %cst_70 [1] : vector<8x16xf32> to vector<8xf32>
    %106 = vector.shape_cast %105 : vector<8xf32> to vector<8x1xf32>
    %107 = tpu.reciprocal %106 {approx = true} : vector<8x1xf32> -> vector<8x1xf32>
    %108 = vector.broadcast %107 : vector<8x1xf32> to vector<8x16xf32>
    %109 = arith.mulf %104, %108 : vector<8x16xf32>
    %cst_71 = arith.constant dense<0.000000e+00> : vector<8x32xf32>
    %110 = tpu.matmul %109, %94, %cst_71 {dimension_numbers = #tpu.dot_dimension_numbers<[1], [0], [0], [1], [0, 0, 1, 1], [], []>} : vector<8x16xf32>, vector<16x32xf32>, vector<8x32xf32> -> vector<8x32xf32>
    %c0_72 = arith.constant 0 : index
    %c0_73 = arith.constant 0 : index
    %111 = vector.load %arg23[%c0_72, %c0_73] : memref<32x32xf32, #tpu.memory_space<vmem>>, vector<32x32xf32>
    %cst_74 = arith.constant dense<0.000000e+00> : vector<8x32xf32>
    %112 = tpu.matmul %110, %111, %cst_74 {dimension_numbers = #tpu.dot_dimension_numbers<[1], [0], [0], [1], [0, 0, 1, 1], [], []>} : vector<8x32xf32>, vector<32x32xf32>, vector<8x32xf32> -> vector<8x32xf32>
    %c0_75 = arith.constant 0 : index
    %c0_76 = arith.constant 0 : index
    %113 = vector.load %arg24[%c0_75, %c0_76] : memref<1x32xf32, #tpu.memory_space<vmem>>, vector<1x32xf32>
    %114 = vector.broadcast %113 : vector<1x32xf32> to vector<8x32xf32>
    %115 = arith.addf %112, %114 : vector<8x32xf32>
    %c0_77 = arith.constant 0 : index
    %c0_78 = arith.constant 0 : index
    %116 = vector.load %arg25[%c0_77, %c0_78] : memref<32x64xf32, #tpu.memory_space<vmem>>, vector<32x64xf32>
    %cst_79 = arith.constant dense<0.000000e+00> : vector<8x64xf32>
    %117 = tpu.matmul %115, %116, %cst_79 {dimension_numbers = #tpu.dot_dimension_numbers<[1], [0], [0], [1], [0, 0, 1, 1], [], []>} : vector<8x32xf32>, vector<32x64xf32>, vector<8x64xf32> -> vector<8x64xf32>
    %c0_80 = arith.constant 0 : index
    %c0_81 = arith.constant 0 : index
    %118 = vector.load %arg26[%c0_80, %c0_81] : memref<1x64xf32, #tpu.memory_space<vmem>>, vector<1x64xf32>
    %119 = vector.broadcast %118 : vector<1x64xf32> to vector<8x64xf32>
    %120 = arith.addf %117, %119 : vector<8x64xf32>
    %cst_82 = arith.constant 0.000000e+00 : f32
    %121 = vector.broadcast %cst_82 : f32 to vector<8x64xf32>
    %122 = arith.maximumf %120, %121 : vector<8x64xf32>
    %c0_83 = arith.constant 0 : index
    %c0_84 = arith.constant 0 : index
    %123 = vector.load %arg27[%c0_83, %c0_84] : memref<64x48xf32, #tpu.memory_space<vmem>>, vector<64x48xf32>
    %cst_85 = arith.constant dense<0.000000e+00> : vector<8x48xf32>
    %124 = tpu.matmul %122, %123, %cst_85 {dimension_numbers = #tpu.dot_dimension_numbers<[1], [0], [0], [1], [0, 0, 1, 1], [], []>} : vector<8x64xf32>, vector<64x48xf32>, vector<8x48xf32> -> vector<8x48xf32>
    %c0_86 = arith.constant 0 : index
    %c0_87 = arith.constant 0 : index
    %125 = vector.load %arg28[%c0_86, %c0_87] : memref<1x48xf32, #tpu.memory_space<vmem>>, vector<1x48xf32>
    %126 = vector.broadcast %125 : vector<1x48xf32> to vector<8x48xf32>
    %127 = arith.addf %124, %126 : vector<8x48xf32>
    %c0_88 = arith.constant 0 : index
    %c0_89 = arith.constant 0 : index
    %128 = vector.load %arg29[%c0_88, %c0_89] : memref<64x48xf32, #tpu.memory_space<vmem>>, vector<64x48xf32>
    %cst_90 = arith.constant dense<0.000000e+00> : vector<8x48xf32>
    %129 = tpu.matmul %122, %128, %cst_90 {dimension_numbers = #tpu.dot_dimension_numbers<[1], [0], [0], [1], [0, 0, 1, 1], [], []>} : vector<8x64xf32>, vector<64x48xf32>, vector<8x48xf32> -> vector<8x48xf32>
    %c0_91 = arith.constant 0 : index
    %c0_92 = arith.constant 0 : index
    %130 = vector.load %arg30[%c0_91, %c0_92] : memref<1x48xf32, #tpu.memory_space<vmem>>, vector<1x48xf32>
    %131 = vector.broadcast %130 : vector<1x48xf32> to vector<8x48xf32>
    %132 = arith.addf %129, %131 : vector<8x48xf32>
    %c0_93 = arith.constant 0 : index
    %c0_94 = arith.constant 0 : index
    %133 = vector.load %arg31[%c0_93, %c0_94] : memref<64x48xf32, #tpu.memory_space<vmem>>, vector<64x48xf32>
    %cst_95 = arith.constant dense<0.000000e+00> : vector<8x48xf32>
    %134 = tpu.matmul %122, %133, %cst_95 {dimension_numbers = #tpu.dot_dimension_numbers<[1], [0], [0], [1], [0, 0, 1, 1], [], []>} : vector<8x64xf32>, vector<64x48xf32>, vector<8x48xf32> -> vector<8x48xf32>
    %c0_96 = arith.constant 0 : index
    %c0_97 = arith.constant 0 : index
    %135 = vector.load %arg32[%c0_96, %c0_97] : memref<1x48xf32, #tpu.memory_space<vmem>>, vector<1x48xf32>
    %136 = vector.broadcast %135 : vector<1x48xf32> to vector<8x48xf32>
    %137 = arith.addf %134, %136 : vector<8x48xf32>
    %c0_98 = arith.constant 0 : index
    %c0_99 = arith.constant 0 : index
    %138 = vector.load %arg33[%c0_98, %c0_99] : memref<64x48xf32, #tpu.memory_space<vmem>>, vector<64x48xf32>
    %cst_100 = arith.constant dense<0.000000e+00> : vector<8x48xf32>
    %139 = tpu.matmul %122, %138, %cst_100 {dimension_numbers = #tpu.dot_dimension_numbers<[1], [0], [0], [1], [0, 0, 1, 1], [], []>} : vector<8x64xf32>, vector<64x48xf32>, vector<8x48xf32> -> vector<8x48xf32>
    %c0_101 = arith.constant 0 : index
    %c0_102 = arith.constant 0 : index
    %140 = vector.load %arg34[%c0_101, %c0_102] : memref<1x48xf32, #tpu.memory_space<vmem>>, vector<1x48xf32>
    %141 = vector.broadcast %140 : vector<1x48xf32> to vector<8x48xf32>
    %142 = arith.addf %139, %141 : vector<8x48xf32>
    %c0_103 = arith.constant 0 : index
    %c0_104 = arith.constant 0 : index
    %143 = vector.load %arg35[%c0_103, %c0_104] : memref<64x48xf32, #tpu.memory_space<vmem>>, vector<64x48xf32>
    %cst_105 = arith.constant dense<0.000000e+00> : vector<8x48xf32>
    %144 = tpu.matmul %122, %143, %cst_105 {dimension_numbers = #tpu.dot_dimension_numbers<[1], [0], [0], [1], [0, 0, 1, 1], [], []>} : vector<8x64xf32>, vector<64x48xf32>, vector<8x48xf32> -> vector<8x48xf32>
    %c0_106 = arith.constant 0 : index
    %c0_107 = arith.constant 0 : index
    %145 = vector.load %arg36[%c0_106, %c0_107] : memref<1x48xf32, #tpu.memory_space<vmem>>, vector<1x48xf32>
    %146 = vector.broadcast %145 : vector<1x48xf32> to vector<8x48xf32>
    %147 = arith.addf %144, %146 : vector<8x48xf32>
    %c0_108 = arith.constant 0 : index
    %c0_109 = arith.constant 0 : index
    %148 = vector.load %arg37[%c0_108, %c0_109] : memref<64x8xf32, #tpu.memory_space<vmem>>, vector<64x8xf32>
    %cst_110 = arith.constant dense<0.000000e+00> : vector<8x8xf32>
    %149 = tpu.matmul %122, %148, %cst_110 {dimension_numbers = #tpu.dot_dimension_numbers<[1], [0], [0], [1], [0, 0, 1, 1], [], []>} : vector<8x64xf32>, vector<64x8xf32>, vector<8x8xf32> -> vector<8x8xf32>
    %c0_111 = arith.constant 0 : index
    %c0_112 = arith.constant 0 : index
    %150 = vector.load %arg38[%c0_111, %c0_112] : memref<1x8xf32, #tpu.memory_space<vmem>>, vector<1x8xf32>
    %151 = vector.broadcast %150 : vector<1x8xf32> to vector<8x8xf32>
    %152 = arith.addf %149, %151 : vector<8x8xf32>
    %cst_113 = arith.constant 0.000000e+00 : f32
    %153 = vector.broadcast %cst_113 : f32 to vector<8x8xf32>
    %154 = arith.subf %153, %152 : vector<8x8xf32>
    %155 = math.exp %154 : vector<8x8xf32>
    %cst_114 = arith.constant 1.000000e+00 : f32
    %156 = vector.broadcast %cst_114 : f32 to vector<8x8xf32>
    %157 = arith.addf %156, %155 : vector<8x8xf32>
    %cst_115 = arith.constant 1.000000e+00 : f32
    %158 = vector.broadcast %cst_115 : f32 to vector<8x8xf32>
    %159 = arith.divf %158, %157 : vector<8x8xf32>
    %c0_116 = arith.constant 0 : index
    %c0_117 = arith.constant 0 : index
    %160 = vector.load %arg39[%c0_116, %c0_117] : memref<64x8xf32, #tpu.memory_space<vmem>>, vector<64x8xf32>
    %cst_118 = arith.constant dense<0.000000e+00> : vector<8x8xf32>
    %161 = tpu.matmul %122, %160, %cst_118 {dimension_numbers = #tpu.dot_dimension_numbers<[1], [0], [0], [1], [0, 0, 1, 1], [], []>} : vector<8x64xf32>, vector<64x8xf32>, vector<8x8xf32> -> vector<8x8xf32>
    %c0_119 = arith.constant 0 : index
    %c0_120 = arith.constant 0 : index
    %162 = vector.load %arg40[%c0_119, %c0_120] : memref<1x8xf32, #tpu.memory_space<vmem>>, vector<1x8xf32>
    %163 = vector.broadcast %162 : vector<1x8xf32> to vector<8x8xf32>
    %164 = arith.addf %161, %163 : vector<8x8xf32>
    %cst_121 = arith.constant 0.000000e+00 : f32
    %165 = vector.broadcast %cst_121 : f32 to vector<8x8xf32>
    %166 = arith.subf %165, %164 : vector<8x8xf32>
    %167 = math.exp %166 : vector<8x8xf32>
    %cst_122 = arith.constant 1.000000e+00 : f32
    %168 = vector.broadcast %cst_122 : f32 to vector<8x8xf32>
    %169 = arith.addf %168, %167 : vector<8x8xf32>
    %cst_123 = arith.constant 1.000000e+00 : f32
    %170 = vector.broadcast %cst_123 : f32 to vector<8x8xf32>
    %171 = arith.divf %170, %169 : vector<8x8xf32>
    %172 = arith.mulf %159, %171 : vector<8x8xf32>
    %c0_124 = arith.constant 0 : index
    %c0_125 = arith.constant 0 : index
    %173 = vector.load %arg41[%c0_124, %c0_125] : memref<64x8xf32, #tpu.memory_space<vmem>>, vector<64x8xf32>
    %cst_126 = arith.constant dense<0.000000e+00> : vector<8x8xf32>
    %174 = tpu.matmul %122, %173, %cst_126 {dimension_numbers = #tpu.dot_dimension_numbers<[1], [0], [0], [1], [0, 0, 1, 1], [], []>} : vector<8x64xf32>, vector<64x8xf32>, vector<8x8xf32> -> vector<8x8xf32>
    %c0_127 = arith.constant 0 : index
    %c0_128 = arith.constant 0 : index
    %175 = vector.load %arg42[%c0_127, %c0_128] : memref<1x8xf32, #tpu.memory_space<vmem>>, vector<1x8xf32>
    %176 = vector.broadcast %175 : vector<1x8xf32> to vector<8x8xf32>
    %177 = arith.addf %174, %176 : vector<8x8xf32>
    %cst_129 = arith.constant 0.000000e+00 : f32
    %178 = vector.broadcast %cst_129 : f32 to vector<8x8xf32>
    %179 = arith.maximumf %177, %178 : vector<8x8xf32>
    %180 = math.absf %177 : vector<8x8xf32>
    %cst_130 = arith.constant 0.000000e+00 : f32
    %181 = vector.broadcast %cst_130 : f32 to vector<8x8xf32>
    %182 = arith.subf %181, %180 : vector<8x8xf32>
    %183 = math.exp %182 : vector<8x8xf32>
    %cst_131 = arith.constant 1.000000e+00 : f32
    %184 = vector.broadcast %cst_131 : f32 to vector<8x8xf32>
    %185 = arith.addf %184, %183 : vector<8x8xf32>
    %186 = math.log %185 : vector<8x8xf32>
    %187 = arith.addf %179, %186 : vector<8x8xf32>
    %cst_132 = arith.constant 0.00999999977 : f32
    %188 = vector.broadcast %cst_132 : f32 to vector<8x8xf32>
    %189 = arith.addf %187, %188 : vector<8x8xf32>
    %c0_133 = arith.constant 0 : index
    %c0_134 = arith.constant 0 : index
    %190 = vector.load %arg43[%c0_133, %c0_134] : memref<8x48xf32, #tpu.memory_space<vmem>>, vector<8x48xf32>
    %191 = arith.addf %142, %190 : vector<8x48xf32>
    %192 = arith.mulf %127, %191 : vector<8x48xf32>
    %c0_135 = arith.constant 0 : index
    %c0_136 = arith.constant 0 : index
    %193 = vector.load %arg44[%c0_135, %c0_136] : memref<8x48xf32, #tpu.memory_space<vmem>>, vector<8x48xf32>
    %194 = arith.addf %147, %193 : vector<8x48xf32>
    %195 = arith.mulf %132, %194 : vector<8x48xf32>
    %196 = arith.addf %192, %195 : vector<8x48xf32>
    %197 = arith.addf %196, %137 : vector<8x48xf32>
    %c0_137 = arith.constant 0 : index
    %c0_138 = arith.constant 0 : index
    %198 = vector.load %arg47[%c0_137, %c0_138] : memref<8x48xf32, #tpu.memory_space<vmem>>, vector<8x48xf32>
    tpu.vector_store %arg47[%c0_137, %c0_138], %197 {strides = array<i32>} : memref<8x48xf32, #tpu.memory_space<vmem>>, vector<8x48xf32>,
    %c0_139 = arith.constant 0 : index
    %c0_140 = arith.constant 0 : index
    %199 = vector.load %arg48[%c0_139, %c0_140] : memref<8x8xf32, #tpu.memory_space<vmem>>, vector<8x8xf32>
    tpu.vector_store %arg48[%c0_139, %c0_140], %172 {strides = array<i32>} : memref<8x8xf32, #tpu.memory_space<vmem>>, vector<8x8xf32>,
    %c0_141 = arith.constant 0 : index
    %c0_142 = arith.constant 0 : index
    %200 = vector.load %arg49[%c0_141, %c0_142] : memref<8x8xf32, #tpu.memory_space<vmem>>, vector<8x8xf32>
    tpu.vector_store %arg49[%c0_141, %c0_142], %159 {strides = array<i32>} : memref<8x8xf32, #tpu.memory_space<vmem>>, vector<8x8xf32>,
    %201 = arith.mulf %142, %142 : vector<8x48xf32>
    %202 = arith.mulf %147, %147 : vector<8x48xf32>
    %203 = arith.addf %201, %202 : vector<8x48xf32>
    %cst_143 = arith.constant 5.000000e-01 : f32
    %204 = vector.broadcast %cst_143 : f32 to vector<8x48xf32>
    %205 = arith.mulf %204, %203 : vector<8x48xf32>
    %cst_144 = arith.constant dense<0.000000e+00> : vector<48xf32>
    %206 = vector.multi_reduction <add>, %205, %cst_144 [0] : vector<8x48xf32> to vector<48xf32>
    %207 = vector.shape_cast %206 : vector<48xf32> to vector<1x48xf32>
    %c0_145 = arith.constant 0 : index
    %c0_146 = arith.constant 0 : index
    %208 = vector.load %arg52[%c0_145, %c0_146] : memref<1x48xf32, #tpu.memory_space<vmem>>, vector<1x48xf32>
    tpu.vector_store %arg52[%c0_145, %c0_146], %207 {strides = array<i32>} : memref<1x48xf32, #tpu.memory_space<vmem>>, vector<1x48xf32>,
    %c0_147 = arith.constant 0 : index
    %c0_148 = arith.constant 0 : index
    %209 = vector.load %arg4[%c0_147, %c0_148] : memref<8x48xf32, #tpu.memory_space<vmem>>, vector<8x48xf32>
    %210 = arith.subf %209, %197 : vector<8x48xf32>
    %211 = arith.mulf %210, %210 : vector<8x48xf32>
    %c0_149 = arith.constant 0 : index
    %c0_150 = arith.constant 0 : index
    %212 = vector.load %arg45[%c0_149, %c0_150] : memref<48x8xf32, #tpu.memory_space<vmem>>, vector<48x8xf32>
    %cst_151 = arith.constant dense<0.000000e+00> : vector<8x8xf32>
    %213 = tpu.matmul %211, %212, %cst_151 {dimension_numbers = #tpu.dot_dimension_numbers<[1], [0], [0], [1], [0, 0, 1, 1], [], []>} : vector<8x48xf32>, vector<48x8xf32>, vector<8x8xf32> -> vector<8x8xf32>
    %cst_152 = arith.constant -5.000000e-01 : f32
    %214 = vector.broadcast %cst_152 : f32 to vector<8x8xf32>
    %215 = arith.mulf %214, %213 : vector<8x8xf32>
    %216 = arith.mulf %189, %189 : vector<8x8xf32>
    %217 = arith.divf %215, %216 : vector<8x8xf32>
    %218 = math.log %189 : vector<8x8xf32>
    %cst_153 = arith.constant 6.000000e+00 : f32
    %219 = vector.broadcast %cst_153 : f32 to vector<8x8xf32>
    %220 = arith.mulf %219, %218 : vector<8x8xf32>
    %221 = arith.subf %217, %220 : vector<8x8xf32>
    %cst_154 = arith.constant 5.51363134 : f32
    %222 = vector.broadcast %cst_154 : f32 to vector<8x8xf32>
    %223 = arith.subf %221, %222 : vector<8x8xf32>
    %cst_155 = arith.constant 9.99999997E-7 : f32
    %224 = vector.broadcast %cst_155 : f32 to vector<8x8xf32>
    %225 = arith.addf %172, %224 : vector<8x8xf32>
    %226 = math.log %225 : vector<8x8xf32>
    %227 = arith.addf %226, %223 : vector<8x8xf32>
    %228 = vector.extract_strided_slice %227 {offsets = [0, 0], sizes = [4, 8], strides = [1, 1]} : vector<8x8xf32> to vector<4x8xf32>
    %229 = vector.extract_strided_slice %226 {offsets = [0, 0], sizes = [4, 8], strides = [1, 1]} : vector<8x8xf32> to vector<4x8xf32>
    %cst_156 = arith.constant dense<0xFF800000> : vector<8xf32>
    %230 = vector.multi_reduction <maximumf>, %228, %cst_156 [0] : vector<4x8xf32> to vector<8xf32>
    %231 = vector.shape_cast %230 : vector<8xf32> to vector<1x8xf32>
    %232 = vector.broadcast %231 : vector<1x8xf32> to vector<4x8xf32>
    %233 = arith.subf %228, %232 : vector<4x8xf32>
    %234 = math.exp %233 : vector<4x8xf32>
    %cst_157 = arith.constant dense<0.000000e+00> : vector<8xf32>
    %235 = vector.multi_reduction <add>, %234, %cst_157 [0] : vector<4x8xf32> to vector<8xf32>
    %236 = vector.shape_cast %235 : vector<8xf32> to vector<1x8xf32>
    %237 = vector.broadcast %236 : vector<1x8xf32> to vector<4x8xf32>
    %238 = arith.divf %234, %237 : vector<4x8xf32>
    %c0_158 = arith.constant 0 : index
    %c0_159 = arith.constant 0 : index
    %239 = vector.load %arg50[%c0_158, %c0_159] : memref<8x8xf32, #tpu.memory_space<vmem>>, vector<4x8xf32>
    tpu.vector_store %arg50[%c0_158, %c0_159], %238 {strides = array<i32>} : memref<8x8xf32, #tpu.memory_space<vmem>>, vector<4x8xf32>,
    %cst_160 = arith.constant dense<0xFF800000> : vector<8xf32>
    %240 = vector.multi_reduction <maximumf>, %229, %cst_160 [0] : vector<4x8xf32> to vector<8xf32>
    %241 = vector.shape_cast %240 : vector<8xf32> to vector<1x8xf32>
    %242 = vector.broadcast %241 : vector<1x8xf32> to vector<4x8xf32>
    %243 = arith.subf %229, %242 : vector<4x8xf32>
    %244 = math.exp %243 : vector<4x8xf32>
    %cst_161 = arith.constant dense<0.000000e+00> : vector<8xf32>
    %245 = vector.multi_reduction <add>, %244, %cst_161 [0] : vector<4x8xf32> to vector<8xf32>
    %246 = vector.shape_cast %245 : vector<8xf32> to vector<1x8xf32>
    %247 = math.log %246 : vector<1x8xf32>
    %248 = arith.addf %241, %247 : vector<1x8xf32>
    %249 = math.log %236 : vector<1x8xf32>
    %250 = arith.addf %231, %249 : vector<1x8xf32>
    %251 = arith.subf %250, %248 : vector<1x8xf32>
    %c0_162 = arith.constant 0 : index
    %c0_163 = arith.constant 0 : index
    %252 = vector.load %arg51[%c0_162, %c0_163] : memref<2x8xf32, #tpu.memory_space<vmem>>, vector<1x8xf32>
    tpu.vector_store %arg51[%c0_162, %c0_163], %251 {strides = array<i32>} : memref<2x8xf32, #tpu.memory_space<vmem>>, vector<1x8xf32>,
    %253 = vector.extract_strided_slice %227 {offsets = [4, 0], sizes = [4, 8], strides = [1, 1]} : vector<8x8xf32> to vector<4x8xf32>
    %254 = vector.extract_strided_slice %226 {offsets = [4, 0], sizes = [4, 8], strides = [1, 1]} : vector<8x8xf32> to vector<4x8xf32>
    %cst_164 = arith.constant dense<0xFF800000> : vector<8xf32>
    %255 = vector.multi_reduction <maximumf>, %253, %cst_164 [0] : vector<4x8xf32> to vector<8xf32>
    %256 = vector.shape_cast %255 : vector<8xf32> to vector<1x8xf32>
    %257 = vector.broadcast %256 : vector<1x8xf32> to vector<4x8xf32>
    %258 = arith.subf %253, %257 : vector<4x8xf32>
    %259 = math.exp %258 : vector<4x8xf32>
    %cst_165 = arith.constant dense<0.000000e+00> : vector<8xf32>
    %260 = vector.multi_reduction <add>, %259, %cst_165 [0] : vector<4x8xf32> to vector<8xf32>
    %261 = vector.shape_cast %260 : vector<8xf32> to vector<1x8xf32>
    %262 = vector.broadcast %261 : vector<1x8xf32> to vector<4x8xf32>
    %263 = arith.divf %259, %262 : vector<4x8xf32>
    %c4 = arith.constant 4 : index
    %c0_166 = arith.constant 0 : index
    %264 = vector.load %arg50[%c4, %c0_166] : memref<8x8xf32, #tpu.memory_space<vmem>>, vector<4x8xf32>
    tpu.vector_store %arg50[%c4, %c0_166], %263 {strides = array<i32>} : memref<8x8xf32, #tpu.memory_space<vmem>>, vector<4x8xf32>,
    %cst_167 = arith.constant dense<0xFF800000> : vector<8xf32>
    %265 = vector.multi_reduction <maximumf>, %254, %cst_167 [0] : vector<4x8xf32> to vector<8xf32>
    %266 = vector.shape_cast %265 : vector<8xf32> to vector<1x8xf32>
    %267 = vector.broadcast %266 : vector<1x8xf32> to vector<4x8xf32>
    %268 = arith.subf %254, %267 : vector<4x8xf32>
    %269 = math.exp %268 : vector<4x8xf32>
    %cst_168 = arith.constant dense<0.000000e+00> : vector<8xf32>
    %270 = vector.multi_reduction <add>, %269, %cst_168 [0] : vector<4x8xf32> to vector<8xf32>
    %271 = vector.shape_cast %270 : vector<8xf32> to vector<1x8xf32>
    %272 = math.log %271 : vector<1x8xf32>
    %273 = arith.addf %266, %272 : vector<1x8xf32>
    %274 = math.log %261 : vector<1x8xf32>
    %275 = arith.addf %256, %274 : vector<1x8xf32>
    %276 = arith.subf %275, %273 : vector<1x8xf32>
    %c1 = arith.constant 1 : index
    %c0_169 = arith.constant 0 : index
    %277 = vector.load %arg51[%c1, %c0_169] : memref<2x8xf32, #tpu.memory_space<vmem>>, vector<1x8xf32>
    tpu.vector_store %arg51[%c1, %c0_169], %276 {strides = array<i32>} : memref<2x8xf32, #tpu.memory_space<vmem>>, vector<1x8xf32>,
    return
  }
}

module attributes {stable_mosaic.version = 11 : i64} {
  func.func @_template_mixture_kernel(%arg0: memref<8x14x256xf32, #tpu.memory_space<vmem>>, %arg1: memref<8x14x1xf32, #tpu.memory_space<vmem>>, %arg2: memref<14x256xf32, #tpu.memory_space<vmem>>) attributes {dimension_semantics = [], scalar_prefetch = 0 : i64, scratch_operands = 0 : i64, tpu.core_type = #tpu.core_type<tc>} {
    %c0 = arith.constant 0 : index
    %c0_0 = arith.constant 0 : index
    %c0_1 = arith.constant 0 : index
    %0 = vector.load %arg0[%c0, %c0_0, %c0_1] : memref<8x14x256xf32, #tpu.memory_space<vmem>>, vector<8x14x256xf32>
    %cst = arith.constant 4.000000e+00 : f32
    %1 = vector.broadcast %cst : f32 to vector<8x14x256xf32>
    %2 = arith.mulf %1, %0 : vector<8x14x256xf32>
    %c0_2 = arith.constant 0 : index
    %c0_3 = arith.constant 0 : index
    %c0_4 = arith.constant 0 : index
    %3 = vector.load %arg1[%c0_2, %c0_3, %c0_4] : memref<8x14x1xf32, #tpu.memory_space<vmem>>, vector<8x14x1xf32>
    %4 = vector.broadcast %3 : vector<8x14x1xf32> to vector<8x14x256xf32>
    %5 = arith.addf %2, %4 : vector<8x14x256xf32>
    %cst_5 = arith.constant dense<0xFF800000> : vector<14x256xf32>
    %6 = vector.multi_reduction <maximumf>, %5, %cst_5 [0] : vector<8x14x256xf32> to vector<14x256xf32>
    %7 = vector.shape_cast %6 : vector<14x256xf32> to vector<1x14x256xf32>
    %8 = vector.broadcast %7 : vector<1x14x256xf32> to vector<8x14x256xf32>
    %9 = arith.subf %5, %8 : vector<8x14x256xf32>
    %10 = math.exp %9 : vector<8x14x256xf32>
    %cst_6 = arith.constant dense<0.000000e+00> : vector<14x256xf32>
    %11 = vector.multi_reduction <add>, %10, %cst_6 [0] : vector<8x14x256xf32> to vector<14x256xf32>
    %12 = vector.shape_cast %11 : vector<14x256xf32> to vector<1x14x256xf32>
    %13 = tpu.reciprocal %12 {approx = true} : vector<1x14x256xf32> -> vector<1x14x256xf32>
    %14 = vector.broadcast %13 : vector<1x14x256xf32> to vector<8x14x256xf32>
    %15 = arith.mulf %10, %14 : vector<8x14x256xf32>
    %16 = arith.mulf %15, %0 : vector<8x14x256xf32>
    %cst_7 = arith.constant dense<0.000000e+00> : vector<14x256xf32>
    %17 = vector.multi_reduction <add>, %16, %cst_7 [0] : vector<8x14x256xf32> to vector<14x256xf32>
    %c0_8 = arith.constant 0 : index
    %c0_9 = arith.constant 0 : index
    %18 = vector.load %arg2[%c0_8, %c0_9] : memref<14x256xf32, #tpu.memory_space<vmem>>, vector<14x256xf32>
    tpu.vector_store %arg2[%c0_8, %c0_9], %17 {strides = array<i32>} : memref<14x256xf32, #tpu.memory_space<vmem>>, vector<14x256xf32>,
    return
  }
}

</mosaic_0001>

<bundles_post_ra>
// kernel: scae_forward.2
= control target key start
LH: loop header
LB: loop body
LE: loop exit
PB: predicated region body
PF: predicated region fallthrough
CT: control target
= control target key end

     0   :  { %s3386_s3 = smov 6   ;;  %s3387_s7 = smov 2   ;;  %vm209_vm0 = vcmask 130048   ;;  %vm339_vm1 = vcmask 1045504   ;;  %vm332_vm2 = vcmask 48128   ;;  %vm508_vm3 = vcmask 1043456   ;;  %s3847_s0 = inlined_call_operand.smem [shape: u32[53], index: -1, kind: input, shape index: {}] }
   0x1   :  { %s2503_s6 = sld [smem:[%s3847_s0 + %s3386_s3]]   ;;  %s3388_s11 = smov 9   ;;  %v3391_v18 = vmov 0   ;;  %vm305_vm4 = vcmask 293888   ;;  %vm630_vm5 = vcmask 261120   ;;  %vm1018_vm9 = vcmask 523264  }
   0x2   :  { %s2499_s10 = sld [smem:[%s3847_s0 + %s3387_s7]]   ;;  %s3389_s15 = smov 7   ;;  %3310 = vset.pattern.permute.xlu0 %v3391_v18  ;;  %vm3508_vm6 = vmpackc.low %vm630_vm5, %vm630_vm5  ;;  %vm3409_vm10 = vmmov 0   ;;  %vm2258_vm12 = vcmask 392192   ;;  %vm2274_vm13 = vcmask 385024   ;;  %vm2260_vm14 = vcmask 64512  }
   0x3   :  { %s2506_s14 = sld [smem:[%s3847_s0 + %s3388_s11]]   ;;  %s3390_s19 = smov 10   ;;  %vm2418_vm15 = vcmask 64516  }
   0x4   :  { %s2504_s18 = sld [smem:[%s3847_s0 + %s3389_s15]]   ;;  %s3392_s26 = smov 1  }
   0x5   :  { %s2507_s22 = sld [smem:[%s3847_s0 + %s3390_s19]]   ;;  %s3393_s30 = smov 5  }
   0x6   :  { %s1_s25 = sld [smem:[%s3847_s0]]   ;;  %s3394_s4 = smov 46  }
   0x7   :  { %v207_v0 = vld [vmem:[%s2503_s6] sm:$0xff]  ;;  %v208_v1 = vld [vmem:[%s2503_s6 + $0x8] sm:$0xff]  ;;  %s2498_s29 = sld [smem:[%s3847_s0 + %s3392_s26]]   ;;  %s3395_s8 = smov 8  }
   0x8   :  { %v203_v2 = vld [vmem:[%s2499_s10] sm:$0xff]  ;;  %v3056_v3 = vpack.c.bf16 %v208_v1, %v207_v0  ;;  %v204_v4 = vld [vmem:[%s2499_s10 + $0x8] sm:$0xff]  ;;  %s2502_s3 = sld [smem:[%s3847_s0 + %s3393_s30]]   ;;  %s3396_s12 = smov 12  }
   0x9   :  { %2759 = vmatprep.mubr.msk.f32.mxu0 %vm209_vm0, %v203_v2  ;;  %v418_v5 = vld [vmem:[%s2506_s14] sm:$0xff]  ;;  %v419_v6 = vld [vmem:[%s2506_s14 + $0x8] sm:$0xff]  ;;  %s2543_s7 = sld [smem:[%s3847_s0 + %s3394_s4]]   ;;  %s3397_s16 = smov 11  }
   0xa   :  { %3057 = vmatprep.subr.bf16.mxu0 %v3056_v3  ;;  %v3060_v7 = vpack.c.bf16 %v419_v6, %v418_v5  ;;  %v310_v8 = vld [vmem:[%s2504_s18] sm:$0x3f]  ;;  %s2505_s11 = sld [smem:[%s3847_s0 + %s3395_s8]]   ;;  %s3398_s20 = smov 13  }
   0xb   :  { %3059 = vmatpush3.bf16.msra.mxu0 %v3056_v3  ;;  %v497_v9 = vld [vmem:[%s2507_s22] sm:$0xff]  ;;  %v498_v10 = vld [vmem:[%s2507_s22 + $0x8] sm:$0xff]  ;;  %2762 = vmatprep.subr.msk.mxu1 %vm339_vm1, %v310_v8  ;;  %v499_v14 = vld [vmem:[%s2507_s22 + $0x10] sm:$0xff]  ;;  %s2509_s15 = sld [smem:[%s3847_s0 + %s3396_s12]]   ;;  %s3399_s24 = smov 96  }
   0xc   :  { %3061 = vmatprep.subr.bf16.mxu0 %v3060_v7  ;;  %v308_v11 = vld [vmem:[%s1_s25] sm:$0xff]  ;;  %v309_v12 = vld [vmem:[%s1_s25 + $0x8] sm:$0xff]  ;;  %v3064_v13 = vpack.c.bf16 %v498_v10, %v497_v9  ;;  %2763 = vmatpush3.msk.msra.mxu1 %vm339_vm1, %v310_v8  ;;  %v500_v15 = vld [vmem:[%s2507_s22 + $0x18] sm:$0xff]  ;;  %s2508_s19 = sld [smem:[%s3847_s0 + %s3397_s16]]   ;;  %s3400_s25 = smov 3   ;;  %vm2416_vm1 = vcmask 57344  }
   0xd   :  { %2764 = vmatprep.mubr.msk.f32.mxu1 %vm332_vm2, %v308_v11  ;;  %v3068_v16 = vpack.c.bf16 %v500_v15, %v499_v14  ;;  %v501_v17 = vld [vmem:[%s2507_s22 + $0x20] sm:$0xf]  ;;  %v312_v20 = vld [vmem:[%s2498_s29 + $0x8] sm:$0xff]  ;;  %s2510_s23 = sld [smem:[%s3847_s0 + %s3398_s20]]   ;;  %v609_v14 = vlaneseq  ;;  %s3403_s4 = smov 15  }
   0xe   :  { %2760 = vmatmul.mubr.msk.f32.vlgmr.msra.gmra.mrb[0].mxu0 %vm209_vm0, %v204_v4  ;;  %2765 = vmatmul.mubr.msk.f32.vlgmr.msra.gmra.mrb[0].mxu1 %vm332_vm2, %v309_v12  ;;  %v311_v19 = vld [vmem:[%s2498_s29] sm:$0xff]  ;;  %v206_v21 = vld [vmem:[%s2502_s3 + $0x8] sm:$0xff]  ;;  %s2500_s28 = sld [smem:[%s3847_s0 + %s3400_s25]]   ;;  %s3401_s29 = smov 14  }
   0xf   :  { %2771 = vmatprep.mubr.msk.f32.mxu0 %vm209_vm0, %v203_v2  ;;  %3063 = vmatpush3.bf16.msra.mxu0 %v3060_v7  ;;  %v205_v22 = vld [vmem:[%s2502_s3] sm:$0xff]  ;;  %s2511_s2 = sld [smem:[%s3847_s0 + %s3401_s29]]   ;;  %v610_v15 = vshrl.u32 %v609_v14, 7  ;;  %s3402_s3 = smov 64  }
  0x10   :  { %3065 = vmatprep.subr.bf16.mxu1 %v3064_v13  ;;  %316 = vperm.xlu0 %3310, %v311_v19   ;;  %v2552_v38 = vld [vmem:[%s2505_s11] ss:$0 sm:$0xff]  ;;  %s3404_s8 = smov 17   ;;  %s3405_s12 = smov 20  }
  0x11   :  { %3067 = vmatpush3.bf16.msra.mxu1 %v3064_v13  ;;  %v619_v50 = vld [vmem:[%s2509_s15] sm:$0xff]  ;;  %v620_v51 = vld [vmem:[%s2509_s15 + $0x8] sm:$0xff]  ;;  %v621_v53 = vld [vmem:[%s2509_s15 + $0x10] sm:$0xff]  ;;  %v611_v18 = vsub.s32 0, %v610_v15  ;;  %s2514_s11 = sld [smem:[%s3847_s0 + %s3404_s8]]   ;;  %s3406_s16 = smov 16  }
  0x12   :  { %2772 = vmatmul.mubr.msk.f32.vlgmr.msra.gmra.mrb[2].mxu0 %vm209_vm0, %v204_v4  ;;  %3069 = vmatprep.subr.bf16.mxu1 %v3068_v16  ;;  %v3072_v52 = vpack.c.bf16 %v620_v51, %v619_v50  ;;  %v622_v54 = vld [vmem:[%s2509_s15 + $0x18] sm:$0xff]  ;;  %v2561_v57 = vld [vmem:[%s2508_s19] ss:$0 sm:$0xff]  ;;  %s2517_s15 = sld [smem:[%s3847_s0 + %s3405_s12]]   ;;  %s3407_s20 = smov 18  }
  0x13   :  { %v3076_v55 = vpack.c.bf16 %v622_v54, %v621_v53  ;;  %v2562_v1 = vld [vmem:[%s2510_s23] ss:$0 sm:$0xff]  ;;  %s2513_s19 = sld [smem:[%s3847_s0 + %s3406_s16]]   ;;  %s3411_s25 = smov 21  }
  0x14   :  { %321 = vperm.xlu0 %3310, %v312_v20   ;;  %3073 = vmatprep.subr.bf16.mxu0 %v3072_v52  ;;  %v600_v12 = vld [vmem:[%s2500_s28] sm:$0x1]  ;;  %s2515_s23 = sld [smem:[%s3847_s0 + %s3407_s20]]   ;;  %s3412_s29 = smov 19  }
  0x15   :  { %3071 = vmatpush3.bf16.msra.mxu1 %v3068_v16  ;;  %3075 = vmatpush3.bf16.msra.mxu0 %v3072_v52  ;;  %v601_v13 = vadd.f32 1e-06, %v600_v12  ;;  %v605_v19 = vld [vmem:[%s2511_s2 + $0x8] sm:$0xff]  ;;  %v604_v20 = vld [vmem:[%s2511_s2] sm:$0xff]  ;;  %s2518_s28 = sld [smem:[%s3847_s0 + %s3411_s25]]   ;;  %s3416_s14 = smov 27  }
  0x16   :  { %2782 = vmatprep.subr.msk.mxu1 %vm508_vm3, %v501_v17  ;;  %3077 = vmatprep.subr.bf16.mxu0 %v3076_v55  ;;  %vm607_vm7 = vcmp.gt.f32.partialorder %v605_v19, 0.0  ;;  %vm606_vm8 = vcmp.gt.f32.partialorder %v604_v20, 0.0  ;;  %s2516_s2 = sld [smem:[%s3847_s0 + %s3412_s29]]   ;;  %s3417_s18 = smov 29  }
  0x17   :  { %v1016_v12 = vld [vmem:[%s2514_s11 + $0x30] sm:$0xff]  ;;  %s3603_s17 = sld [smem:[%s3847_s0 + %s3416_s14]]   ;;  %s3418_s22 = smov 24  }
  0x18   :  { %v1111_v15 = vld [vmem:[%s2517_s15] sm:$0xff]  ;;  %s2526_s21 = sld [smem:[%s3847_s0 + %s3417_s18]]   ;;  %s3419_s27 = smov 26  }
  0x19   :  { %2783 = vmatpush3.msk.msra.mxu1 %vm508_vm3, %v501_v17  ;;  %3079 = vmatpush3.bf16.msra.mxu0 %v3076_v55  ;;  %s2521_s26 = sld [smem:[%s3847_s0 + %s3418_s22]]   ;;  %s3420_s1 = smov 31  }
  0x1a   :  { %s2523_s30 = sld [smem:[%s3847_s0 + %s3419_s27]]   ;;  %s3421_s5 = smov 33  }
  0x1b   :  { %s3641_s8 = sld [smem:[%s3847_s0 + %s3421_s5]]   ;;  %s3422_s9 = smov 35  }
  0x1c   :  { %s3423_s12 = smov 37   ;;  %s3424_s16 = smov 39  }
  0x1d   :  { %s3425_s20 = smov 41   ;;  %s3426_s25 = smov 45  }
  0x1e   :  { %s3427_s29 = smov 34   ;;  %s3431_s14 = smov 38  }
  0x1f   :  { %s3432_s18 = smov 30   ;;  %s3433_s22 = smov 44  }
  0x20   :  { %s3434_s27 = smov 32   ;;  %s3436_s5 = smov 47  }
  0x8f   :  { %v317_v37 = vpop.permute.xlu0 %316 }
  0x90   :  { %v330_v41 = vmul.f32 %v2552_v38, %v317_v37 }
  0x93   :  { %v322_v39 = vpop.permute.xlu0 %321 }
  0x94   :  { %v331_v40 = vmul.f32 %v2552_v38, %v322_v39 }
  0xe1   :  { %v2761_v23 = vpop.f32.mrb[0].mxu0  ;;  %v2766_v42 = vpop.f32.mrb[0].mxu1 }
  0xe2   :  { %v292_v24 = vadd.f32 %v2761_v23, %v206_v21  ;;  %v282_v25 = vpop.f32.mrb[1].mxu0  ;;  %v415_v43 = vadd.f32 %v2766_v42, %v331_v40  ;;  %v409_v44 = vpop.f32.mrb[1].mxu1 }
  0xe3   :  { %v291_v26 = vadd.f32 %v282_v25, %v205_v22  ;;  %v410_v45 = vadd.f32 %v409_v44, %v330_v41 }
  0xe4   :  { %v294_v27 = vsub.f32 0.0, %v292_v24 }
  0xe5   :  { %v293_v28 = vsub.f32 0.0, %v291_v26  ;;  %v2773_v46 = vpop.f32.mrb[2].mxu0 }
  0xe6   :  { %v297_v29 = vmul.f32 1.442695, %v294_v27  ;;  %v496_v47 = vadd.f32 %v2773_v46, %v415_v43  ;;  %v486_v48 = vpop.f32.mrb[3].mxu0 }
  0xe7   :  { %v295_v30 = vmul.f32 1.442695, %v293_v28  ;;  %v495_v49 = vadd.f32 %v486_v48, %v410_v45 }
  0xe8   :  { %3326 = vpow2.f32 %v297_v29 }
  0xe9   :  { %3328 = vpow2.f32 %v295_v30 }
  0xf2   :  { %v3327_v31 = vpop.eup %3326 }
  0xf3   :  { %v3329_v32 = vpop.eup %3328  ;;  %v300_v33 = vadd.f32 1.0, %v3327_v31 }
  0xf4   :  { %v299_v34 = vadd.f32 1.0, %v3329_v32 }
  0xf5   :  { %3330 = vrcp.f32 %v300_v33 }
  0xf6   :  { %3332 = vrcp.f32 %v299_v34 }
  0xf7   :  { %3334 = vlog2.f32 %v601_v13  ;;  %v1017_v13 = vld [vmem:[%s2514_s11 + $0x38] sm:$0xff] }
  0xf8   :  { %v3110_v14 = vpack.c.bf16 %v1017_v13, %v1016_v12 }
  0xff   :  { %v3331_v35 = vpop.eup %3330 }
 0x100   :  { %v3333_v36 = vpop.eup %3332  ;;  %307 = vst.msk [vmem:[%s2543_s7 + $0x8] sm:$0xff] %vm305_vm4, %v3331_v35 }
 0x101   :  { %306 = vst.msk [vmem:[%s2543_s7] sm:$0xff] %vm305_vm4, %v3333_v36  ;;  %2784 = vmatprep.mubr.msk.f32.mxu1 %vm305_vm4, %v3333_v36  ;;  %v3335_v16 = vpop.eup %3334  ;;  %s2512_s7 = sld [smem:[%s3847_s0 + %s3403_s4]]  }
 0x102   :  { %2785 = vmatmul.mubr.msk.f32.vlgmr.msra.gmra.mrb[2].mxu1 %vm305_vm4, %v3331_v35  ;;  %v603_v17 = vmul.f32 0.6931472, %v3335_v16  ;;  %s3636_s4 = sld [smem:[%s3847_s0 + %s3420_s1]]   ;;  %s3435_s1 = smov 4  }
 0x104   :  { %v3523_v21 = vrot.slane %v603_v17, %v611_v18 }
 0x106   :  { %v615_v23 = vsel %vm607_vm7, %v3523_v21, -1e+09  ;;  %v614_v26 = vsel %vm606_vm8, %v3523_v21, -1e+09 }
 0x107   :  { %v916_v42 = vld [vmem:[%s2512_s7] sm:$0xff]  ;;  %v917_v43 = vld [vmem:[%s2512_s7 + $0x8] sm:$0xff]  ;;  %v918_v55 = vld [vmem:[%s2512_s7 + $0x10] sm:$0xff] }
 0x108   :  { %v3090_v44 = vpack.c.bf16 %v917_v43, %v916_v42 }
 0x1d5   :  { %v2786_v56 = vpop.f32.mrb[2].mxu1 }
 0x1d6   :  { %v588_v58 = vadd.f32 %v2786_v56, %v496_v47  ;;  %v578_v59 = vpop.f32.mrb[3].mxu1  ;;  %v919_v56 = vld [vmem:[%s2512_s7 + $0x18] sm:$0xff]  ;;  %s3414_s7 = smov 23  }
 0x1d7   :  { %v587_v60 = vadd.f32 %v578_v59, %v495_v49  ;;  %v1011_v59 = vld [vmem:[%s2514_s11 + $0x8] sm:$0xff]  ;;  %s2520_s10 = sld [smem:[%s3847_s0 + %s3414_s7]]   ;;  %s3429_s7 = smov 43  }
 0x1d8   :  { %v3489_v61 = vadd.f32 %v2561_v57, %v588_v58  ;;  %v1010_v58 = vld [vmem:[%s2514_s11] sm:$0xff] }
 0x1d9   :  { %v3491_v62 = vadd.f32 %v2561_v57, %v587_v60  ;;  %v3094_v57 = vpack.c.bf16 %v919_v56, %v918_v55  ;;  %v1012_v60 = vld [vmem:[%s2514_s11 + $0x10] sm:$0xff] }
 0x1da   :  { %v599_v0 = vmax.f32 %v3489_v61, 0.0  ;;  %v2571_v61 = vld [vmem:[%s2513_s19] ss:$0 sm:$0xff]  ;;  %s3703_s19 = sld [smem:[%s3847_s0 + %s3424_s16]]   ;;  %s3439_s16 = smov 49  }
 0x1db   :  { %v598_v63 = vmax.f32 %v3491_v62, 0.0  ;;  %v1112_v62 = vld [vmem:[%s2517_s15 + $0x8] sm:$0xff] }
 0x1dd   :  { %2795 = vmatprep.mubr.msk.f32.mxu0 %vm630_vm5, %v598_v63 }
 0x1de   :  { %2796 = vmatmul.mubr.msk.f32.vlgmr.msra.gmra.mrb[4].mxu0 %vm630_vm5, %v599_v0 }
 0x2b1   :  { %v2797_v2 = vpop.f32.mrb[4].mxu0 }
 0x2b2   :  { %v709_v3 = vadd.f32 %v2797_v2, %v2562_v1  ;;  %v703_v4 = vpop.f32.mrb[5].mxu0  ;;  %v1013_v2 = vld [vmem:[%s2514_s11 + $0x18] sm:$0xff] }
 0x2b3   :  { %v704_v5 = vadd.f32 %v2562_v1, %v703_v4  ;;  %v3098_v1 = vpack.c.bf16 %v1011_v59, %v1010_v58  ;;  %v1014_v4 = vld [vmem:[%s2514_s11 + $0x20] sm:$0xff]  ;;  %v1376_v58 = vld [vmem:[%s2520_s10 + $0x8] sm:$0xff] }
 0x2b5   :  { %2802 = vmatprep.mubr.msk.f32.mxu0 %vm630_vm5, %v704_v5  ;;  %v3311_v6 = vpack.i.bf16 %v709_v3, %v704_v5  ;;  %v1015_v5 = vld [vmem:[%s2514_s11 + $0x28] sm:$0xff]  ;;  %s3661_s11 = sld [smem:[%s3847_s0 + %s3422_s9]]   ;;  %s3437_s9 = smov 40  }
 0x2b7   :  { %3312 = vrot.lane.b32.xlu1 %v3311_v6, %s3399_s24 }
 0x329   :  { %v3313_v7 = vpop.permute.xlu1 %3312 }
 0x32a   :  { %v3315_v8 = vunpack.i.h.bf16 %v3313_v7  ;;  %v3314_v9 = vunpack.i.l.bf16 %v3313_v7 }
 0x32c   :  { %v3080_v11 = vpack.c.bf16 %v3315_v8, %v3314_v9 }
 0x32e   :  { %3082 = vmatprep.subr.msk.bf16.mxu0 %vm3508_vm6, %v3080_v11 }
 0x32f   :  { %3085 = vmatpush3.bf16.xpose.msk.msra.mxu0 %vm3508_vm6, %v3080_v11 }
 0x330   :  { %3091 = vmatprep.subr.bf16.mxu0 %v3090_v44 }
 0x336   :  { %2803 = vmatmul.mubr.msk.f32.vlgmr.msra.gmra.mrb[6].mxu0 %vm630_vm5, %v709_v3  ;;  %v3102_v3 = vpack.c.bf16 %v1013_v2, %v1012_v60  ;;  %v1377_v2 = vld [vmem:[%s2520_s10 + $0x10] sm:$0xff] }
 0x337   :  { %3093 = vmatpush3.bf16.msra.mxu0 %v3090_v44 }
 0x338   :  { %3095 = vmatprep.subr.bf16.mxu0 %v3094_v57 }
 0x33b   :  { %3097 = vmatpush3.bf16.msra.mxu0 %v3094_v57  ;;  %v1375_v57 = vld [vmem:[%s2520_s10] sm:$0xff] }
 0x33c   :  { %v3130_v60 = vpack.c.bf16 %v1376_v58, %v1375_v57  ;;  %v1722_v57 = vld [vmem:[%s3636_s4 + $0x28] sm:$0xff]  ;;  %v1806_v58 = vld [vmem:[%s3641_s8 + $0x20] sm:$0xff] }
 0x409   :  { %v2804_v22 = vpop.f32.mrb[6].mxu0 }
 0x40a   :  { %v802_v24 = vmul.f32 0.17677669, %v2804_v22  ;;  %v792_v25 = vpop.f32.mrb[7].mxu0  ;;  %v1113_v22 = vld [vmem:[%s2517_s15 + $0x10] sm:$0xff] }
 0x40b   :  { %v801_v27 = vmul.f32 0.17677669, %v792_v25 }
 0x40c   :  { %v804_v28 = vadd.f32 %v802_v24, %v615_v23  ;;  %v1114_v23 = vld [vmem:[%s2517_s15 + $0x18] sm:$0xff]  ;;  %s3671_s15 = sld [smem:[%s3847_s0 + %s3423_s12]]   ;;  %s3438_s12 = smov 52  }
 0x40d   :  { %v803_v29 = vadd.f32 %v801_v27, %v614_v26  ;;  %v3118_v24 = vpack.c.bf16 %v1114_v23, %v1113_v22  ;;  %v2576_v27 = vld [vmem:[%s2515_s23] ss:$0 sm:$0xff]  ;;  %s3713_s23 = sld [smem:[%s3847_s0 + %s3425_s20]]   ;;  %s3440_s20 = smov 48  }
 0x40e   :  { %v808_v30 = vsel %vm209_vm0, %v804_v28, -inf  ;;  %v2584_v22 = vld [vmem:[%s2521_s26] ss:$0 sm:$0xff]  ;;  %s2541_s26 = sld [smem:[%s3847_s0 + %s3433_s22]]  }
 0x40f   :  { %809 = vmax.xlane.f32.xlu0 %v808_v30  ;;  %v805_v31 = vsel %vm209_vm0, %v803_v29, -inf }
 0x410   :  { %806 = vmax.xlane.f32.xlu1 %v805_v31 }
 0x49c   :  { %v810_v32 = vpop.xlane.xlu0 %809 }
 0x49d   :  { %v812_v33 = vsub.f32 %v804_v28, %v810_v32  ;;  %v807_v34 = vpop.xlane.xlu1 %806  ;;  %v3408_v32 = vmov 0.0|0.0  }
 0x49e   :  { %v811_v35 = vsub.f32 %v803_v29, %v807_v34  ;;  %v2577_v34 = vld [vmem:[%s2518_s28] ss:$0 sm:$0xff]  ;;  %s2542_s28 = sld [smem:[%s3847_s0 + %s3426_s25]]   ;;  %s3441_s25 = smov 42  }
 0x49f   :  { %v815_v36 = vmul.f32 1.442695, %v812_v33  ;;  %v3410_v33 = vmov 0.0  }
 0x4a0   :  { %v813_v37 = vmul.f32 1.442695, %v811_v35 }
 0x4a1   :  { %3336 = vpow2.f32 %v815_v36 }
 0x4a2   :  { %3338 = vpow2.f32 %v813_v37 }
 0x4ab   :  { %v3337_v38 = vpop.eup %3336 }
 0x4ac   :  { %v3339_v39 = vpop.eup %3338  ;;  %v820_v40 = vsel %vm209_vm0, %v3337_v38, 0.0 }
 0x4ad   :  { %821 = vadd.xlane.f32.xlu1 %v820_v40  ;;  %v817_v41 = vsel %vm209_vm0, %v3339_v39, 0.0 }
 0x4ae   :  { %818 = vadd.xlane.f32.xlu0 %v817_v41  ;;  %v1203_v41 = vld [vmem:[%s2516_s2] sm:$0xff]  ;;  %s2531_s2 = sld [smem:[%s3847_s0 + %s3427_s29]]   ;;  %s3442_s29 = smov 50  }
 0x4c4   :  { %3317 = vrot.lane.b32.xlu0 %v3311_v6, %s3402_s3  ;;  %v3106_v6 = vpack.c.bf16 %v1015_v5, %v1014_v4  ;;  %s3413_s3 = smov 22  }
 0x4c5   :  { %s2519_s6 = sld [smem:[%s3847_s0 + %s3413_s3]]   ;;  %s3428_s3 = smov 28  }
 0x4cb   :  { %v616_v42 = vld [vmem:[%s2519_s6] sm:$0xff]  ;;  %s2525_s6 = sld [smem:[%s3847_s0 + %s3428_s3]]   ;;  %s3443_s3 = smov 51  }
 0x4cc   :  { %vm617_vm11 = vcmp.gt.f32.partialorder %v616_v42, 0.0  ;;  %v1717_v42 = vld [vmem:[%s3636_s4] sm:$0xff] }
 0x4cd   :  { %v618_v44 = vsel %vm617_vm11, %v3523_v21, -1e+09 }
 0x53a   :  { %v822_v45 = vpop.xlane.xlu1 %821 }
 0x53b   :  { %3340 = vrcp.f32 %v822_v45  ;;  %v819_v46 = vpop.xlane.xlu0 %818 }
 0x53c   :  { %3342 = vrcp.f32 %v819_v46 }
 0x53f   :  { %v3318_v47 = vpop.permute.xlu0 %3317 }
 0x540   :  { %v3320_v48 = vunpack.i.h.bf16 %v3318_v47  ;;  %v3319_v49 = vunpack.i.l.bf16 %v3318_v47 }
 0x542   :  { %v3086_v50 = vpack.c.bf16 %v3320_v48, %v3319_v49 }
 0x544   :  { %3087 = vmatprep.subr.bf16.mxu1 %v3086_v50 }
 0x545   :  { %v3341_v51 = vpop.eup %3340  ;;  %3089 = vmatpush3.bf16.msra.mxu1 %v3086_v50 }
 0x546   :  { %v3343_v52 = vpop.eup %3342  ;;  %v826_v54 = vmul.f32 %v3341_v51, %v3337_v38  ;;  %3099 = vmatprep.subr.bf16.mxu1 %v3098_v1 }
 0x547   :  { %v825_v53 = vmul.f32 %v3343_v52, %v3339_v39 }
 0x549   :  { %2809 = vmatprep.mubr.msk.f32.mxu1 %vm209_vm0, %v825_v53 }
 0x54a   :  { %2810 = vmatmul.mubr.msk.f32.vlgmr.msra.gmra.mrb[4].mxu1 %vm209_vm0, %v826_v54 }
 0x54b   :  { %3101 = vmatpush3.bf16.msra.mxu1 %v3098_v1 }
 0x54c   :  { %3103 = vmatprep.subr.bf16.mxu1 %v3102_v3 }
 0x54f   :  { %3105 = vmatpush3.bf16.msra.mxu1 %v3102_v3  ;;  %v1378_v3 = vld [vmem:[%s2520_s10 + $0x18] sm:$0xff]  ;;  %s2540_s10 = sld [smem:[%s3847_s0 + %s3429_s7]]  }
 0x550   :  { %3107 = vmatprep.subr.bf16.mxu1 %v3106_v6  ;;  %v3133_v4 = vpack.c.bf16 %v1378_v3, %v1377_v2  ;;  %v1723_v2 = vld [vmem:[%s3636_s4 + $0x30] sm:$0xff]  ;;  %v1724_v3 = vld [vmem:[%s3636_s4 + $0x38] sm:$0xff] }
 0x553   :  { %3109 = vmatpush3.bf16.msra.mxu1 %v3106_v6 }
 0x554   :  { %3111 = vmatprep.subr.bf16.mxu1 %v3110_v14 }
 0x557   :  { %3113 = vmatpush3.bf16.msra.mxu1 %v3110_v14  ;;  %v1544_v14 = vld [vmem:[%s3603_s17] sm:$0xff] }
 0x558   :  { %3126 = vmatprep.subr.bf16.mxu1 %v3408_v32 }
 0x61d   :  { %v2811_v7 = vpop.f32.mrb[4].mxu1 }
 0x61e   :  { %v905_v8 = vpop.f32.mrb[5].mxu1  ;;  %v915_v11 = vadd.f32 %v2811_v7, %v599_v0 }
 0x61f   :  { %v914_v9 = vadd.f32 %v905_v8, %v598_v63  ;;  %v3114_v63 = vpack.c.bf16 %v1112_v62, %v1111_v15  ;;  %v1545_v15 = vld [vmem:[%s3603_s17 + $0x8] sm:$0xff] }
 0x620   :  { %v3142_v62 = vpack.c.bf16 %v1545_v15, %v1544_v14  ;;  %v1889_v15 = vld [vmem:[%s3661_s11 + $0x10] sm:$0xff] }
 0x621   :  { %2820 = vmatprep.mubr.msk.f32.mxu0 %vm630_vm5, %v914_v9  ;;  %3115 = vmatprep.subr.bf16.mxu0 %v3114_v63 }
 0x622   :  { %2821 = vmatmul.mubr.msk.f32.vlgmr.msra.gmra.mrb[8].mxu0 %vm630_vm5, %v915_v11 }
 0x623   :  { %3117 = vmatpush3.bf16.msra.mxu0 %v3114_v63  ;;  %v1546_v63 = vld [vmem:[%s3603_s17 + $0x10] sm:$0xff] }
 0x624   :  { %3119 = vmatprep.subr.bf16.mxu0 %v3118_v24 }
 0x627   :  { %3121 = vmatpush3.bf16.msra.mxu0 %v3118_v24 }
 0x628   :  { %3122 = vmatprep.subr.bf16.mxu0 %v3408_v32 }
 0x6f5   :  { %v2822_v0 = vpop.f32.mrb[8].mxu0 }
 0x6f6   :  { %v1005_v16 = vadd.f32 %v2822_v0, %v2571_v61  ;;  %v999_v17 = vpop.f32.mrb[9].mxu0 }
 0x6f7   :  { %v1000_v18 = vadd.f32 %v2571_v61, %v999_v17  ;;  %v1547_v61 = vld [vmem:[%s3603_s17 + $0x18] sm:$0xff]  ;;  %v1549_v17 = vld [vmem:[%s3603_s17 + $0x28] sm:$0xff] }
 0x6f8   :  { %v1009_v20 = vmax.f32 %v1005_v16, 0.0  ;;  %v3145_v0 = vpack.c.bf16 %v1547_v61, %v1546_v63  ;;  %v1548_v16 = vld [vmem:[%s3603_s17 + $0x20] sm:$0xff]  ;;  %v1974_v63 = vld [vmem:[%s3671_s15 + $0x10] sm:$0xff]  ;;  %v1975_v61 = vld [vmem:[%s3671_s15 + $0x18] sm:$0xff] }
 0x6f9   :  { %v1008_v19 = vmax.f32 %v1000_v18, 0.0  ;;  %v3148_v18 = vpack.c.bf16 %v1549_v17, %v1548_v16  ;;  %v3205_v16 = vpack.c.bf16 %v1975_v61, %v1974_v63  ;;  %v1891_v17 = vld [vmem:[%s3661_s11 + $0x20] sm:$0xff] }
 0x6fb   :  { %2839 = vmatprep.mubr.msk.f32.mxu1 %vm1018_vm9, %v1008_v19  ;;  %v1632_v19 = vld [vmem:[%s2526_s21] sm:$0xff] }
 0x6fc   :  { %2840 = vmatmul.mubr.msk.f32.vlgmr.msra.gmra.mrb[6].mxu1 %vm1018_vm9, %v1009_v20  ;;  %v1633_v20 = vld [vmem:[%s2526_s21 + $0x8] sm:$0xff] }
 0x6fd   :  { %2864 = vmatprep.mubr.msk.f32.mxu1 %vm3409_vm10, %v3410_v33  ;;  %v3154_v24 = vpack.c.bf16 %v1633_v20, %v1632_v19  ;;  %v1976_v19 = vld [vmem:[%s3671_s15 + $0x20] sm:$0xff]  ;;  %v1977_v20 = vld [vmem:[%s3671_s15 + $0x28] sm:$0xff] }
 0x7cf   :  { %v2841_v25 = vpop.f32.mrb[6].mxu1 }
 0x7d0   :  { %v1101_v26 = vadd.f32 %v2841_v25, %v915_v11  ;;  %v1091_v28 = vpop.f32.mrb[7].mxu1 }
 0x7d1   :  { %v1100_v29 = vadd.f32 %v1091_v28, %v914_v9  ;;  %v1635_v28 = vld [vmem:[%s2526_s21 + $0x18] sm:$0xff] }
 0x7d2   :  { %v1110_v31 = vadd.f32 %v2576_v27, %v1101_v26 }
 0x7d3   :  { %v1109_v30 = vadd.f32 %v2576_v27, %v1100_v29  ;;  %v1634_v27 = vld [vmem:[%s2526_s21 + $0x10] sm:$0xff] }
 0x7d4   :  { %v3157_v29 = vpack.c.bf16 %v1635_v28, %v1634_v27  ;;  %v1979_v27 = vld [vmem:[%s3671_s15 + $0x38] sm:$0xff] }
 0x7d5   :  { %2850 = vmatprep.mubr.msk.f32.mxu0 %vm630_vm5, %v1109_v30  ;;  %v1636_v30 = vld [vmem:[%s2526_s21 + $0x20] sm:$0xff] }
 0x7d6   :  { %2851 = vmatmul.mubr.msk.f32.vlgmr.msra.gmra.mrb[10].mxu0 %vm630_vm5, %v1110_v31  ;;  %v1637_v31 = vld [vmem:[%s2526_s21 + $0x28] sm:$0xff] }
 0x7d7   :  { %2857 = vmatprep.mubr.msk.f32.mxu0 %vm3409_vm10, %v3410_v33 }
 0x8a9   :  { %v2852_v35 = vpop.f32.mrb[10].mxu0 }
 0x8aa   :  { %v1200_v36 = vadd.f32 %v2852_v35, %v2577_v34  ;;  %v1194_v37 = vpop.f32.mrb[11].mxu0  ;;  %v1550_v35 = vld [vmem:[%s3603_s17 + $0x30] sm:$0xff] }
 0x8ab   :  { %v1195_v38 = vadd.f32 %v2577_v34, %v1194_v37  ;;  %v3160_v34 = vpack.c.bf16 %v1637_v31, %v1636_v30  ;;  %v1638_v37 = vld [vmem:[%s2526_s21 + $0x30] sm:$0xff]  ;;  %v2063_v30 = vld [vmem:[%s3703_s19] sm:$0xff]  ;;  %v2064_v31 = vld [vmem:[%s3703_s19 + $0x8] sm:$0xff] }
 0x8ad   :  { %v3321_v39 = vpack.i.bf16 %v1200_v36, %v1195_v38  ;;  %v3123_v40 = vpack.c.bf16 %v1200_v36, %v1195_v38  ;;  %v1551_v36 = vld [vmem:[%s3603_s17 + $0x38] sm:$0xff]  ;;  %s2535_s17 = sld [smem:[%s3847_s0 + %s3431_s14]]  }
 0x8ae   :  { %v3151_v38 = vpack.c.bf16 %v1551_v36, %v1550_v35  ;;  %v2156_v35 = vld [vmem:[%s3713_s23 + $0x8] sm:$0xff]  ;;  %v3214_v36 = vpack.c.bf16 %v2064_v31, %v2063_v30 }
 0x8af   :  { %3125 = vmatpush3.bf16.xpose.msk.msra.mxu0 %vm3508_vm6, %v3123_v40 }
 0x8b0   :  { %3135 = vmatprep.subr.bf16.mxu0 %v3408_v32 }
 0x8b3   :  { %v2598_v61 = vld [vmem:[%s2535_s17] ss:$0 sm:$0xff] }
 0x8b6   :  { %2858 = vmatmul.mubr.msk.f32.vlgmr.msra.gmra.mrb[12].mxu0 %vm630_vm5, %v1203_v41  ;;  %v2586_v41 = vld [vmem:[%s2523_s30] ss:$0 sm:$0xff]  ;;  %s2529_s30 = sld [smem:[%s3847_s0 + %s3434_s27]]  }
 0x8b7   :  { %2886 = vmatprep.mubr.msk.f32.mxu0 %vm3409_vm10, %v3410_v33 }
 0x989   :  { %v1279_v43 = vpop.f32.mrb[12].mxu0 }
 0x98a   :  { %v1283_v10 = vmul.f32 0.17677669, %v1279_v43  ;;  %v2859_v45 = vpop.f32.mrb[13].mxu0  ;;  %v1718_v43 = vld [vmem:[%s3636_s4 + $0x8] sm:$0xff] }
 0x98c   :  { %v1284_v46 = vadd.f32 %v1283_v10, %v618_v44  ;;  %v1802_v44 = vld [vmem:[%s3641_s8] sm:$0xff]  ;;  %v1803_v10 = vld [vmem:[%s3641_s8 + $0x8] sm:$0xff] }
 0x98e   :  { %v1285_v47 = vsel %vm209_vm0, %v1284_v46, -inf }
 0x98f   :  { %1286 = vmax.xlane.f32.xlu1 %v1285_v47 }
 0xa1c   :  { %v1287_v48 = vpop.xlane.xlu1 %1286 }
 0xa1d   :  { %v1288_v49 = vsub.f32 %v1284_v46, %v1287_v48  ;;  %v3166_v48 = vpack.c.bf16 %v1718_v43, %v1717_v42 }
 0xa1f   :  { %v1289_v50 = vmul.f32 1.442695, %v1288_v49  ;;  %v3178_v49 = vpack.c.bf16 %v1803_v10, %v1802_v44  ;;  %v2067_v44 = vld [vmem:[%s3703_s19 + $0x20] sm:$0xff]  ;;  %v2068_v10 = vld [vmem:[%s3703_s19 + $0x28] sm:$0xff] }
 0xa21   :  { %3344 = vpow2.f32 %v1289_v50  ;;  %v1719_v50 = vld [vmem:[%s3636_s4 + $0x10] sm:$0xff] }
 0xa2b   :  { %v3345_v51 = vpop.eup %3344 }
 0xa2c   :  { %v1291_v52 = vsel %vm209_vm0, %v3345_v51, 0.0 }
 0xa2d   :  { %1292 = vadd.xlane.f32.xlu1 %v1291_v52  ;;  %v1720_v52 = vld [vmem:[%s3636_s4 + $0x18] sm:$0xff] }
 0xa3e   :  { %3322 = vrot.lane.b32.xlu1 %v3321_v39, %s3399_s24  ;;  %s3415_s24 = smov 25   ;;  %v1639_v39 = vld [vmem:[%s2526_s21 + $0x38] sm:$0xff]  ;;  %s2527_s21 = sld [smem:[%s3847_s0 + %s3432_s18]]  }
 0xa3f   :  { %s2522_s13 = sld [smem:[%s3847_s0 + %s3415_s24]]   ;;  %v3163_v40 = vpack.c.bf16 %v1639_v39, %v1638_v37  ;;  %v2066_v39 = vld [vmem:[%s3703_s19 + $0x18] sm:$0xff]  ;;  %s3430_s24 = smov 36  }
 0xa45   :  { %v1459_v5 = vld [vmem:[%s2522_s13] sm:$0xff]  ;;  %v1460_v6 = vld [vmem:[%s2522_s13 + $0x8] sm:$0xff]  ;;  %v1461_v11 = vld [vmem:[%s2522_s13 + $0x10] sm:$0xff] }
 0xa46   :  { %v3136_v7 = vpack.c.bf16 %v1460_v6, %v1459_v5  ;;  %v1462_v12 = vld [vmem:[%s2522_s13 + $0x18] sm:$0xff]  ;;  %v3175_v6 = vpack.c.bf16 %v1724_v3, %v1723_v2  ;;  %s2533_s13 = sld [smem:[%s3847_s0 + %s3430_s24]]  }
 0xa47   :  { %v3139_v13 = vpack.c.bf16 %v1462_v12, %v1461_v11  ;;  %v1809_v5 = vld [vmem:[%s3641_s8 + $0x38] sm:$0xff]  ;;  %v1972_v11 = vld [vmem:[%s3671_s15] sm:$0xff]  ;;  %v1973_v12 = vld [vmem:[%s3671_s15 + $0x8] sm:$0xff] }
 0xa48   :  { %3137 = vmatpush3.bf16.msra.mxu0 %v3136_v7  ;;  %v3202_v14 = vpack.c.bf16 %v1973_v12, %v1972_v11 }
 0xa49   :  { %3138 = vmatprep.subr.bf16.mxu0 %v3408_v32 }
 0xa4c   :  { %3140 = vmatpush3.bf16.msra.mxu0 %v3139_v13  ;;  %v2596_v63 = vld [vmem:[%s2533_s13] ss:$0 sm:$0xff] }
 0xa4d   :  { %3153 = vmatprep.subr.bf16.mxu0 %v3408_v32 }
 0xaba   :  { %v1293_v53 = vpop.xlane.xlu1 %1292 }
 0xabb   :  { %3346 = vrcp.f32 %v1293_v53  ;;  %v1804_v53 = vld [vmem:[%s3641_s8 + $0x10] sm:$0xff] }
 0xabe   :  { %v3323_v21 = vpop.permute.xlu1 %3322 }
 0xabf   :  { %v3325_v54 = vunpack.i.h.bf16 %v3323_v21  ;;  %v3324_v55 = vunpack.i.l.bf16 %v3323_v21  ;;  %v1805_v21 = vld [vmem:[%s3641_s8 + $0x18] sm:$0xff] }
 0xac1   :  { %v3127_v56 = vpack.c.bf16 %v3325_v54, %v3324_v55  ;;  %v3169_v54 = vpack.c.bf16 %v1720_v52, %v1719_v50  ;;  %v3181_v55 = vpack.c.bf16 %v1805_v21, %v1804_v53  ;;  %v2070_v50 = vld [vmem:[%s3703_s19 + $0x38] sm:$0xff]  ;;  %v2161_v52 = vld [vmem:[%s3713_s23 + $0x30] sm:$0xff] }
 0xac2   :  { %v2162_v53 = vld [vmem:[%s3713_s23 + $0x38] sm:$0xff] }
 0xac3   :  { %3128 = vmatpush3.bf16.msra.mxu1 %v3127_v56  ;;  %v1721_v56 = vld [vmem:[%s3636_s4 + $0x20] sm:$0xff]  ;;  %s2501_s4 = sld [smem:[%s3847_s0 + %s3435_s1]]  }
 0xac4   :  { %3129 = vmatprep.subr.bf16.mxu1 %v3408_v32 }
 0xac5   :  { %v3347_v59 = vpop.eup %3346 }
 0xac6   :  { %v1295_v1 = vmul.f32 %v3347_v59, %v3345_v51  ;;  %v1807_v59 = vld [vmem:[%s3641_s8 + $0x28] sm:$0xff] }
 0xac8   :  { %2865 = vmatmul.mubr.msk.f32.vlgmr.msra.gmra.mrb[8].mxu1 %vm209_vm0, %v1295_v1  ;;  %v3184_v1 = vpack.c.bf16 %v1807_v59, %v1806_v58  ;;  %v2281_v58 = vld [vmem:[%s2542_s28 + $0x10] sm:$0xff]  ;;  %v2282_v59 = vld [vmem:[%s2542_s28 + $0x18] sm:$0xff]  ;;  %vm2371_vm0 = vcmask 60416  }
 0xac9   :  { %3131 = vmatpush3.bf16.msra.mxu1 %v3130_v60  ;;  %2875 = vmatprep.mubr.msk.f32.mxu1 %vm3409_vm10, %v3410_v33  ;;  %v3172_v60 = vpack.c.bf16 %v1722_v57, %v1721_v56  ;;  %v2280_v56 = vld [vmem:[%s2542_s28 + $0x8] sm:$0xff] }
 0xaca   :  { %3132 = vmatprep.subr.bf16.mxu1 %v3408_v32 }
 0xacd   :  { %3134 = vmatpush3.bf16.msra.mxu1 %v3133_v4  ;;  %v1808_v4 = vld [vmem:[%s3641_s8 + $0x30] sm:$0xff]  ;;  %s2544_s8 = sld [smem:[%s3847_s0 + %s3436_s5]]  }
 0xace   :  { %3141 = vmatprep.subr.bf16.mxu1 %v3408_v32  ;;  %v3187_v7 = vpack.c.bf16 %v1809_v5, %v1808_v4 }
 0xb9b   :  { %v1371_v8 = vpop.f32.mrb[8].mxu1 }
 0xb9c   :  { %v2866_v9 = vpop.f32.mrb[9].mxu1  ;;  %2876 = vmatmul.mubr.msk.f32.vlgmr.msra.gmra.mrb[10].mxu1 %vm630_vm5, %v1371_v8  ;;  %v1887_v8 = vld [vmem:[%s3661_s11] sm:$0xff] }
 0xb9d   :  { %2905 = vmatprep.mubr.msk.f32.mxu1 %vm3409_vm10, %v3410_v33  ;;  %3143 = vmatpush3.bf16.msra.mxu1 %v3142_v62  ;;  %v1888_v9 = vld [vmem:[%s3661_s11 + $0x8] sm:$0xff]  ;;  %v1890_v62 = vld [vmem:[%s3661_s11 + $0x18] sm:$0xff] }
 0xb9e   :  { %3144 = vmatprep.subr.bf16.mxu1 %v3408_v32  ;;  %v3190_v13 = vpack.c.bf16 %v1888_v9, %v1887_v8  ;;  %v2250_v9 = vld [vmem:[%s2540_s10] sm:$0xff] }
 0xba1   :  { %3146 = vmatpush3.bf16.msra.mxu1 %v3145_v0  ;;  %v3193_v0 = vpack.c.bf16 %v1890_v62, %v1889_v15 }
 0xba2   :  { %3147 = vmatprep.subr.bf16.mxu1 %v3408_v32 }
 0xba5   :  { %3149 = vmatpush3.bf16.msra.mxu1 %v3148_v18  ;;  %v1892_v18 = vld [vmem:[%s3661_s11 + $0x28] sm:$0xff] }
 0xba6   :  { %3150 = vmatprep.subr.bf16.mxu1 %v3408_v32 }
 0xba9   :  { %3152 = vmatpush3.bf16.msra.mxu1 %v3151_v38  ;;  %v2065_v38 = vld [vmem:[%s3703_s19 + $0x10] sm:$0xff] }
 0xbaa   :  { %3165 = vmatprep.subr.bf16.mxu1 %v3408_v32  ;;  %v3217_v42 = vpack.c.bf16 %v2066_v39, %v2065_v38  ;;  %v2276_v38 = vld [vmem:[%s2501_s4] sm:$0xff] }
 0xc6f   :  { %v1455_v23 = vpop.f32.mrb[10].mxu1 }
 0xc70   :  { %v1456_v25 = vadd.f32 %v2584_v22, %v1455_v23  ;;  %v2877_v26 = vpop.f32.mrb[11].mxu1  ;;  %v3196_v22 = vpack.c.bf16 %v1892_v18, %v1891_v17  ;;  %v3208_v23 = vpack.c.bf16 %v1977_v20, %v1976_v19  ;;  %v2253_v17 = vld [vmem:[%s2541_s26] sm:$0xff] }
 0xc71   :  { %v1978_v26 = vld [vmem:[%s3671_s15 + $0x30] sm:$0xff]  ;;  %s2549_s15 = sld [smem:[%s3847_s0 + %s3438_s12]]  }
 0xc72   :  { %2887 = vmatmul.mubr.msk.f32.vlgmr.msra.gmra.mrb[14].mxu0 %vm630_vm5, %v1456_v25  ;;  %v1894_v25 = vld [vmem:[%s3661_s11 + $0x38] sm:$0xff] }
 0xc73   :  { %3155 = vmatpush3.bf16.msra.mxu0 %v3154_v24  ;;  %2924 = vmatprep.mubr.msk.f32.mxu0 %vm3409_vm10, %v3410_v33  ;;  %v1893_v24 = vld [vmem:[%s3661_s11 + $0x30] sm:$0xff]  ;;  %s2537_s11 = sld [smem:[%s3847_s0 + %s3437_s9]]  }
 0xc74   :  { %3156 = vmatprep.subr.bf16.mxu0 %v3408_v32  ;;  %v3199_v28 = vpack.c.bf16 %v1894_v25, %v1893_v24 }
 0xc77   :  { %3158 = vmatpush3.bf16.msra.mxu0 %v3157_v29  ;;  %v3211_v29 = vpack.c.bf16 %v1979_v27, %v1978_v26 }
 0xc78   :  { %3159 = vmatprep.subr.bf16.mxu0 %v3408_v32 }
 0xc7b   :  { %3161 = vmatpush3.bf16.msra.mxu0 %v3160_v34  ;;  %v2155_v34 = vld [vmem:[%s3713_s23] sm:$0xff] }
 0xc7c   :  { %3162 = vmatprep.subr.bf16.mxu0 %v3408_v32  ;;  %v3226_v37 = vpack.c.bf16 %v2156_v35, %v2155_v34 }
 0xc7f   :  { %3164 = vmatpush3.bf16.msra.mxu0 %v3163_v40  ;;  %v2157_v40 = vld [vmem:[%s3713_s23 + $0x10] sm:$0xff] }
 0xc80   :  { %3177 = vmatprep.subr.bf16.mxu0 %v3408_v32 }
 0xd45   :  { %v1539_v45 = vpop.f32.mrb[14].mxu0 }
 0xd46   :  { %v1540_v46 = vadd.f32 %v2586_v41, %v1539_v45  ;;  %v2888_v47 = vpop.f32.mrb[15].mxu0  ;;  %v2158_v41 = vld [vmem:[%s3713_s23 + $0x18] sm:$0xff]  ;;  %v2159_v45 = vld [vmem:[%s3713_s23 + $0x20] sm:$0xff] }
 0xd47   :  { %v3229_v43 = vpack.c.bf16 %v2158_v41, %v2157_v40  ;;  %v3220_v47 = vpack.c.bf16 %v2068_v10, %v2067_v44 }
 0xd48   :  { %v3648_v51 = vmax.f32 %v1540_v46, 0.0  ;;  %v2160_v46 = vld [vmem:[%s3713_s23 + $0x28] sm:$0xff]  ;;  %s2545_s23 = sld [smem:[%s3847_s0 + %s3440_s20]]  }
 0xd4a   :  { %2906 = vmatmul.mubr.msk.f32.vlgmr.msra.gmra.mrb[12].mxu1 %vm1018_vm9, %v3648_v51  ;;  %2925 = vmatmul.mubr.msk.f32.vlgmr.msra.gmra.mrb[16].mxu0 %vm1018_vm9, %v3648_v51 }
 0xd4b   :  { %3167 = vmatpush3.bf16.msra.mxu1 %v3166_v48  ;;  %3179 = vmatpush3.bf16.msra.mxu0 %v3178_v49  ;;  %v3232_v48 = vpack.c.bf16 %v2160_v46, %v2159_v45  ;;  %v2069_v49 = vld [vmem:[%s3703_s19 + $0x30] sm:$0xff]  ;;  %v2600_v45 = vld [vmem:[%s2537_s11] ss:$0 sm:$0xff]  ;;  %s2546_s19 = sld [smem:[%s3847_s0 + %s3439_s16]]  }
 0xd4c   :  { %3168 = vmatprep.subr.bf16.mxu1 %v3408_v32  ;;  %3180 = vmatprep.subr.bf16.mxu0 %v3408_v32  ;;  %v3223_v21 = vpack.c.bf16 %v2070_v50, %v2069_v49 }
 0xd4d   :  { %2943 = vmatprep.mubr.msk.f32.mxu1 %vm3409_vm10, %v3410_v33  ;;  %2962 = vmatprep.mubr.msk.f32.mxu0 %vm3409_vm10, %v3410_v33 }
 0xd4f   :  { %3170 = vmatpush3.bf16.msra.mxu1 %v3169_v54  ;;  %3182 = vmatpush3.bf16.msra.mxu0 %v3181_v55  ;;  %v3235_v54 = vpack.c.bf16 %v2162_v53, %v2161_v52  ;;  %v2279_v55 = vld [vmem:[%s2542_s28] sm:$0xff] }
 0xd50   :  { %3171 = vmatprep.subr.bf16.mxu1 %v3408_v32  ;;  %3183 = vmatprep.subr.bf16.mxu0 %v3408_v32  ;;  %v3238_v57 = vpack.c.bf16 %v2280_v56, %v2279_v55 }
 0xd53   :  { %3173 = vmatpush3.bf16.msra.mxu1 %v3172_v60  ;;  %3185 = vmatpush3.bf16.msra.mxu0 %v3184_v1  ;;  %v3241_v60 = vpack.c.bf16 %v2282_v59, %v2281_v58  ;;  %v2284_v1 = vld [vmem:[%s2542_s28 + $0x28] sm:$0xff] }
 0xd54   :  { %3174 = vmatprep.subr.bf16.mxu1 %v3408_v32  ;;  %3186 = vmatprep.subr.bf16.mxu0 %v3408_v32 }
 0xd57   :  { %3176 = vmatpush3.bf16.msra.mxu1 %v3175_v6  ;;  %3188 = vmatpush3.bf16.msra.mxu0 %v3187_v7  ;;  %v2588_v6 = vld [vmem:[%s2525_s6] ss:$0 sm:$0xff]  ;;  %s2548_s6 = sld [smem:[%s3847_s0 + %s3443_s3]]  }
 0xd58   :  { %3189 = vmatprep.subr.bf16.mxu1 %v3408_v32  ;;  %3201 = vmatprep.subr.bf16.mxu0 %v3408_v32 }
 0xd5a   :  { %2944 = vmatmul.mubr.msk.f32.vlgmr.msra.gmra.mrb[14].mxu1 %vm1018_vm9, %v3648_v51  ;;  %2963 = vmatmul.mubr.msk.f32.vlgmr.msra.gmra.mrb[18].mxu0 %vm1018_vm9, %v3648_v51 }
 0xd5b   :  { %3191 = vmatpush3.bf16.msra.mxu1 %v3190_v13  ;;  %3203 = vmatpush3.bf16.msra.mxu0 %v3202_v14 }
 0xd5c   :  { %3192 = vmatprep.subr.bf16.mxu1 %v3408_v32  ;;  %3204 = vmatprep.subr.bf16.mxu0 %v3408_v32 }
 0xd5d   :  { %2981 = vmatprep.mubr.msk.f32.mxu1 %vm3409_vm10, %v3410_v33  ;;  %3000 = vmatprep.mubr.msk.f32.mxu0 %vm3409_vm10, %v3410_v33 }
 0xd5f   :  { %3194 = vmatpush3.bf16.msra.mxu1 %v3193_v0  ;;  %3206 = vmatpush3.bf16.msra.mxu0 %v3205_v16  ;;  %v2590_v0 = vld [vmem:[%s2527_s21] ss:$0 sm:$0xff] }
 0xd60   :  { %3195 = vmatprep.subr.bf16.mxu1 %v3408_v32  ;;  %3207 = vmatprep.subr.bf16.mxu0 %v3408_v32 }
 0xd63   :  { %3197 = vmatpush3.bf16.msra.mxu1 %v3196_v22  ;;  %3209 = vmatpush3.bf16.msra.mxu0 %v3208_v23 }
 0xd64   :  { %3198 = vmatprep.subr.bf16.mxu1 %v3408_v32  ;;  %3210 = vmatprep.subr.bf16.mxu0 %v3408_v32 }
 0xd67   :  { %3200 = vmatpush3.bf16.msra.mxu1 %v3199_v28  ;;  %3212 = vmatpush3.bf16.msra.mxu0 %v3211_v29  ;;  %v2592_v29 = vld [vmem:[%s2529_s30] ss:$0 sm:$0xff] }
 0xd68   :  { %3213 = vmatprep.subr.bf16.mxu1 %v3408_v32  ;;  %3225 = vmatprep.subr.bf16.mxu0 %v3408_v32 }
 0xd6a   :  { %2982 = vmatmul.mubr.msk.f32.vlgmr.msra.gmra.mrb[16].mxu1 %vm1018_vm9, %v3648_v51  ;;  %3001 = vmatmul.mubr.msk.f32.vlgmr.msra.gmra.mrb[20].mxu0 %vm1018_vm9, %v3648_v51 }
 0xd6b   :  { %3215 = vmatpush3.bf16.msra.mxu1 %v3214_v36  ;;  %3227 = vmatpush3.bf16.msra.mxu0 %v3226_v37 }
 0xd6c   :  { %3216 = vmatprep.subr.bf16.mxu1 %v3408_v32  ;;  %3228 = vmatprep.subr.bf16.mxu0 %v3408_v32 }
 0xd6d   :  { %3019 = vmatprep.mubr.msk.f32.mxu1 %vm3409_vm10, %v3410_v33  ;;  %3038 = vmatprep.mubr.msk.f32.mxu0 %vm3409_vm10, %v3410_v33 }
 0xd6f   :  { %3218 = vmatpush3.bf16.msra.mxu1 %v3217_v42  ;;  %3230 = vmatpush3.bf16.msra.mxu0 %v3229_v43 }
 0xd70   :  { %3219 = vmatprep.subr.bf16.mxu1 %v3408_v32  ;;  %3231 = vmatprep.subr.bf16.mxu0 %v3408_v32 }
 0xd73   :  { %3221 = vmatpush3.bf16.msra.mxu1 %v3220_v47  ;;  %3233 = vmatpush3.bf16.msra.mxu0 %v3232_v48 }
 0xd74   :  { %3222 = vmatprep.subr.bf16.mxu1 %v3408_v32  ;;  %3234 = vmatprep.subr.bf16.mxu0 %v3408_v32 }
 0xd77   :  { %3224 = vmatpush3.bf16.msra.mxu1 %v3223_v21  ;;  %3236 = vmatpush3.bf16.msra.mxu0 %v3235_v54 }
 0xd78   :  { %3237 = vmatprep.subr.bf16.mxu1 %v3408_v32 }
 0xd7a   :  { %3020 = vmatmul.mubr.msk.f32.vlgmr.msra.gmra.mrb[18].mxu1 %vm1018_vm9, %v3648_v51  ;;  %3039 = vmatmul.mubr.msk.f32.vlgmr.msra.gmra.mrb[22].mxu0 %vm1018_vm9, %v3648_v51  ;;  %v2283_v51 = vld [vmem:[%s2542_s28 + $0x20] sm:$0xff]  ;;  %s2539_s28 = sld [smem:[%s3847_s0 + %s3441_s25]]  }
 0xd7b   :  { %3053 = vmatprep.mubr.msk.f32.mxu1 %vm3409_vm10, %v3410_v33  ;;  %3239 = vmatpush3.bf16.msra.mxu1 %v3238_v57  ;;  %v3244_v33 = vpack.c.bf16 %v2284_v1, %v2283_v51 }
 0xd7c   :  { %3240 = vmatprep.subr.bf16.mxu1 %v3408_v32 }
 0xd7f   :  { %3242 = vmatpush3.bf16.msra.mxu1 %v3241_v60 }
 0xd80   :  { %3243 = vmatprep.subr.bf16.mxu1 %v3408_v32  ;;  %v2594_v32 = vld [vmem:[%s2531_s2] ss:$0 sm:$0xff]  ;;  %s2547_s2 = sld [smem:[%s3847_s0 + %s3442_s29]]  }
 0xd83   :  { %3245 = vmatpush3.bf16.msra.mxu1 %v3244_v33  ;;  %v2602_v33 = vld [vmem:[%s2539_s28] ss:$0 sm:$0xff] }
 0xe1d   :  { %v1628_v2 = vpop.f32.mrb[12].mxu1  ;;  %v1713_v3 = vpop.f32.mrb[16].mxu0 }
 0xe1e   :  { %v2907_v4 = vpop.f32.mrb[13].mxu1  ;;  %v2926_v5 = vpop.f32.mrb[17].mxu0  ;;  %v1629_v14 = vadd.f32 %v2588_v6, %v1628_v2  ;;  %v1714_v24 = vadd.f32 %v2590_v0, %v1713_v3 }
 0xe2d   :  { %v1798_v7 = vpop.f32.mrb[14].mxu1  ;;  %v1883_v8 = vpop.f32.mrb[18].mxu0 }
 0xe2e   :  { %v1884_v11 = vadd.f32 %v2594_v32, %v1883_v8  ;;  %v2945_v12 = vpop.f32.mrb[15].mxu1  ;;  %v2964_v13 = vpop.f32.mrb[19].mxu0  ;;  %v1799_v35 = vadd.f32 %v2592_v29, %v1798_v7 }
 0xe30   :  { %v2251_v15 = vadd.f32 %v2250_v9, %v1884_v11  ;;  %v2263_v25 = vmul.f32 %v1884_v11, %v1884_v11 }
 0xe32   :  { %v2252_v62 = vmul.f32 %v2251_v15, %v1629_v14 }
 0xe3d   :  { %v1968_v16 = vpop.f32.mrb[16].mxu1  ;;  %v2053_v18 = vpop.f32.mrb[20].mxu0 }
 0xe3e   :  { %v1969_v19 = vadd.f32 %v2596_v63, %v1968_v16  ;;  %v2054_v20 = vadd.f32 %v2598_v61, %v2053_v18  ;;  %v2983_v22 = vpop.f32.mrb[17].mxu1  ;;  %v3002_v23 = vpop.f32.mrb[21].mxu0 }
 0xe40   :  { %v2254_v26 = vadd.f32 %v2253_v17, %v1969_v19  ;;  %v2264_v27 = vmul.f32 %v1969_v19, %v1969_v19  ;;  %v2057_v28 = vsub.f32 0.0, %v2054_v20 }
 0xe42   :  { %v2255_v30 = vmul.f32 %v2254_v26, %v1714_v24  ;;  %v2265_v31 = vadd.f32 %v2264_v27, %v2263_v25  ;;  %v2058_v34 = vmul.f32 1.442695, %v2057_v28 }
 0xe44   :  { %v2256_v36 = vadd.f32 %v2255_v30, %v2252_v62  ;;  %v2266_v37 = vmul.f32 0.5, %v2265_v31  ;;  %3348 = vpow2.f32 %v2058_v34 }
 0xe46   :  { %v2257_v39 = vadd.f32 %v2256_v36, %v1799_v35  ;;  %v2267_v40 = vsel %vm2258_vm12, %v2266_v37, 0.0 }
 0xe47   :  { %v2268_v41 = vrot.slane %v2267_v40, 4 }
 0xe48   :  { %v2277_v42 = vsub.f32 %v2276_v38, %v2257_v39  ;;  %2259 = vst.msk [vmem:[%s2544_s8] sm:$0xff] %vm2258_vm12, %v2257_v39 }
 0xe49   :  { %v2269_v43 = vadd.f32 %v2268_v41, %v2267_v40 }
 0xe4a   :  { %v2278_v44 = vmul.f32 %v2277_v42, %v2277_v42 }
 0xe4b   :  { %v2270_v10 = vrot.slane %v2269_v43, 2 }
 0xe4c   :  { %3054 = vmatmul.mubr.msk.f32.vlgmr.msra.gmra.mrb[20].mxu1 %vm2258_vm12, %v2278_v44 }
 0xe4d   :  { %v2271_v46 = vadd.f32 %v2270_v10, %v2269_v43  ;;  %v2144_v47 = vpop.f32.mrb[18].mxu1  ;;  %v2236_v48 = vpop.f32.mrb[22].mxu0 }
 0xe4e   :  { %v3349_v49 = vpop.eup %3348  ;;  %v2145_v50 = vadd.f32 %v2600_v45, %v2144_v47  ;;  %v3021_v52 = vpop.f32.mrb[19].mxu1  ;;  %v2237_v2 = vadd.f32 %v2602_v33, %v2236_v48 }
 0xe4f   :  { %v3040_v53 = vpop.f32.mrb[23].mxu0  ;;  %v2060_v21 = vadd.f32 1.0, %v3349_v49  ;;  %v2272_v54 = vrot.slane %v2271_v46, 1 }
 0xe50   :  { %v2148_v55 = vsub.f32 0.0, %v2145_v50  ;;  %v2241_v3 = vand.u32 2147483647, %v2237_v2  ;;  %v2240_v62 = vmax.f32 %v2237_v2, 0.0 }
 0xe51   :  { %3350 = vrcp.f32 %v2060_v21  ;;  %v2273_v56 = vadd.f32 %v2272_v54, %v2271_v46 }
 0xe52   :  { %v2149_v57 = vmul.f32 1.442695, %v2148_v55  ;;  %v2242_v4 = vsub.f32 0.0, %v2241_v3 }
 0xe53   :  { %2275 = vst.msk [vmem:[%s2549_s15] sm:$0x1] %vm2274_vm13, %v2273_v56 }
 0xe54   :  { %3352 = vpow2.f32 %v2149_v57  ;;  %v2243_v5 = vmul.f32 1.442695, %v2242_v4 }
 0xe5b   :  { %v3351_v58 = vpop.eup %3350 }
 0xe5c   :  { %2262 = vst.msk [vmem:[%s2546_s19] sm:$0xff] %vm2260_vm14, %v3351_v58 }
 0xe5e   :  { %v3353_v59 = vpop.eup %3352 }
 0xe5f   :  { %v2151_v60 = vadd.f32 1.0, %v3353_v59 }
 0xe61   :  { %3354 = vrcp.f32 %v2151_v60 }
 0xe62   :  { %3356 = vpow2.f32 %v2243_v5 }
 0xe6b   :  { %v3355_v51 = vpop.eup %3354 }
 0xe6c   :  { %v2154_v1 = vmul.f32 %v3355_v51, %v3351_v58  ;;  %v3357_v6 = vpop.eup %3356 }
 0xe6d   :  { %v2245_v7 = vadd.f32 1.0, %v3357_v6 }
 0xe6e   :  { %2261 = vst.msk [vmem:[%s2545_s23] sm:$0xff] %vm2260_vm14, %v2154_v1  ;;  %v2367_v32 = vadd.f32 1e-06, %v2154_v1 }
 0xe70   :  { %3358 = vlog2.f32 %v2367_v32 }
 0xe71   :  { %3360 = vlog2.f32 %v2245_v7 }
 0xe7a   :  { %v3359_v8 = vpop.eup %3358 }
 0xe7b   :  { %v2369_v9 = vmul.f32 0.6931472, %v3359_v8  ;;  %v3361_v11 = vpop.eup %3360 }
 0xe7c   :  { %v2247_v13 = vmul.f32 0.6931472, %v3361_v11 }
 0xe7d   :  { %v2442_v12 = vsel %vm2418_vm15, %v2369_v9, -inf  ;;  %v2392_v14 = vsel %vm2371_vm0, %v2369_v9, -inf }
 0xe7e   :  { %v2443_v15 = vrot.slane %v2442_v12, 4  ;;  %v2393_v63 = vrot.slane %v2392_v14, 4  ;;  %v2248_v61 = vadd.f32 %v2247_v13, %v2240_v62 }
 0xe80   :  { %v2444_v0 = vmax.f32 %v2442_v12, %v2443_v15  ;;  %v2394_v16 = vmax.f32 %v2392_v14, %v2393_v63  ;;  %v2249_v17 = vadd.f32 0.01, %v2248_v61 }
 0xe82   :  { %v2445_v18 = vrot.slane %v2444_v0, 2  ;;  %v2395_v19 = vrot.slane %v2394_v16, 2  ;;  %3362 = vlog2.f32 %v2249_v17  ;;  %v2359_v22 = vmul.f32 %v2249_v17, %v2249_v17 }
 0xe84   :  { %v2446_v20 = vmax.f32 %v2444_v0, %v2445_v18  ;;  %v2396_v23 = vmax.f32 %v2394_v16, %v2395_v19  ;;  %3364 = vrcp.f32 %v2359_v22 }
 0xe86   :  { %v2447_v24 = vrot.slane %v2446_v20, 1  ;;  %v2397_v25 = vrot.slane %v2396_v23, 1 }
 0xe88   :  { %v3821_v26 = vmax.f32 %v2446_v20, %v2447_v24  ;;  %v3823_v28 = vmax.f32 %v2396_v23, %v2397_v25 }
 0xe8a   :  { %v2449_v30 = vsub.f32 %v2369_v9, %v3821_v26  ;;  %v2399_v35 = vsub.f32 %v2369_v9, %v3823_v28 }
 0xe8c   :  { %v3363_v27 = vpop.eup %3362  ;;  %v2450_v40 = vmul.f32 1.442695, %v2449_v30  ;;  %v2400_v42 = vmul.f32 1.442695, %v2399_v35 }
 0xe8d   :  { %v2363_v29 = vmul.f32 0.6931472, %v3363_v27 }
 0xe8e   :  { %v3365_v37 = vpop.eup %3364  ;;  %3366 = vpow2.f32 %v2450_v40 }
 0xe8f   :  { %v2364_v39 = vmul.f32 6.0, %v2363_v29  ;;  %3368 = vpow2.f32 %v2400_v42 }
 0xe98   :  { %v3367_v53 = vpop.eup %3366 }
 0xe99   :  { %v3369_v55 = vpop.eup %3368  ;;  %v2453_v58 = vrot.slane %v3367_v53, 4 }
 0xe9a   :  { %v2402_v60 = vsel %vm2371_vm0, %v3369_v55, 0.0 }
 0xe9b   :  { %v2455_v2 = vsel %vm2371_vm0, %v2453_v58, 0.0  ;;  %v2403_v3 = vrot.slane %v2402_v60, 4 }
 0xe9c   :  { %v2456_v32 = vrot.slane %v2455_v2, 4 }
 0xe9d   :  { %v2404_v6 = vadd.f32 %v2403_v3, %v2402_v60 }
 0xe9e   :  { %v2457_v7 = vadd.f32 %v2456_v32, %v2455_v2 }
 0xe9f   :  { %v2405_v8 = vrot.slane %v2404_v6, 2 }
 0xea1   :  { %v2406_v11 = vadd.f32 %v2405_v8, %v2404_v6 }
 0xea3   :  { %v2407_v61 = vrot.slane %v2406_v11, 1 }
 0xea5   :  { %v2408_v20 = vadd.f32 %v2407_v61, %v2406_v11 }
 0xf1f   :  { %v2354_v31 = vpop.f32.mrb[20].mxu1 }
 0xf20   :  { %v2358_v34 = vmul.f32 -0.5, %v2354_v31  ;;  %v3055_v36 = vpop.f32.mrb[21].mxu1 }
 0xf22   :  { %v2361_v38 = vmul.f32 %v3365_v37, %v2358_v34 }
 0xf24   :  { %v2365_v41 = vsub.f32 %v2361_v38, %v2364_v39 }
 0xf26   :  { %v2605_v43 = vadd.f32 -5.5136313, %v2365_v41 }
 0xf28   :  { %v2370_v44 = vadd.f32 %v2605_v43, %v2369_v9  ;;  %v2458_v9 = vrot.slane %v2457_v7, 2 }
 0xf2a   :  { %v2372_v10 = vsel %vm2371_vm0, %v2370_v44, -inf  ;;  %v2419_v45 = vsel %vm2418_vm15, %v2370_v44, -inf  ;;  %v2459_v15 = vadd.f32 %v2458_v9, %v2457_v7 }
 0xf2b   :  { %v2373_v46 = vrot.slane %v2372_v10, 4  ;;  %v2420_v47 = vrot.slane %v2419_v45, 4 }
 0xf2c   :  { %v2460_v18 = vrot.slane %v2459_v15, 1 }
 0xf2d   :  { %v2374_v48 = vmax.f32 %v2372_v10, %v2373_v46  ;;  %v2421_v49 = vmax.f32 %v2419_v45, %v2420_v47 }
 0xf2e   :  { %v2461_v25 = vadd.f32 %v2460_v18, %v2459_v15 }
 0xf2f   :  { %v2375_v50 = vrot.slane %v2374_v48, 2  ;;  %v2422_v52 = vrot.slane %v2421_v49, 2 }
 0xf31   :  { %v2376_v21 = vmax.f32 %v2374_v48, %v2375_v50  ;;  %v2423_v54 = vmax.f32 %v2421_v49, %v2422_v52 }
 0xf33   :  { %v2377_v56 = vrot.slane %v2376_v21, 1  ;;  %v2424_v57 = vrot.slane %v2423_v54, 1 }
 0xf35   :  { %v2378_v59 = vmax.f32 %v2376_v21, %v2377_v56  ;;  %v3830_v51 = vmax.f32 %v2423_v54, %v2424_v57 }
 0xf37   :  { %v2379_v1 = vsub.f32 %v2370_v44, %v2378_v59  ;;  %v2426_v33 = vsub.f32 %v2370_v44, %v3830_v51 }
 0xf39   :  { %v2380_v4 = vmul.f32 1.442695, %v2379_v1  ;;  %v2427_v5 = vmul.f32 1.442695, %v2426_v33 }
 0xf3b   :  { %3370 = vpow2.f32 %v2380_v4 }
 0xf3c   :  { %3372 = vpow2.f32 %v2427_v5 }
 0xf3d   :  { %3374 = vlog2.f32 %v2408_v20 }
 0xf3e   :  { %3376 = vlog2.f32 %v2461_v25 }
 0xf45   :  { %v3371_v12 = vpop.eup %3370 }
 0xf46   :  { %v3373_v13 = vpop.eup %3372  ;;  %v2382_v14 = vsel %vm2371_vm0, %v3371_v12, 0.0 }
 0xf47   :  { %v2383_v62 = vrot.slane %v2382_v14, 4  ;;  %v2430_v63 = vrot.slane %v3373_v13, 4  ;;  %v3375_v35 = vpop.eup %3374 }
 0xf48   :  { %v3377_v36 = vpop.eup %3376  ;;  %v2410_v38 = vmul.f32 0.6931472, %v3375_v35 }
 0xf49   :  { %v2384_v0 = vadd.f32 %v2383_v62, %v2382_v14  ;;  %v2432_v16 = vsel %vm2371_vm0, %v2430_v63, 0.0  ;;  %v2463_v43 = vmul.f32 0.6931472, %v3377_v36 }
 0xf4a   :  { %v2433_v17 = vrot.slane %v2432_v16, 4  ;;  %v2411_v10 = vadd.f32 %v2410_v38, %v3823_v28 }
 0xf4b   :  { %v2385_v19 = vrot.slane %v2384_v0, 2  ;;  %v2464_v49 = vadd.f32 %v2463_v43, %v3821_v26 }
 0xf4c   :  { %v2434_v22 = vadd.f32 %v2433_v17, %v2432_v16 }
 0xf4d   :  { %v2386_v23 = vadd.f32 %v2385_v19, %v2384_v0 }
 0xf4e   :  { %v2435_v24 = vrot.slane %v2434_v22, 2 }
 0xf4f   :  { %v2387_v27 = vrot.slane %v2386_v23, 1 }
 0xf50   :  { %v2436_v29 = vadd.f32 %v2435_v24, %v2434_v22 }
 0xf51   :  { %v2388_v30 = vadd.f32 %v2387_v27, %v2386_v23 }
 0xf52   :  { %v2437_v31 = vrot.slane %v2436_v29, 1 }
 0xf53   :  { %3378 = vrcp.f32 %v2388_v30 }
 0xf54   :  { %3380 = vlog2.f32 %v2388_v30  ;;  %v2438_v34 = vadd.f32 %v2437_v31, %v2436_v29 }
 0xf56   :  { %3382 = vrcp.f32 %v2438_v34 }
 0xf57   :  { %3384 = vlog2.f32 %v2438_v34 }
 0xf5d   :  { %v3379_v37 = vpop.eup %3378 }
 0xf5e   :  { %v3381_v39 = vpop.eup %3380  ;;  %v2390_v40 = vmul.f32 %v3379_v37, %v3371_v12 }
 0xf5f   :  { %v2413_v41 = vmul.f32 0.6931472, %v3381_v39 }
 0xf60   :  { %v3383_v42 = vpop.eup %3382  ;;  %2391 = vst.msk [vmem:[%s2547_s2] sm:$0xf] %vm2371_vm0, %v2390_v40 }
 0xf61   :  { %v3385_v44 = vpop.eup %3384  ;;  %v2414_v45 = vadd.f32 %v2413_v41, %v2378_v59  ;;  %v2440_v46 = vmul.f32 %v3383_v42, %v3373_v13 }
 0xf62   :  { %v2466_v47 = vmul.f32 0.6931472, %v3385_v44 }
 0xf63   :  { %v2415_v48 = vsub.f32 %v2414_v45, %v2411_v10  ;;  %2441 = vst.msk [vmem:[%s2547_s2] sm:$0xf0] %vm2418_vm15, %v2440_v46 }
 0xf64   :  { %v2467_v50 = vadd.f32 %v2466_v47, %v3830_v51 }
 0xf65   :  { %2417 = vst.msk [vmem:[%s2548_s6] sm:$0x1] %vm2416_vm1, %v2415_v48 }
 0xf66   :  { %v2468_v52 = vsub.f32 %v2467_v50, %v2464_v49 }
 0xf68   :  { %2469 = vst.msk [vmem:[%s2548_s6 + $0x1] sm:$0x1] %vm2416_vm1, %v2468_v52 }

// kernel: scae_forward.3
= control target key start
LH: loop header
LB: loop body
LE: loop exit
PB: predicated region body
PF: predicated region fallthrough
CT: control target
= control target key end

     0   :  { %v583_v0 = vmov 0   ;;  %vm217_vm0 = vcmask 1045504   ;;  %s1239_s1 = inlined_call_operand.vmem [shape: f32[8,14,1], index: 1, kind: input, shape index: {}]   ;;  %s1240_s0 = inlined_call_operand.vmem [shape: f32[8,14,256], index: 0, kind: input, shape index: {}]   ;;  %s1241_s2 = inlined_call_operand.vmem [shape: f32[14,256], index: 2, kind: output, shape index: {}]  }
   0x1   :  { %510 = vset.pattern.permute.xlu1 %v583_v0  ;;  %509 = vset.pattern.permute.xlu0 %v583_v0  ;;  %v80_v1 = vld [vmem:[%s1239_s1 + $0x28] sm:$0x3f]  ;;  %v78_v3 = vld [vmem:[%s1239_s1 + $0x18] sm:$0x3f]  ;;  %v75_v4 = vld [vmem:[%s1239_s1] sm:$0xff] }
   0x2   :  { %v76_v2 = vld [vmem:[%s1239_s1 + $0x8] sm:$0x3f]  ;;  %118 = vperm.xlu1 %510, %v80_v1   ;;  %v77_v5 = vld [vmem:[%s1239_s1 + $0x10] sm:$0xff]  ;;  %v82_v6 = vld [vmem:[%s1239_s1 + $0x38] sm:$0x3f] }
   0x3   :  { %98 = vperm.xlu0 %509, %v76_v2   ;;  %v79_v7 = vld [vmem:[%s1239_s1 + $0x20] sm:$0xff]  ;;  %v84_v8 = vld [vmem:[%s1239_s1 + $0x48] sm:$0x3f]  ;;  %v81_v9 = vld [vmem:[%s1239_s1 + $0x30] sm:$0xff] }
   0x4   :  { %v86_v10 = vld [vmem:[%s1239_s1 + $0x58] sm:$0x3f]  ;;  %v83_v11 = vld [vmem:[%s1239_s1 + $0x40] sm:$0xff]  ;;  %v88_v12 = vld [vmem:[%s1239_s1 + $0x68] sm:$0x3f] }
   0x5   :  { %v85_v13 = vld [vmem:[%s1239_s1 + $0x50] sm:$0xff]  ;;  %v90_v14 = vld [vmem:[%s1239_s1 + $0x78] sm:$0x3f]  ;;  %v87_v15 = vld [vmem:[%s1239_s1 + $0x60] sm:$0xff] }
   0x6   :  { %93 = vperm.xlu1 %510, %v75_v4   ;;  %v89_v16 = vld [vmem:[%s1239_s1 + $0x70] sm:$0xff]  ;;  %v655_v18 = vld [vmem:[%s1240_s0 + $0x38] sm:$0x3f]  ;;  %v716_v41 = vld [vmem:[%s1240_s0] sm:$0xff] }
   0x7   :  { %108 = vperm.xlu0 %509, %v78_v3   ;;  %v650_v17 = vld [vmem:[%s1240_s0 + $0x30] sm:$0x3f]  ;;  %v665_v22 = vld [vmem:[%s1240_s0 + $0x18] sm:$0x3f]  ;;  %v50_v24 = vmul.f32 4.0, %v655_v18  ;;  %1259 = vst [vmem:[#allocation2_spill] sm:$0xff] %v716_v41 }
   0x8   :  { %v660_v21 = vld [vmem:[%s1240_s0 + $0x10] sm:$0x3f]  ;;  %v49_v23 = vmul.f32 4.0, %v650_v17  ;;  %v46_v26 = vmul.f32 4.0, %v665_v22  ;;  %v679_v28 = vld [vmem:[%s1240_s0 + $0x58] sm:$0x3f] }
   0x9   :  { %v45_v25 = vmul.f32 4.0, %v660_v21  ;;  %v674_v27 = vld [vmem:[%s1240_s0 + $0x50] sm:$0x3f]  ;;  %v695_v34 = vld [vmem:[%s1240_s0 + $0x78] sm:$0x3f]  ;;  %v54_v36 = vmul.f32 4.0, %v679_v28 }
   0xa   :  { %128 = vperm.xlu1 %510, %v82_v6   ;;  %v690_v33 = vld [vmem:[%s1240_s0 + $0x70] sm:$0x3f]  ;;  %v53_v35 = vmul.f32 4.0, %v674_v27  ;;  %v711_v40 = vld [vmem:[%s1240_s0 + $0x98] sm:$0x3f]  ;;  %v727_v46 = vld [vmem:[%s1240_s0 + $0x8] sm:$0xff] }
   0xb   :  { %103 = vperm.xlu0 %509, %v77_v5   ;;  %v706_v39 = vld [vmem:[%s1240_s0 + $0x90] sm:$0x3f]  ;;  %1260 = vst [vmem:[#allocation3_spill] sm:$0xff] %v727_v46  ;;  %v732_v47 = vld [vmem:[%s1240_s0 + $0x20] sm:$0xff]  ;;  %v57_v48 = vmul.f32 4.0, %v690_v33  ;;  %v58_v49 = vmul.f32 4.0, %v695_v34 }
   0xc   :  { %1261 = vst [vmem:[#allocation4_spill] sm:$0xff] %v732_v47  ;;  %v61_v50 = vmul.f32 4.0, %v706_v39  ;;  %v62_v51 = vmul.f32 4.0, %v711_v40  ;;  %v741_v52 = vld [vmem:[%s1240_s0 + $0xb0] sm:$0x3f]  ;;  %v759_v58 = vld [vmem:[%s1240_s0 + $0x28] sm:$0xff] }
   0xd   :  { %v746_v53 = vld [vmem:[%s1240_s0 + $0xb8] sm:$0x3f]  ;;  %1262 = vst [vmem:[#allocation5_spill] sm:$0xff] %v759_v58  ;;  %v764_v59 = vld [vmem:[%s1240_s0 + $0x40] sm:$0xff]  ;;  %v769_v60 = vld [vmem:[%s1240_s0 + $0x48] sm:$0xff]  ;;  %v43_v63 = vmul.f32 4.0, %v716_v41 }
   0xe   :  { %138 = vperm.xlu1 %510, %v84_v8   ;;  %1263 = vst [vmem:[#allocation6_spill] sm:$0xff] %v764_v59  ;;  %1264 = vst [vmem:[#allocation7_spill] sm:$0xff] %v769_v60  ;;  %v44_v0 = vmul.f32 4.0, %v727_v46  ;;  %v65_v5 = vmul.f32 4.0, %v741_v52  ;;  %v66_v6 = vmul.f32 4.0, %v746_v53 }
   0xf   :  { %113 = vperm.xlu0 %509, %v79_v7   ;;  %v784_v7 = vld [vmem:[%s1240_s0 + $0xd0] sm:$0x3f]  ;;  %v789_v8 = vld [vmem:[%s1240_s0 + $0xd8] sm:$0x3f] }
  0x12   :  { %148 = vperm.xlu1 %510, %v86_v10   ;;  %v48_v10 = vmul.f32 4.0, %v759_v58 }
  0x13   :  { %123 = vperm.xlu0 %509, %v81_v9   ;;  %v47_v9 = vmul.f32 4.0, %v732_v47 }
  0x16   :  { %158 = vperm.xlu1 %510, %v88_v12   ;;  %v52_v12 = vmul.f32 4.0, %v769_v60  ;;  %v862_v60 = vld [vmem:[%s1240_s0 + $0xa0] sm:$0xff] }
  0x17   :  { %133 = vperm.xlu0 %509, %v83_v11   ;;  %v51_v11 = vmul.f32 4.0, %v764_v59  ;;  %1270 = vst [vmem:[#allocation13_spill] sm:$0xff] %v862_v60  ;;  %v867_v59 = vld [vmem:[%s1240_s0 + $0xa8] sm:$0xff] }
  0x18   :  { %1271 = vst [vmem:[#allocation14_spill] sm:$0xff] %v867_v59 }
  0x1a   :  { %168 = vperm.xlu1 %510, %v90_v14  }
  0x1b   :  { %143 = vperm.xlu0 %509, %v85_v13   ;;  %v798_v13 = vld [vmem:[%s1240_s0 + $0x60] sm:$0xff] }
  0x1c   :  { %1265 = vst [vmem:[#allocation8_spill] sm:$0xff] %v798_v13 }
  0x1e   :  { %163 = vperm.xlu1 %510, %v89_v16  }
  0x1f   :  { %153 = vperm.xlu0 %509, %v87_v15  }
  0x81   :  { %v119_v19 = vpop.permute.xlu1 %118 }
  0x82   :  { %v99_v20 = vpop.permute.xlu0 %98  ;;  %v748_v54 = vadd.f32 %v119_v19, %v53_v35  ;;  %v750_v55 = vadd.f32 %v119_v19, %v54_v36  ;;  %v69_v36 = vmul.f32 4.0, %v784_v7 }
  0x83   :  { %v699_v37 = vadd.f32 %v99_v20, %v45_v25  ;;  %v701_v38 = vadd.f32 %v99_v20, %v46_v26  ;;  %v811_v20 = vld [vmem:[%s1240_s0 + $0x68] sm:$0xff] }
  0x84   :  { %v221_v14 = vsel %vm217_vm0, %v748_v54, -inf  ;;  %v236_v15 = vsel %vm217_vm0, %v750_v55, -inf  ;;  %1266 = vst [vmem:[#allocation9_spill] sm:$0xff] %v811_v20 }
  0x85   :  { %v681_v30 = vpop.permute.xlu1 %93  ;;  %v218_v56 = vsel %vm217_vm0, %v699_v37, -inf  ;;  %v233_v57 = vsel %vm217_vm0, %v701_v38, -inf }
  0x86   :  { %v109_v29 = vpop.permute.xlu0 %108 }
  0x87   :  { %v683_v31 = vadd.f32 %v109_v29, %v49_v23  ;;  %v685_v32 = vadd.f32 %v109_v29, %v50_v24  ;;  %v816_v23 = vld [vmem:[%s1240_s0 + $0x80] sm:$0xff]  ;;  %v821_v24 = vld [vmem:[%s1240_s0 + $0x88] sm:$0xff] }
  0x88   :  { %1267 = vst [vmem:[#allocation10_spill] sm:$0xff] %v816_v23  ;;  %1268 = vst [vmem:[#allocation11_spill] sm:$0xff] %v821_v24 }
  0x89   :  { %v129_v43 = vpop.permute.xlu1 %128  ;;  %v219_v44 = vsel %vm217_vm0, %v683_v31, -inf  ;;  %v234_v45 = vsel %vm217_vm0, %v685_v32, -inf }
  0x8a   :  { %v718_v42 = vpop.permute.xlu0 %103  ;;  %v220_v61 = vmax.f32 %v218_v56, %v219_v44  ;;  %v235_v62 = vmax.f32 %v233_v57, %v234_v45  ;;  %v775_v3 = vadd.f32 %v129_v43, %v57_v48  ;;  %v777_v4 = vadd.f32 %v129_v43, %v58_v49  ;;  %v828_v44 = vld [vmem:[%s1240_s0 + $0xf0] sm:$0x3f]  ;;  %v833_v45 = vld [vmem:[%s1240_s0 + $0xf8] sm:$0x3f] }
  0x8b   :  { %v70_v43 = vmul.f32 4.0, %v789_v8  ;;  %1269 = vst [vmem:[#allocation12_spill] sm:$0xff] %v833_v45  ;;  %v55_v56 = vmul.f32 4.0, %v798_v13  ;;  %v56_v57 = vmul.f32 4.0, %v811_v20 }
  0x8c   :  { %v222_v25 = vmax.f32 %v220_v61, %v221_v14  ;;  %v237_v26 = vmax.f32 %v235_v62, %v236_v15  ;;  %v223_v48 = vsel %vm217_vm0, %v775_v3, -inf  ;;  %v238_v49 = vsel %vm217_vm0, %v777_v4, -inf }
  0x8d   :  { %v139_v2 = vpop.permute.xlu1 %138  ;;  %v59_v61 = vmul.f32 4.0, %v816_v23  ;;  %v60_v62 = vmul.f32 4.0, %v821_v24  ;;  %v73_v15 = vmul.f32 4.0, %v828_v44 }
  0x8e   :  { %v773_v1 = vpop.permute.xlu0 %113  ;;  %v804_v16 = vadd.f32 %v139_v2, %v61_v50  ;;  %v806_v19 = vadd.f32 %v139_v2, %v62_v51  ;;  %v224_v20 = vmax.f32 %v222_v25, %v223_v48  ;;  %v239_v23 = vmax.f32 %v237_v26, %v238_v49 }
  0x8f   :  { %v878_v48 = vadd.f32 %v718_v42, %v48_v10  ;;  %v881_v49 = vadd.f32 %v773_v1, %v51_v11 }
  0x90   :  { %v225_v2 = vsel %vm217_vm0, %v804_v16, -inf  ;;  %v240_v14 = vsel %vm217_vm0, %v806_v19, -inf }
  0x91   :  { %v149_v35 = vpop.permute.xlu1 %148  ;;  %v226_v58 = vmax.f32 %v224_v20, %v225_v2  ;;  %v241_v47 = vmax.f32 %v239_v23, %v240_v14 }
  0x92   :  { %v124_v29 = vpop.permute.xlu0 %123  ;;  %v839_v50 = vadd.f32 %v149_v35, %v65_v5  ;;  %v841_v51 = vadd.f32 %v149_v35, %v66_v6  ;;  %v74_v5 = vmul.f32 4.0, %v833_v45  ;;  %v854_v6 = vadd.f32 %v681_v30, %v43_v63 }
  0x93   :  { %v857_v35 = vadd.f32 %v718_v42, %v47_v9  ;;  %v63_v45 = vmul.f32 4.0, %v862_v60  ;;  %v897_v2 = vadd.f32 %v124_v29, %v55_v56  ;;  %v916_v56 = vadd.f32 %v124_v29, %v56_v57 }
  0x94   :  { %v227_v63 = vsel %vm217_vm0, %v839_v50, -inf  ;;  %v242_v9 = vsel %vm217_vm0, %v841_v51, -inf }
  0x95   :  { %v159_v24 = vpop.permute.xlu1 %158  ;;  %v203_v42 = vmax.f32 %v854_v6, %v857_v35  ;;  %v228_v10 = vmax.f32 %v226_v58, %v227_v63  ;;  %v243_v11 = vmax.f32 %v241_v47, %v242_v9  ;;  %v911_v47 = vld [vmem:[%s1240_s0 + $0xc8] sm:$0xff]  ;;  %v927_v9 = vld [vmem:[%s1240_s0 + $0xe0] sm:$0xff] }
  0x96   :  { %v134_v13 = vpop.permute.xlu0 %133  ;;  %v873_v25 = vadd.f32 %v159_v24, %v69_v36  ;;  %v875_v26 = vadd.f32 %v159_v24, %v70_v43  ;;  %v64_v36 = vmul.f32 4.0, %v867_v59  ;;  %v890_v24 = vadd.f32 %v681_v30, %v44_v0  ;;  %v906_v30 = vld [vmem:[%s1240_s0 + $0xc0] sm:$0xff]  ;;  %1273 = vst [vmem:[#allocation16_spill] sm:$0xff] %v911_v47  ;;  %1274 = vst [vmem:[#allocation17_spill] sm:$0xff] %v927_v9 }
  0x97   :  { %v895_v43 = vadd.f32 %v773_v1, %v52_v12  ;;  %1272 = vst [vmem:[#allocation15_spill] sm:$0xff] %v906_v30  ;;  %v204_v0 = vmax.f32 %v203_v42, %v881_v49 }
  0x98   :  { %v229_v46 = vsel %vm217_vm0, %v873_v25, -inf  ;;  %v244_v41 = vsel %vm217_vm0, %v875_v26, -inf  ;;  %v210_v58 = vmax.f32 %v890_v24, %v878_v48 }
  0x99   :  { %v169_v23 = vpop.permute.xlu1 %168  ;;  %v230_v1 = vmax.f32 %v228_v10, %v229_v46  ;;  %v245_v12 = vmax.f32 %v243_v11, %v244_v41  ;;  %v67_v41 = vmul.f32 4.0, %v906_v30  ;;  %v68_v46 = vmul.f32 4.0, %v911_v47 }
  0x9a   :  { %v144_v20 = vpop.permute.xlu0 %143  ;;  %v899_v14 = vadd.f32 %v169_v23, %v73_v15  ;;  %v901_v60 = vadd.f32 %v169_v23, %v74_v5  ;;  %v918_v15 = vadd.f32 %v134_v13, %v59_v61  ;;  %v211_v29 = vmax.f32 %v210_v58, %v895_v43 }
  0x9b   :  { %v205_v57 = vmax.f32 %v204_v0, %v897_v2  ;;  %v937_v61 = vadd.f32 %v134_v13, %v60_v62  ;;  %v939_v10 = vadd.f32 %v144_v20, %v63_v45  ;;  %v71_v13 = vmul.f32 4.0, %v927_v9 }
  0x9c   :  { %v231_v5 = vsel %vm217_vm0, %v899_v14, -inf  ;;  %v246_v63 = vsel %vm217_vm0, %v901_v60, -inf  ;;  %v212_v45 = vmax.f32 %v211_v29, %v916_v56  ;;  %v955_v0 = vadd.f32 %v144_v20, %v64_v36 }
  0x9d   :  { %v929_v23 = vmax.f32 %v230_v1, %v231_v5  ;;  %v931_v42 = vmax.f32 %v245_v12, %v246_v63  ;;  %v944_v1 = vld [vmem:[%s1240_s0 + $0xe8] sm:$0xff]  ;;  %v206_v62 = vmax.f32 %v205_v57, %v918_v15 }
  0x9e   :  { %v154_v11 = vpop.permute.xlu0 %153  ;;  %1275 = vst [vmem:[#allocation18_spill] sm:$0xff] %v944_v1  ;;  %v72_v30 = vmul.f32 4.0, %v944_v1 }
  0x9f   :  { %v250_v12 = vsub.f32 %v699_v37, %v929_v23  ;;  %v251_v5 = vsub.f32 %v701_v38, %v931_v42  ;;  %v254_v58 = vsub.f32 %v683_v31, %v929_v23  ;;  %v255_v63 = vsub.f32 %v685_v32, %v931_v42  ;;  %v164_v38 = vpop.permute.xlu1 %163 }
  0xa0   :  { %v258_v37 = vsub.f32 %v748_v54, %v929_v23  ;;  %v961_v47 = vadd.f32 %v154_v11, %v67_v41  ;;  %v213_v31 = vmax.f32 %v212_v45, %v937_v61  ;;  %v207_v9 = vmax.f32 %v206_v62, %v939_v10 }
  0xa1   :  { %v259_v29 = vsub.f32 %v750_v55, %v931_v42  ;;  %v968_v36 = vadd.f32 %v154_v11, %v68_v46  ;;  %v262_v32 = vsub.f32 %v775_v3, %v929_v23  ;;  %v284_v20 = vmul.f32 1.442695, %v250_v12 }
  0xa2   :  { %v286_v57 = vmul.f32 1.442695, %v251_v5  ;;  %v292_v54 = vmul.f32 1.442695, %v254_v58  ;;  %v214_v41 = vmax.f32 %v213_v31, %v955_v0  ;;  %v263_v1 = vsub.f32 %v777_v4, %v931_v42 }
  0xa3   :  { %v294_v59 = vmul.f32 1.442695, %v255_v63  ;;  %v975_v45 = vadd.f32 %v164_v38, %v71_v13  ;;  %v266_v62 = vsub.f32 %v804_v16, %v929_v23  ;;  %511 = vpow2.f32 %v284_v20 }
  0xa4   :  { %v300_v55 = vmul.f32 1.442695, %v258_v37  ;;  %v208_v46 = vmax.f32 %v207_v9, %v961_v47  ;;  %v267_v3 = vsub.f32 %v806_v19, %v931_v42  ;;  %513 = vpow2.f32 %v286_v57 }
  0xa5   :  { %v302_v11 = vmul.f32 1.442695, %v259_v29  ;;  %v215_v12 = vmax.f32 %v214_v41, %v968_v36  ;;  %v270_v4 = vsub.f32 %v839_v50, %v929_v23  ;;  %515 = vpow2.f32 %v292_v54 }
  0xa6   :  { %v308_v5 = vmul.f32 1.442695, %v262_v32  ;;  %v985_v58 = vadd.f32 %v164_v38, %v72_v30  ;;  %v271_v16 = vsub.f32 %v841_v51, %v931_v42  ;;  %v274_v9 = vsub.f32 %v873_v25, %v929_v23 }
  0xa7   :  { %517 = vpow2.f32 %v294_v59  ;;  %v310_v13 = vmul.f32 1.442695, %v263_v1  ;;  %v275_v19 = vsub.f32 %v875_v26, %v931_v42  ;;  %v316_v63 = vmul.f32 1.442695, %v266_v62 }
  0xa8   :  { %519 = vpow2.f32 %v300_v55  ;;  %v994_v37 = vmax.f32 %v208_v46, %v975_v45  ;;  %v278_v50 = vsub.f32 %v899_v14, %v929_v23  ;;  %v318_v30 = vmul.f32 1.442695, %v267_v3 }
  0xa9   :  { %521 = vpow2.f32 %v302_v11  ;;  %v999_v51 = vmax.f32 %v215_v12, %v985_v58  ;;  %v279_v59 = vsub.f32 %v901_v60, %v931_v42  ;;  %v324_v25 = vmul.f32 1.442695, %v270_v4 }
  0xaa   :  { %523 = vpow2.f32 %v308_v5  ;;  %v326_v26 = vmul.f32 1.442695, %v271_v16  ;;  %v332_v1 = vmul.f32 1.442695, %v274_v9  ;;  %v248_v38 = vsub.f32 %v854_v6, %v994_v37 }
  0xab   :  { %525 = vpow2.f32 %v310_v13  ;;  %v334_v31 = vmul.f32 1.442695, %v275_v19  ;;  %v340_v14 = vmul.f32 1.442695, %v278_v50  ;;  %v249_v23 = vsub.f32 %v890_v24, %v999_v51 }
  0xac   :  { %527 = vpow2.f32 %v316_v63  ;;  %v342_v32 = vmul.f32 1.442695, %v279_v59  ;;  %v252_v60 = vsub.f32 %v857_v35, %v994_v37  ;;  %v253_v42 = vsub.f32 %v878_v48, %v999_v51 }
  0xad   :  { %529 = vpow2.f32 %v318_v30  ;;  %v1007_v29 = vpop.eup %511  ;;  %v256_v57 = vsub.f32 %v881_v49, %v994_v37  ;;  %v257_v24 = vsub.f32 %v895_v43, %v999_v51  ;;  %v260_v48 = vsub.f32 %v897_v2, %v994_v37 }
  0xae   :  { %531 = vpow2.f32 %v324_v25  ;;  %v1013_v20 = vpop.eup %513  ;;  %v358_v6 = vsel %vm217_vm0, %v1007_v29, 0.0  ;;  %v280_v41 = vmul.f32 1.442695, %v248_v38  ;;  %v261_v49 = vsub.f32 %v916_v56, %v999_v51 }
  0xaf   :  { %533 = vpow2.f32 %v326_v26  ;;  %v1021_v54 = vpop.eup %515  ;;  %v373_v35 = vsel %vm217_vm0, %v1013_v20, 0.0  ;;  %v282_v43 = vmul.f32 1.442695, %v249_v23  ;;  %v288_v12 = vmul.f32 1.442695, %v252_v60 }
  0xb0   :  { %535 = vpow2.f32 %v332_v1  ;;  %v359_v55 = vsel %vm217_vm0, %v1021_v54, 0.0  ;;  %v290_v16 = vmul.f32 1.442695, %v253_v42  ;;  %v296_v19 = vmul.f32 1.442695, %v256_v57 }
  0xb1   :  { %v1027_v62 = vpop.eup %517  ;;  %537 = vpow2.f32 %v334_v31  ;;  %v360_v3 = vadd.f32 %v359_v55, %v358_v6  ;;  %v298_v59 = vmul.f32 1.442695, %v257_v24  ;;  %v264_v38 = vsub.f32 %v918_v15, %v994_v37 }
  0xb2   :  { %v1033_v46 = vpop.eup %519  ;;  %539 = vpow2.f32 %v340_v14  ;;  %v374_v11 = vsel %vm217_vm0, %v1027_v62, 0.0  ;;  %v304_v57 = vmul.f32 1.442695, %v260_v48 }
  0xb3   :  { %v1037_v2 = vpop.eup %521  ;;  %541 = vpow2.f32 %v342_v32  ;;  %v361_v4 = vsel %vm217_vm0, %v1033_v46, 0.0  ;;  %v375_v5 = vadd.f32 %v374_v11, %v373_v35  ;;  %v265_v32 = vsub.f32 %v937_v61, %v999_v51 }
  0xb4   :  { %v1041_v9 = vpop.eup %523  ;;  %v362_v56 = vadd.f32 %v361_v4, %v360_v3  ;;  %v376_v13 = vsel %vm217_vm0, %v1037_v2, 0.0  ;;  %543 = vpow2.f32 %v280_v41  ;;  %v306_v41 = vmul.f32 1.442695, %v261_v49 }
  0xb5   :  { %v1045_v63 = vpop.eup %525  ;;  %v363_v50 = vsel %vm217_vm0, %v1041_v9, 0.0  ;;  %v377_v30 = vadd.f32 %v376_v13, %v375_v5  ;;  %545 = vpow2.f32 %v282_v43  ;;  %v312_v3 = vmul.f32 1.442695, %v264_v38 }
  0xb6   :  { %v1049_v25 = vpop.eup %527  ;;  %v364_v26 = vadd.f32 %v363_v50, %v362_v56  ;;  %v378_v1 = vsel %vm217_vm0, %v1045_v63, 0.0  ;;  %547 = vpow2.f32 %v288_v12  ;;  %v314_v4 = vmul.f32 1.442695, %v265_v32 }
  0xb7   :  { %v1055_v31 = vpop.eup %529  ;;  %v365_v14 = vsel %vm217_vm0, %v1049_v25, 0.0  ;;  %v379_v23 = vadd.f32 %v378_v1, %v377_v30  ;;  %549 = vpow2.f32 %v290_v16  ;;  %v268_v56 = vsub.f32 %v939_v10, %v994_v37 }
  0xb8   :  { %v1061_v60 = vpop.eup %531  ;;  %v366_v42 = vadd.f32 %v365_v14, %v364_v26  ;;  %v380_v6 = vsel %vm217_vm0, %v1055_v31, 0.0  ;;  %551 = vpow2.f32 %v296_v19  ;;  %v269_v30 = vsub.f32 %v955_v0, %v999_v51 }
  0xb9   :  { %v1065_v15 = vpop.eup %533  ;;  %v367_v24 = vsel %vm217_vm0, %v1061_v60, 0.0  ;;  %v381_v35 = vadd.f32 %v380_v6, %v379_v23  ;;  %553 = vpow2.f32 %v298_v59  ;;  %v320_v23 = vmul.f32 1.442695, %v268_v56 }
  0xba   :  { %v1069_v55 = vpop.eup %535  ;;  %v368_v61 = vadd.f32 %v367_v24, %v366_v42  ;;  %v382_v43 = vsel %vm217_vm0, %v1065_v15, 0.0  ;;  %555 = vpow2.f32 %v304_v57  ;;  %v322_v0 = vmul.f32 1.442695, %v269_v30 }
  0xbb   :  { %v1073_v11 = vpop.eup %537  ;;  %v369_v48 = vsel %vm217_vm0, %v1069_v55, 0.0  ;;  %v383_v12 = vadd.f32 %v382_v43, %v381_v35  ;;  %557 = vpow2.f32 %v306_v41  ;;  %v272_v35 = vsub.f32 %v961_v47, %v994_v37 }
  0xbc   :  { %v1077_v5 = vpop.eup %539  ;;  %v370_v16 = vadd.f32 %v369_v48, %v368_v61  ;;  %v384_v49 = vsel %vm217_vm0, %v1073_v11, 0.0  ;;  %559 = vpow2.f32 %v312_v3  ;;  %v273_v41 = vsub.f32 %v968_v36, %v999_v51 }
  0xbd   :  { %v1083_v13 = vpop.eup %541  ;;  %v371_v19 = vsel %vm217_vm0, %v1077_v5, 0.0  ;;  %v385_v50 = vadd.f32 %v384_v49, %v383_v12  ;;  %561 = vpow2.f32 %v314_v4  ;;  %v276_v3 = vsub.f32 %v975_v45, %v994_v37 }
  0xbe   :  { %v1089_v59 = vpop.eup %543  ;;  %v372_v26 = vadd.f32 %v371_v19, %v370_v16  ;;  %v386_v1 = vsel %vm217_vm0, %v1083_v13, 0.0  ;;  %v277_v12 = vsub.f32 %v985_v58, %v999_v51  ;;  %v328_v47 = vmul.f32 1.442695, %v272_v35 }
  0xbf   :  { %v1093_v38 = vpop.eup %545  ;;  %v387_v10 = vadd.f32 %v386_v1, %v385_v50  ;;  %v330_v36 = vmul.f32 1.442695, %v273_v41  ;;  %v336_v50 = vmul.f32 1.442695, %v276_v3 }
  0xc0   :  { %v1095_v14 = vpop.eup %547  ;;  %563 = vrcp.f32 %v372_v26  ;;  %v338_v37 = vmul.f32 1.442695, %v277_v12 }
  0xc1   :  { %v1097_v32 = vpop.eup %549  ;;  %565 = vrcp.f32 %v387_v10  ;;  %v344_v42 = vadd.f32 %v1095_v14, %v1089_v59 }
  0xc2   :  { %v1101_v6 = vpop.eup %551  ;;  %v351_v57 = vadd.f32 %v1097_v32, %v1093_v38  ;;  %567 = vpow2.f32 %v320_v23 }
  0xc3   :  { %v1105_v24 = vpop.eup %553  ;;  %v345_v61 = vadd.f32 %v1101_v6, %v344_v42  ;;  %569 = vpow2.f32 %v322_v0 }
  0xc4   :  { %v352_v43 = vadd.f32 %v1105_v24, %v351_v57  ;;  %v1115_v48 = vpop.eup %555  ;;  %571 = vpow2.f32 %v328_v47 }
  0xc5   :  { %v1119_v4 = vpop.eup %557  ;;  %v346_v49 = vadd.f32 %v1115_v48, %v345_v61  ;;  %573 = vpow2.f32 %v330_v36 }
  0xc6   :  { %v1121_v16 = vpop.eup %559  ;;  %v353_v56 = vadd.f32 %v1119_v4, %v352_v43  ;;  %575 = vpow2.f32 %v336_v50 }
  0xc7   :  { %v1125_v19 = vpop.eup %561  ;;  %v347_v51 = vadd.f32 %v1121_v16, %v346_v49  ;;  %577 = vpow2.f32 %v338_v37 }
  0xc8   :  { %v354_v1 = vadd.f32 %v1125_v19, %v353_v56 }
  0xca   :  { %v564_v45 = vpop.eup %563 }
  0xcb   :  { %v566_v30 = vpop.eup %565  ;;  %v394_v26 = vmul.f32 %v564_v45, %v1007_v29  ;;  %v398_v58 = vmul.f32 %v564_v45, %v1021_v54  ;;  %v402_v0 = vmul.f32 %v564_v45, %v1033_v46  ;;  %v406_v54 = vmul.f32 %v564_v45, %v1041_v9 }
  0xcc   :  { %v395_v10 = vmul.f32 %v566_v30, %v1013_v20  ;;  %v399_v23 = vmul.f32 %v566_v30, %v1027_v62  ;;  %v1134_v42 = vpop.eup %567  ;;  %v403_v29 = vmul.f32 %v566_v30, %v1037_v2  ;;  %v407_v20 = vmul.f32 %v566_v30, %v1045_v63 }
  0xcd   :  { %v1136_v57 = vpop.eup %569  ;;  %v426_v35 = vmul.f32 %v394_v26, %v660_v21  ;;  %v430_v41 = vmul.f32 %v398_v58, %v650_v17  ;;  %v348_v62 = vadd.f32 %v1134_v42, %v347_v51  ;;  %v410_v61 = vmul.f32 %v564_v45, %v1049_v25 }
  0xce   :  { %v355_v46 = vadd.f32 %v1136_v57, %v354_v1  ;;  %v427_v43 = vmul.f32 %v395_v10, %v665_v22  ;;  %v431_v3 = vmul.f32 %v399_v23, %v655_v18  ;;  %v434_v2 = vmul.f32 %v402_v0, %v674_v27 }
  0xcf   :  { %v411_v9 = vmul.f32 %v566_v30, %v1055_v31  ;;  %v414_v21 = vmul.f32 %v564_v45, %v1061_v60  ;;  %v415_v17 = vmul.f32 %v566_v30, %v1065_v15  ;;  %v418_v63 = vmul.f32 %v564_v45, %v1069_v55  ;;  %v1160_v60 = vpop.eup %571 }
  0xd0   :  { %v435_v12 = vmul.f32 %v403_v29, %v679_v28  ;;  %v438_v47 = vmul.f32 %v406_v54, %v690_v33  ;;  %v470_v25 = vsel %vm217_vm0, %v426_v35, 0.0  ;;  %v471_v22 = vsel %vm217_vm0, %v430_v41, 0.0  ;;  %v1166_v49 = vpop.eup %573 }
  0xd1   :  { %v419_v18 = vmul.f32 %v566_v30, %v1073_v11  ;;  %v422_v27 = vmul.f32 %v564_v45, %v1077_v5  ;;  %v439_v31 = vmul.f32 %v407_v20, %v695_v34  ;;  %v472_v36 = vadd.f32 %v471_v22, %v470_v25  ;;  %v1170_v34 = vpop.eup %575 }
  0xd2   :  { %v442_v15 = vmul.f32 %v410_v61, %v706_v39  ;;  %v473_v55 = vsel %vm217_vm0, %v434_v2, 0.0  ;;  %v485_v28 = vsel %vm217_vm0, %v427_v43, 0.0  ;;  %v486_v33 = vsel %vm217_vm0, %v431_v3, 0.0  ;;  %v1176_v58 = vpop.eup %577 }
  0xd3   :  { %v423_v56 = vmul.f32 %v566_v30, %v1083_v13  ;;  %v443_v11 = vmul.f32 %v411_v9, %v711_v40  ;;  %v474_v5 = vadd.f32 %v473_v55, %v472_v36  ;;  %v487_v50 = vadd.f32 %v486_v33, %v485_v28  ;;  %v1277_v55 = vld [vmem:[#allocation2_spill] sm:$0xff]  ;;  %v1278_v33 = vld [vmem:[#allocation3_spill] sm:$0xff] }
  0xd4   :  { %v446_v45 = vmul.f32 %v414_v21, %v741_v52  ;;  %v475_v39 = vsel %vm217_vm0, %v438_v47, 0.0  ;;  %v488_v37 = vsel %vm217_vm0, %v435_v12, 0.0  ;;  %v349_v26 = vadd.f32 %v1160_v60, %v348_v62 }
  0xd5   :  { %v447_v51 = vmul.f32 %v415_v17, %v746_v53  ;;  %v476_v1 = vadd.f32 %v475_v39, %v474_v5  ;;  %v489_v13 = vadd.f32 %v488_v37, %v487_v50  ;;  %v356_v40 = vadd.f32 %v1166_v49, %v355_v46  ;;  %v1276_v46 = vld [vmem:[#allocation12_spill] sm:$0xff]  ;;  %v1280_v50 = vld [vmem:[#allocation5_spill] sm:$0xff]  ;;  %v1281_v39 = vld [vmem:[#allocation6_spill] sm:$0xff] }
  0xd6   :  { %v450_v30 = vmul.f32 %v418_v63, %v784_v7  ;;  %v477_v10 = vsel %vm217_vm0, %v442_v15, 0.0  ;;  %v490_v52 = vsel %vm217_vm0, %v439_v31, 0.0  ;;  %v350_v23 = vadd.f32 %v1170_v34, %v349_v26  ;;  %v1282_v37 = vld [vmem:[#allocation7_spill] sm:$0xff] }
  0xd7   :  { %v451_v0 = vmul.f32 %v419_v18, %v789_v8  ;;  %v478_v29 = vadd.f32 %v477_v10, %v476_v1  ;;  %v491_v54 = vadd.f32 %v490_v52, %v489_v13  ;;  %v357_v35 = vadd.f32 %v1176_v58, %v356_v40  ;;  %v1283_v40 = vld [vmem:[#allocation8_spill] sm:$0xff]  ;;  %v1284_v10 = vld [vmem:[#allocation9_spill] sm:$0xff] }
  0xd8   :  { %v454_v53 = vmul.f32 %v422_v27, %v828_v44  ;;  %v479_v41 = vsel %vm217_vm0, %v446_v45, 0.0  ;;  %v492_v20 = vsel %vm217_vm0, %v443_v11, 0.0  ;;  %579 = vrcp.f32 %v350_v23  ;;  %v1279_v11 = vld [vmem:[#allocation4_spill] sm:$0xff]  ;;  %v1285_v23 = vld [vmem:[#allocation10_spill] sm:$0xff] }
  0xd9   :  { %v480_v7 = vadd.f32 %v479_v41, %v478_v29  ;;  %v493_v62 = vadd.f32 %v492_v20, %v491_v54  ;;  %581 = vrcp.f32 %v357_v35  ;;  %v455_v61 = vmul.f32 %v423_v56, %v1276_v46  ;;  %v1286_v29 = vld [vmem:[#allocation11_spill] sm:$0xff]  ;;  %v1287_v41 = vld [vmem:[#allocation13_spill] sm:$0xff] }
  0xda   :  { %v481_v43 = vsel %vm217_vm0, %v450_v30, 0.0  ;;  %v494_v8 = vsel %vm217_vm0, %v447_v51, 0.0  ;;  %v483_v9 = vsel %vm217_vm0, %v454_v53, 0.0  ;;  %v496_v44 = vsel %vm217_vm0, %v451_v0, 0.0 }
  0xdb   :  { %v482_v3 = vadd.f32 %v481_v43, %v480_v7  ;;  %v495_v2 = vadd.f32 %v494_v8, %v493_v62  ;;  %v498_v63 = vsel %vm217_vm0, %v455_v61, 0.0  ;;  %v1288_v7 = vld [vmem:[#allocation14_spill] sm:$0xff]  ;;  %v1289_v43 = vld [vmem:[#allocation15_spill] sm:$0xff]  ;;  %v1290_v8 = vld [vmem:[#allocation16_spill] sm:$0xff] }
  0xdd   :  { %v484_v21 = vadd.f32 %v483_v9, %v482_v3  ;;  %v497_v17 = vadd.f32 %v496_v44, %v495_v2  ;;  %v1291_v9 = vld [vmem:[#allocation17_spill] sm:$0xff] }
  0xdf   :  { %v499_v12 = vadd.f32 %v498_v63, %v497_v17  ;;  %502 = vst [vmem:[%s1241_s2 + $0x10] sm:$0x3f] %v484_v21  ;;  %v1292_v21 = vld [vmem:[#allocation18_spill] sm:$0xff] }
  0xe1   :  { %503 = vst [vmem:[%s1241_s2 + $0x18] sm:$0x3f] %v499_v12 }
  0xe2   :  { %v580_v47 = vpop.eup %579 }
  0xe3   :  { %v582_v25 = vpop.eup %581  ;;  %v392_v22 = vmul.f32 %v580_v47, %v1089_v59  ;;  %v396_v18 = vmul.f32 %v580_v47, %v1095_v14  ;;  %v400_v36 = vmul.f32 %v580_v47, %v1101_v6  ;;  %v404_v59 = vmul.f32 %v580_v47, %v1115_v48 }
  0xe4   :  { %v393_v27 = vmul.f32 %v582_v25, %v1093_v38  ;;  %v397_v31 = vmul.f32 %v582_v25, %v1097_v32  ;;  %v401_v15 = vmul.f32 %v582_v25, %v1105_v24  ;;  %v405_v14 = vmul.f32 %v582_v25, %v1119_v4 }
  0xe5   :  { %v424_v28 = vmul.f32 %v392_v22, %v1277_v55  ;;  %v428_v5 = vmul.f32 %v396_v18, %v1279_v11  ;;  %v408_v38 = vmul.f32 %v580_v47, %v1121_v16  ;;  %v409_v32 = vmul.f32 %v582_v25, %v1125_v19 }
  0xe6   :  { %v425_v56 = vmul.f32 %v393_v27, %v1278_v33  ;;  %v429_v45 = vmul.f32 %v397_v31, %v1280_v50  ;;  %v432_v6 = vmul.f32 %v400_v36, %v1281_v39  ;;  %v433_v24 = vmul.f32 %v401_v15, %v1282_v37 }
  0xe7   :  { %v456_v26 = vadd.f32 %v428_v5, %v424_v28  ;;  %v412_v1 = vmul.f32 %v580_v47, %v1134_v42  ;;  %v413_v13 = vmul.f32 %v582_v25, %v1136_v57  ;;  %v436_v30 = vmul.f32 %v404_v59, %v1283_v40 }
  0xe8   :  { %v463_v51 = vadd.f32 %v429_v45, %v425_v56  ;;  %v437_v48 = vmul.f32 %v405_v14, %v1284_v10  ;;  %v416_v16 = vmul.f32 %v580_v47, %v1160_v60  ;;  %v417_v19 = vmul.f32 %v582_v25, %v1166_v49 }
  0xe9   :  { %v457_v52 = vadd.f32 %v456_v26, %v432_v6  ;;  %v440_v0 = vmul.f32 %v408_v38, %v1285_v23  ;;  %v441_v54 = vmul.f32 %v409_v32, %v1286_v29  ;;  %v420_v42 = vmul.f32 %v580_v47, %v1170_v34 }
  0xea   :  { %v464_v4 = vadd.f32 %v463_v51, %v433_v24  ;;  %v421_v57 = vmul.f32 %v582_v25, %v1176_v58  ;;  %v444_v20 = vmul.f32 %v412_v1, %v1287_v41  ;;  %v445_v62 = vmul.f32 %v413_v13, %v1288_v7 }
  0xeb   :  { %v458_v35 = vadd.f32 %v457_v52, %v436_v30  ;;  %v448_v60 = vmul.f32 %v416_v16, %v1289_v43  ;;  %v449_v49 = vmul.f32 %v417_v19, %v1290_v8  ;;  %v452_v44 = vmul.f32 %v420_v42, %v1291_v9 }
  0xec   :  { %v465_v53 = vadd.f32 %v464_v4, %v437_v48  ;;  %v453_v17 = vmul.f32 %v421_v57, %v1292_v21 }
  0xed   :  { %v459_v46 = vadd.f32 %v458_v35, %v440_v0 }
  0xee   :  { %v466_v61 = vadd.f32 %v465_v53, %v441_v54 }
  0xef   :  { %v460_v3 = vadd.f32 %v459_v46, %v444_v20 }
  0xf0   :  { %v467_v2 = vadd.f32 %v466_v61, %v445_v62 }
  0xf1   :  { %v461_v63 = vadd.f32 %v460_v3, %v448_v60 }
  0xf2   :  { %v468_v34 = vadd.f32 %v467_v2, %v449_v49 }
  0xf3   :  { %v462_v12 = vadd.f32 %v461_v63, %v452_v44 }
  0xf4   :  { %v469_v58 = vadd.f32 %v468_v34, %v453_v17 }
  0xf5   :  { %500 = vst [vmem:[%s1241_s2] sm:$0xff] %v462_v12 }
  0xf6   :  { %501 = vst [vmem:[%s1241_s2 + $0x8] sm:$0xff] %v469_v58 }

</bundles_post_ra>
